<compile_context>
chip_gen: v7x
topology: tpu7x:2x2x1
jax: 0.10.0
libtpu: 0.0.40
codegen_flags: <defaults>
</compile_context>

<pallas_src>
import jax
import jax.numpy as jnp
from jax.experimental import pallas as pl
from jax.experimental.pallas import tpu as pltpu


# ----------------------------------------------------------------------------
# Fused Pallas kernel: encoders + LSTM + query + trunk + heads
# ----------------------------------------------------------------------------

def _prednet_kernel(
    # -------- data (time-major rows: row r = t*B + b) -----------------------
    msg_in, board_in, order_in,          # (T*B, .) f32
    query_in,                            # (B, num_loc + send_dim + num_loc*bf)
    h0, c0,                              # (B, H) f32
    chars_oh,                            # (B, 2*num_agent) = [other_oh | me_oh]
    # -------- encoder weights (layer-1 f32, big layer-2 bf16) ----------------
    msg_w1, msg_b1, msg_w2, msg_b2,
    board_w1, board_b1, board_w2, board_b2,
    order_w1, order_b1, order_w2, order_b2,
    # -------- LSTMCell, gates fused along lanes: i|f|g|o --------------------
    wih_m, wih_bd, wih_od,               # bf16, W_ih split along D=[msg|board|order]
    whh, lstm_b,                         # f32 (H,4H), f32 (1,4H) with b = b_ih + b_hh
    # -------- late-stage big weights, left in HBM (pl.ANY, manual DMA) ------
    query_w1_hbm, query_w2_hbm, fc1_wh_hbm, fc1_wq_hbm, fc1_wch_hbm, fc2_w_hbm,
    # -------- late-stage small params (VMEM resident, f32) -------------------
    query_b1, query_b2, fc1_b, fc2_b, heads_w, heads_b,
    # -------- output: [order(4) | dst(num_loc) | resp(2)], log-softmaxed -----
    out_ref,
    # -------- scratch: VMEM landing buffers + DMA semaphores ------------------
    qw1_v, qw2_v, f1h_v, f1q_v, f1c_v, f2w_v, dma_sems,
):
    B, H = h0.shape
    T = msg_in.shape[0] // B
    n_dst = out_ref.shape[-1] - 6        # total lanes = 4 + num_loc + 2

    # Kick off the late-stage weight DMA immediately; those weights are only
    # needed after the encoders and the serial LSTM recurrence, so the
    # HBM->VMEM transfer is hidden behind that compute.
    copies = (
        pltpu.make_async_copy(query_w1_hbm, qw1_v, dma_sems.at[0]),
        pltpu.make_async_copy(query_w2_hbm, qw2_v, dma_sems.at[1]),
        pltpu.make_async_copy(fc1_wh_hbm, f1h_v, dma_sems.at[2]),
        pltpu.make_async_copy(fc1_wq_hbm, f1q_v, dma_sems.at[3]),
        pltpu.make_async_copy(fc1_wch_hbm, f1c_v, dma_sems.at[4]),
        pltpu.make_async_copy(fc2_w_hbm, f2w_v, dma_sems.at[5]),
    )
    for cp in copies:
        cp.start()

    def dot(a, b):
        return jnp.dot(a, b, preferred_element_type=jnp.float32)

    def dotw(a, w):
        # bf16-stored weight: feed the MXU a bf16 x bf16 pass, accumulate f32.
        return jnp.dot(a.astype(w.dtype), w, preferred_element_type=jnp.float32)

    def relu(z):
        return jnp.maximum(z, 0.0)

    def log_softmax(v):
        mx = jnp.max(v, axis=-1, keepdims=True)
        e = v - mx
        return e - jnp.log(jnp.sum(jnp.exp(e), axis=-1, keepdims=True))

    # ---- past encoders, all T*B rows at once (VMEM-resident) ----------------
    m = relu(dot(msg_in[...], msg_w1[...]) + msg_b1[...])
    m = relu(dot(m, msg_w2[...]) + msg_b2[...])                     # (T*B, 32)
    bd = relu(dot(board_in[...], board_w1[...]) + board_b1[...])
    bd = relu(dotw(bd, board_w2[...]) + board_b2[...])              # (T*B, 128)
    od = relu(dot(order_in[...], order_w1[...]) + order_b1[...])
    od = relu(dotw(od, order_w2[...]) + order_b2[...])              # (T*B, 128)

    # ---- hoisted LSTM input projection: x_t @ W_ih + (b_ih + b_hh) ----------
    # Split-K so the 288-wide concat [msg|board|order] is never materialized;
    # the result (T*B, 4H) is kept as a value (a couple of vregs), not scratch.
    xg = (dotw(m, wih_m[...]) + dotw(bd, wih_bd[...])
          + dotw(od, wih_od[...]) + lstm_b[...])                    # (T*B, 4H)

    # ---- serial LSTM recurrence: one f32 (B,H)@(H,4H) dot per step ----------
    # TODO(synk): switch to lax.fori_loop carrying (h, c) if T grows past ~16.
    w_hh = whh[...]
    h = h0[...]
    c = c0[...]
    for t in range(T):                        # static unroll, T known at trace
        gates = xg[t * B:(t + 1) * B, :] + dot(h, w_hh)             # (B, 4H)
        sig = jax.nn.sigmoid(gates)           # one pass over all 4H lanes
        th = jnp.tanh(gates)                  # one pass over all 4H lanes
        i_g = sig[:, 0:H]
        f_g = sig[:, H:2 * H]
        g_g = th[:, 2 * H:3 * H]
        o_g = sig[:, 3 * H:4 * H]
        c = f_g * c + i_g * g_g
        h = o_g * jnp.tanh(c)

    # ---- late-stage weights must have landed before the query/trunk ---------
    for cp in copies:
        cp.wait()

    # ---- query branch --------------------------------------------------------
    q = relu(dotw(query_in[...], qw1_v[...]) + query_b1[...])
    q = relu(dotw(q, qw2_v[...]) + query_b2[...])                   # (B, qod)

    # ---- trunk: fc1 over concat([h, q, other_oh, me_oh]) as split-K matmuls --
    z = relu(dotw(h, f1h_v[...]) + dotw(q, f1q_v[...])
             + dotw(chars_oh[...], f1c_v[...]) + fc1_b[...])        # (B, 1024)
    z = relu(dotw(z, f2w_v[...]) + fc2_b[...])                      # (B, 128)

    # ---- fused heads: one matmul, per-head log-softmax, one dense store ------
    logits = dot(z, heads_w[...]) + heads_b[...]                    # (B, 4+NL+2)
    out_ref[...] = jnp.concatenate(
        [log_softmax(logits[:, 0:4]),
         log_softmax(logits[:, 4:4 + n_dst]),
         log_softmax(logits[:, 4 + n_dst:])], axis=-1)


# ----------------------------------------------------------------------------
# Parameter initialization (deterministic, PyTorch-like uniform init)
# ----------------------------------------------------------------------------

def _init_linear(key, fan_in, fan_out, w_dtype=jnp.float32):
    kw, kb = jax.random.split(key)
    bound = 1.0 / jnp.sqrt(jnp.float32(fan_in))
    w = jax.random.uniform(kw, (fan_in, fan_out), jnp.float32, -bound, bound)
    b = jax.random.uniform(kb, (1, fan_out), jnp.float32, -bound, bound)
    return w.astype(w_dtype), b


def init_params(key, cfg):
    num_loc, bf = cfg["num_loc"], cfg["board_feat"]
    num_order, of = cfg["num_order"], cfg["order_feat"]
    msg_feat, send_dim = cfg["msg_feat"], cfg["send_dim"]
    qod, H, na = cfg["query_output_dim"], cfg["lstm_hidden_dim"], cfg["num_agent"]
    hidden_size = 32 + 128 + 128   # LSTM input D (architecture constant)
    bf16 = jnp.bfloat16

    keys = jax.random.split(key, 16)
    p = {}
    # First encoder layers stay f32 (raw inputs stay f32); big layer-2 bf16.
    p["board_w1"], p["board_b1"] = _init_linear(keys[0], num_loc * bf, 1024)
    p["board_w2"], p["board_b2"] = _init_linear(keys[1], 1024, 128, bf16)
    p["order_w1"], p["order_b1"] = _init_linear(keys[2], num_order * of, 1024)
    p["order_w2"], p["order_b2"] = _init_linear(keys[3], 1024, 128, bf16)
    p["msg_w1"], p["msg_b1"] = _init_linear(keys[4], 2 * msg_feat, 64)
    p["msg_w2"], p["msg_b2"] = _init_linear(keys[5], 64, 32)
    p["query_w1"], p["query_b1"] = _init_linear(
        keys[6], num_loc + send_dim + num_loc * bf, 1024, bf16)
    p["query_w2"], p["query_b2"] = _init_linear(keys[7], 1024, qod, bf16)

    # fc1 split into row-blocks matching x = [h | q | other_oh | me_oh].
    dim_feature = H + qod + 2 * na
    fc1_w, fc1_b = _init_linear(keys[8], dim_feature, 1024)
    p["fc1_w_h"] = fc1_w[:H].astype(bf16)
    p["fc1_w_q"] = fc1_w[H:H + qod].astype(bf16)
    p["fc1_w_ch"] = fc1_w[H + qod:].astype(bf16)
    p["fc1_b"] = fc1_b
    fc2_w, p["fc2_b"] = _init_linear(keys[9], 1024, 128)
    p["fc2_w"] = fc2_w.astype(bf16)

    # Heads fused along lanes: [order(4) | dst(num_loc) | resp(2)], tiny -> f32.
    ow, ob = _init_linear(keys[10], 128, 4)
    dw, db = _init_linear(keys[11], 128, num_loc)
    rw, rb = _init_linear(keys[12], 128, 2)
    p["heads_w"] = jnp.concatenate([ow, dw, rw], axis=1)
    p["heads_b"] = jnp.concatenate([ob, db, rb], axis=1)

    # LSTMCell params, gate order (i, f, g, o), fused along lanes as (D, 4H),
    # split along D into [msg 32 | board 128 | order 128]; W_ih bf16, W_hh f32.
    bound = 1.0 / jnp.sqrt(jnp.float32(H))
    k_ih, k_hh, k_bih, k_bhh = jax.random.split(keys[13], 4)
    wih = jax.random.uniform(k_ih, (hidden_size, 4 * H), jnp.float32, -bound, bound)
    p["lstm_wih_m"] = wih[:32].astype(bf16)
    p["lstm_wih_bd"] = wih[32:160].astype(bf16)
    p["lstm_wih_od"] = wih[160:].astype(bf16)
    p["lstm_whh"] = jax.random.uniform(k_hh, (H, 4 * H), jnp.float32, -bound, bound)
    b_ih = jax.random.uniform(k_bih, (1, 4 * H), jnp.float32, -bound, bound)
    b_hh = jax.random.uniform(k_bhh, (1, 4 * H), jnp.float32, -bound, bound)
    p["lstm_b"] = b_ih + b_hh
    return p


# ----------------------------------------------------------------------------
# Forward pass: tiny wrapper glue + one fused Pallas kernel
# ----------------------------------------------------------------------------

def forward(params, cfg, hidden_key,
            curr_board, curr_src, curr_msg, curr_send, curr_order,
            me_ind, other_ind):
    num_agent = cfg["num_agent"]
    num_loc = cfg["num_loc"]
    qod = cfg["query_output_dim"]
    H = cfg["lstm_hidden_dim"]

    B = curr_board.shape[0]
    T = curr_board.shape[1] - 1     # curr_num_step

    curr_board_last = curr_board[:, -1].reshape(B, -1)

    # Time-major flattened encoder inputs (row r = t*B + b), so the hoisted
    # LSTM input projection can be sliced contiguously per time step.
    prep_board = jnp.transpose(
        curr_board[:, :-1].reshape(B, T, -1), (1, 0, 2)).reshape(T * B, -1)
    prep_msg = jnp.transpose(curr_msg[:, :-1], (1, 0, 2)).reshape(T * B, -1)
    prep_order = jnp.transpose(curr_order, (1, 0, 2)).reshape(T * B, -1)

    other_oh = jax.nn.one_hot(other_ind[:, -1].astype(jnp.int32), num_agent,
                              dtype=jnp.float32)
    me_oh = jax.nn.one_hot(me_ind[:, -1].astype(jnp.int32), num_agent,
                           dtype=jnp.float32)
    chars_oh = jnp.concatenate([other_oh, me_oh], axis=-1)          # (B, 2*NA)

    query_in = jnp.concatenate(
        [curr_src.reshape(B, -1), curr_send.reshape(B, -1), curr_board_last],
        axis=-1)                                                    # (B, 48)
    q_in_dim = query_in.shape[-1]

    # init_hidden: torch.randn -> deterministic normal from the given key.
    kh, kc = jax.random.split(hidden_key)
    hx0 = jax.random.normal(kh, (B, H), jnp.float32)
    cx0 = jax.random.normal(kc, (B, H), jnp.float32)

    n_out = 4 + num_loc + 2

    vmem_spec = pl.BlockSpec(memory_space=pltpu.MemorySpace.VMEM)
    hbm_spec = pl.BlockSpec(memory_space=pl.ANY)
    in_specs = ([vmem_spec] * 7          # data
                + [vmem_spec] * 12       # encoder params
                + [vmem_spec] * 5        # lstm params
                + [hbm_spec] * 6         # late-stage big weights (manual DMA)
                + [vmem_spec] * 6)       # late-stage biases + heads

    scratch_shapes = [
        pltpu.VMEM((q_in_dim, 1024), jnp.bfloat16),        # query_w1
        pltpu.VMEM((1024, qod), jnp.bfloat16),             # query_w2
        pltpu.VMEM((H, 1024), jnp.bfloat16),               # fc1_w_h
        pltpu.VMEM((qod, 1024), jnp.bfloat16),             # fc1_w_q
        pltpu.VMEM((2 * num_agent, 1024), jnp.bfloat16),   # fc1_w_ch
        pltpu.VMEM((1024, 128), jnp.bfloat16),             # fc2_w
        pltpu.SemaphoreType.DMA((6,)),
    ]

    out = pl.pallas_call(
        _prednet_kernel,
        out_shape=jax.ShapeDtypeStruct((B, n_out), jnp.float32),
        in_specs=in_specs,
        scratch_shapes=scratch_shapes,
        compiler_params=pltpu.CompilerParams(vmem_limit_bytes=16 * 1024 * 1024),
        cost_estimate=pl.CostEstimate(
            flops=15_000_000, transcendentals=20_000, bytes_accessed=1_700_000),
    )(
        prep_msg, prep_board, prep_order, query_in, hx0, cx0, chars_oh,
        params["msg_w1"], params["msg_b1"], params["msg_w2"], params["msg_b2"],
        params["board_w1"], params["board_b1"], params["board_w2"], params["board_b2"],
        params["order_w1"], params["order_b1"], params["order_w2"], params["order_b2"],
        params["lstm_wih_m"], params["lstm_wih_bd"], params["lstm_wih_od"],
        params["lstm_whh"], params["lstm_b"],
        params["query_w1"], params["query_w2"],
        params["fc1_w_h"], params["fc1_w_q"], params["fc1_w_ch"], params["fc2_w"],
        params["query_b1"], params["query_b2"], params["fc1_b"], params["fc2_b"],
        params["heads_w"], params["heads_b"],
    )
    order = out[:, :4]
    dst = out[:, 4:4 + num_loc]
    response = out[:, 4 + num_loc:]
    return order, dst, response, None


# ----------------------------------------------------------------------------
# Main
# ----------------------------------------------------------------------------

if __name__ == "__main__":
    cfg = dict(
        num_loc=8, board_feat=4,
        num_order=4, order_feat=8,
        msg_feat=8, send_dim=8,
        query_output_dim=32, lstm_hidden_dim=32,
        num_agent=4, no_char=True,
    )
    batch, T = 2, 8

    root = jax.random.PRNGKey(0)
    k_param, k_hidden, k_in = jax.random.split(root, 3)
    params = init_params(k_param, cfg)

    ks = jax.random.split(k_in, 7)
    curr_board = jax.random.normal(
        ks[0], (batch, T + 1, cfg["num_loc"], cfg["board_feat"]), jnp.float32)
    curr_src = jax.random.normal(ks[1], (batch, cfg["num_loc"]), jnp.float32)
    curr_msg = jax.random.normal(
        ks[2], (batch, T + 1, 2 * cfg["msg_feat"]), jnp.float32)
    curr_send = jax.random.normal(ks[3], (batch, cfg["send_dim"]), jnp.float32)
    curr_order = jax.random.normal(
        ks[4], (batch, T, cfg["num_order"] * cfg["order_feat"]), jnp.float32)
    me_ind = jax.random.randint(ks[5], (batch, T), 0, cfg["num_agent"], jnp.int32)
    other_ind = jax.random.randint(ks[6], (batch, T), 0, cfg["num_agent"], jnp.int32)

    @jax.jit
    def run(params, hidden_key, curr_board, curr_src, curr_msg, curr_send,
            curr_order, me_ind, other_ind):
        return forward(params, cfg, hidden_key, curr_board, curr_src,
                       curr_msg, curr_send, curr_order, me_ind, other_ind)

    order, dst, response, _ = run(params, k_hidden, curr_board, curr_src,
                                  curr_msg, curr_send, curr_order,
                                  me_ind, other_ind)

    jax.block_until_ready((order, dst, response))
    assert order.shape == (batch, 4)
    assert dst.shape == (batch, cfg["num_loc"])
    assert response.shape == (batch, 2)
    print("KERNEL_OK")
</pallas_src>

<mosaic_0001>
module attributes {stable_mosaic.version = 11 : i64} {
  func.func @_prednet_kernel(%arg0: memref<16x16xf32, #tpu.memory_space<vmem>>, %arg1: memref<16x32xf32, #tpu.memory_space<vmem>>, %arg2: memref<16x32xf32, #tpu.memory_space<vmem>>, %arg3: memref<2x48xf32, #tpu.memory_space<vmem>>, %arg4: memref<2x32xf32, #tpu.memory_space<vmem>>, %arg5: memref<2x32xf32, #tpu.memory_space<vmem>>, %arg6: memref<2x8xf32, #tpu.memory_space<vmem>>, %arg7: memref<16x64xf32, #tpu.memory_space<vmem>>, %arg8: memref<1x64xf32, #tpu.memory_space<vmem>>, %arg9: memref<64x32xf32, #tpu.memory_space<vmem>>, %arg10: memref<1x32xf32, #tpu.memory_space<vmem>>, %arg11: memref<32x1024xf32, #tpu.memory_space<vmem>>, %arg12: memref<1x1024xf32, #tpu.memory_space<vmem>>, %arg13: memref<1024x128xbf16, #tpu.memory_space<vmem>>, %arg14: memref<1x128xf32, #tpu.memory_space<vmem>>, %arg15: memref<32x1024xf32, #tpu.memory_space<vmem>>, %arg16: memref<1x1024xf32, #tpu.memory_space<vmem>>, %arg17: memref<1024x128xbf16, #tpu.memory_space<vmem>>, %arg18: memref<1x128xf32, #tpu.memory_space<vmem>>, %arg19: memref<32x128xbf16, #tpu.memory_space<vmem>>, %arg20: memref<128x128xbf16, #tpu.memory_space<vmem>>, %arg21: memref<128x128xbf16, #tpu.memory_space<vmem>>, %arg22: memref<32x128xf32, #tpu.memory_space<vmem>>, %arg23: memref<1x128xf32, #tpu.memory_space<vmem>>, %arg24: memref<48x1024xbf16, #tpu.memory_space<any>>, %arg25: memref<1024x32xbf16, #tpu.memory_space<any>>, %arg26: memref<32x1024xbf16, #tpu.memory_space<any>>, %arg27: memref<32x1024xbf16, #tpu.memory_space<any>>, %arg28: memref<8x1024xbf16, #tpu.memory_space<any>>, %arg29: memref<1024x128xbf16, #tpu.memory_space<any>>, %arg30: memref<1x1024xf32, #tpu.memory_space<vmem>>, %arg31: memref<1x32xf32, #tpu.memory_space<vmem>>, %arg32: memref<1x1024xf32, #tpu.memory_space<vmem>>, %arg33: memref<1x128xf32, #tpu.memory_space<vmem>>, %arg34: memref<128x14xf32, #tpu.memory_space<vmem>>, %arg35: memref<1x14xf32, #tpu.memory_space<vmem>>, %arg36: memref<2x14xf32, #tpu.memory_space<vmem>>, %arg37: memref<48x1024xbf16, #tpu.memory_space<vmem>>, %arg38: memref<1024x32xbf16, #tpu.memory_space<vmem>>, %arg39: memref<32x1024xbf16, #tpu.memory_space<vmem>>, %arg40: memref<32x1024xbf16, #tpu.memory_space<vmem>>, %arg41: memref<8x1024xbf16, #tpu.memory_space<vmem>>, %arg42: memref<1024x128xbf16, #tpu.memory_space<vmem>>, %arg43: memref<6x!tpu.dma_semaphore, #tpu.memory_space<semaphore_mem>>) attributes {dimension_semantics = [], scalar_prefetch = 0 : i64, scratch_operands = 7 : i64, tpu.core_type = #tpu.core_type<tc>} {
    %c0_i32 = arith.constant 0 : i32
    %0 = tpu.memref_slice %arg43[%c0_i32] : memref<6x!tpu.dma_semaphore, #tpu.memory_space<semaphore_mem>> -> memref<1x!tpu.dma_semaphore, #tpu.memory_space<semaphore_mem>>
    %1 = tpu.memref_squeeze %0 : memref<1x!tpu.dma_semaphore, #tpu.memory_space<semaphore_mem>> -> memref<!tpu.dma_semaphore, #tpu.memory_space<semaphore_mem>>
    tpu.enqueue_dma source(%arg24 : memref<48x1024xbf16, #tpu.memory_space<any>>) target(%arg37 : memref<48x1024xbf16, #tpu.memory_space<vmem>>) target_semaphore(%1 : memref<!tpu.dma_semaphore, #tpu.memory_space<semaphore_mem>>)
    %c1_i32 = arith.constant 1 : i32
    %2 = tpu.memref_slice %arg43[%c1_i32] : memref<6x!tpu.dma_semaphore, #tpu.memory_space<semaphore_mem>> -> memref<1x!tpu.dma_semaphore, #tpu.memory_space<semaphore_mem>>
    %3 = tpu.memref_squeeze %2 : memref<1x!tpu.dma_semaphore, #tpu.memory_space<semaphore_mem>> -> memref<!tpu.dma_semaphore, #tpu.memory_space<semaphore_mem>>
    tpu.enqueue_dma source(%arg25 : memref<1024x32xbf16, #tpu.memory_space<any>>) target(%arg38 : memref<1024x32xbf16, #tpu.memory_space<vmem>>) target_semaphore(%3 : memref<!tpu.dma_semaphore, #tpu.memory_space<semaphore_mem>>)
    %c2_i32 = arith.constant 2 : i32
    %4 = tpu.memref_slice %arg43[%c2_i32] : memref<6x!tpu.dma_semaphore, #tpu.memory_space<semaphore_mem>> -> memref<1x!tpu.dma_semaphore, #tpu.memory_space<semaphore_mem>>
    %5 = tpu.memref_squeeze %4 : memref<1x!tpu.dma_semaphore, #tpu.memory_space<semaphore_mem>> -> memref<!tpu.dma_semaphore, #tpu.memory_space<semaphore_mem>>
    tpu.enqueue_dma source(%arg26 : memref<32x1024xbf16, #tpu.memory_space<any>>) target(%arg39 : memref<32x1024xbf16, #tpu.memory_space<vmem>>) target_semaphore(%5 : memref<!tpu.dma_semaphore, #tpu.memory_space<semaphore_mem>>)
    %c3_i32 = arith.constant 3 : i32
    %6 = tpu.memref_slice %arg43[%c3_i32] : memref<6x!tpu.dma_semaphore, #tpu.memory_space<semaphore_mem>> -> memref<1x!tpu.dma_semaphore, #tpu.memory_space<semaphore_mem>>
    %7 = tpu.memref_squeeze %6 : memref<1x!tpu.dma_semaphore, #tpu.memory_space<semaphore_mem>> -> memref<!tpu.dma_semaphore, #tpu.memory_space<semaphore_mem>>
    tpu.enqueue_dma source(%arg27 : memref<32x1024xbf16, #tpu.memory_space<any>>) target(%arg40 : memref<32x1024xbf16, #tpu.memory_space<vmem>>) target_semaphore(%7 : memref<!tpu.dma_semaphore, #tpu.memory_space<semaphore_mem>>)
    %c4_i32 = arith.constant 4 : i32
    %8 = tpu.memref_slice %arg43[%c4_i32] : memref<6x!tpu.dma_semaphore, #tpu.memory_space<semaphore_mem>> -> memref<1x!tpu.dma_semaphore, #tpu.memory_space<semaphore_mem>>
    %9 = tpu.memref_squeeze %8 : memref<1x!tpu.dma_semaphore, #tpu.memory_space<semaphore_mem>> -> memref<!tpu.dma_semaphore, #tpu.memory_space<semaphore_mem>>
    tpu.enqueue_dma source(%arg28 : memref<8x1024xbf16, #tpu.memory_space<any>>) target(%arg41 : memref<8x1024xbf16, #tpu.memory_space<vmem>>) target_semaphore(%9 : memref<!tpu.dma_semaphore, #tpu.memory_space<semaphore_mem>>)
    %c5_i32 = arith.constant 5 : i32
    %10 = tpu.memref_slice %arg43[%c5_i32] : memref<6x!tpu.dma_semaphore, #tpu.memory_space<semaphore_mem>> -> memref<1x!tpu.dma_semaphore, #tpu.memory_space<semaphore_mem>>
    %11 = tpu.memref_squeeze %10 : memref<1x!tpu.dma_semaphore, #tpu.memory_space<semaphore_mem>> -> memref<!tpu.dma_semaphore, #tpu.memory_space<semaphore_mem>>
    tpu.enqueue_dma source(%arg29 : memref<1024x128xbf16, #tpu.memory_space<any>>) target(%arg42 : memref<1024x128xbf16, #tpu.memory_space<vmem>>) target_semaphore(%11 : memref<!tpu.dma_semaphore, #tpu.memory_space<semaphore_mem>>)
    %c0 = arith.constant 0 : index
    %c0_0 = arith.constant 0 : index
    %12 = vector.load %arg0[%c0, %c0_0] : memref<16x16xf32, #tpu.memory_space<vmem>>, vector<16x16xf32>
    %c0_1 = arith.constant 0 : index
    %c0_2 = arith.constant 0 : index
    %13 = vector.load %arg7[%c0_1, %c0_2] : memref<16x64xf32, #tpu.memory_space<vmem>>, vector<16x64xf32>
    %cst = arith.constant dense<0.000000e+00> : vector<16x64xf32>
    %14 = tpu.matmul %12, %13, %cst {dimension_numbers = #tpu.dot_dimension_numbers<[1], [0], [0], [1], [0, 0, 1, 1], [], []>} : vector<16x16xf32>, vector<16x64xf32>, vector<16x64xf32> -> vector<16x64xf32>
    %c0_3 = arith.constant 0 : index
    %c0_4 = arith.constant 0 : index
    %15 = vector.load %arg8[%c0_3, %c0_4] : memref<1x64xf32, #tpu.memory_space<vmem>>, vector<1x64xf32>
    %16 = vector.broadcast %15 : vector<1x64xf32> to vector<16x64xf32>
    %17 = arith.addf %14, %16 : vector<16x64xf32>
    %cst_5 = arith.constant 0.000000e+00 : f32
    %18 = vector.broadcast %cst_5 : f32 to vector<16x64xf32>
    %19 = arith.maximumf %17, %18 : vector<16x64xf32>
    %c0_6 = arith.constant 0 : index
    %c0_7 = arith.constant 0 : index
    %20 = vector.load %arg9[%c0_6, %c0_7] : memref<64x32xf32, #tpu.memory_space<vmem>>, vector<64x32xf32>
    %cst_8 = arith.constant dense<0.000000e+00> : vector<16x32xf32>
    %21 = tpu.matmul %19, %20, %cst_8 {dimension_numbers = #tpu.dot_dimension_numbers<[1], [0], [0], [1], [0, 0, 1, 1], [], []>} : vector<16x64xf32>, vector<64x32xf32>, vector<16x32xf32> -> vector<16x32xf32>
    %c0_9 = arith.constant 0 : index
    %c0_10 = arith.constant 0 : index
    %22 = vector.load %arg10[%c0_9, %c0_10] : memref<1x32xf32, #tpu.memory_space<vmem>>, vector<1x32xf32>
    %23 = vector.broadcast %22 : vector<1x32xf32> to vector<16x32xf32>
    %24 = arith.addf %21, %23 : vector<16x32xf32>
    %cst_11 = arith.constant 0.000000e+00 : f32
    %25 = vector.broadcast %cst_11 : f32 to vector<16x32xf32>
    %26 = arith.maximumf %24, %25 : vector<16x32xf32>
    %c0_12 = arith.constant 0 : index
    %c0_13 = arith.constant 0 : index
    %27 = vector.load %arg1[%c0_12, %c0_13] : memref<16x32xf32, #tpu.memory_space<vmem>>, vector<16x32xf32>
    %c0_14 = arith.constant 0 : index
    %c0_15 = arith.constant 0 : index
    %28 = vector.load %arg11[%c0_14, %c0_15] : memref<32x1024xf32, #tpu.memory_space<vmem>>, vector<32x1024xf32>
    %cst_16 = arith.constant dense<0.000000e+00> : vector<16x1024xf32>
    %29 = tpu.matmul %27, %28, %cst_16 {dimension_numbers = #tpu.dot_dimension_numbers<[1], [0], [0], [1], [0, 0, 1, 1], [], []>} : vector<16x32xf32>, vector<32x1024xf32>, vector<16x1024xf32> -> vector<16x1024xf32>
    %c0_17 = arith.constant 0 : index
    %c0_18 = arith.constant 0 : index
    %30 = vector.load %arg12[%c0_17, %c0_18] : memref<1x1024xf32, #tpu.memory_space<vmem>>, vector<1x1024xf32>
    %31 = vector.broadcast %30 : vector<1x1024xf32> to vector<16x1024xf32>
    %32 = arith.addf %29, %31 : vector<16x1024xf32>
    %cst_19 = arith.constant 0.000000e+00 : f32
    %33 = vector.broadcast %cst_19 : f32 to vector<16x1024xf32>
    %34 = arith.maximumf %32, %33 : vector<16x1024xf32>
    %c0_20 = arith.constant 0 : index
    %c0_21 = arith.constant 0 : index
    %35 = vector.load %arg13[%c0_20, %c0_21] : memref<1024x128xbf16, #tpu.memory_space<vmem>>, vector<1024x128xbf16>
    %36 = arith.truncf %34 : vector<16x1024xf32> to vector<16x1024xbf16>
    %cst_22 = arith.constant dense<0.000000e+00> : vector<16x128xf32>
    %37 = tpu.matmul %36, %35, %cst_22 {dimension_numbers = #tpu.dot_dimension_numbers<[1], [0], [0], [1], [0, 0, 1, 1], [], []>} : vector<16x1024xbf16>, vector<1024x128xbf16>, vector<16x128xf32> -> vector<16x128xf32>
    %c0_23 = arith.constant 0 : index
    %c0_24 = arith.constant 0 : index
    %38 = vector.load %arg14[%c0_23, %c0_24] : memref<1x128xf32, #tpu.memory_space<vmem>>, vector<1x128xf32>
    %39 = vector.broadcast %38 : vector<1x128xf32> to vector<16x128xf32>
    %40 = arith.addf %37, %39 : vector<16x128xf32>
    %cst_25 = arith.constant 0.000000e+00 : f32
    %41 = vector.broadcast %cst_25 : f32 to vector<16x128xf32>
    %42 = arith.maximumf %40, %41 : vector<16x128xf32>
    %c0_26 = arith.constant 0 : index
    %c0_27 = arith.constant 0 : index
    %43 = vector.load %arg2[%c0_26, %c0_27] : memref<16x32xf32, #tpu.memory_space<vmem>>, vector<16x32xf32>
    %c0_28 = arith.constant 0 : index
    %c0_29 = arith.constant 0 : index
    %44 = vector.load %arg15[%c0_28, %c0_29] : memref<32x1024xf32, #tpu.memory_space<vmem>>, vector<32x1024xf32>
    %cst_30 = arith.constant dense<0.000000e+00> : vector<16x1024xf32>
    %45 = tpu.matmul %43, %44, %cst_30 {dimension_numbers = #tpu.dot_dimension_numbers<[1], [0], [0], [1], [0, 0, 1, 1], [], []>} : vector<16x32xf32>, vector<32x1024xf32>, vector<16x1024xf32> -> vector<16x1024xf32>
    %c0_31 = arith.constant 0 : index
    %c0_32 = arith.constant 0 : index
    %46 = vector.load %arg16[%c0_31, %c0_32] : memref<1x1024xf32, #tpu.memory_space<vmem>>, vector<1x1024xf32>
    %47 = vector.broadcast %46 : vector<1x1024xf32> to vector<16x1024xf32>
    %48 = arith.addf %45, %47 : vector<16x1024xf32>
    %cst_33 = arith.constant 0.000000e+00 : f32
    %49 = vector.broadcast %cst_33 : f32 to vector<16x1024xf32>
    %50 = arith.maximumf %48, %49 : vector<16x1024xf32>
    %c0_34 = arith.constant 0 : index
    %c0_35 = arith.constant 0 : index
    %51 = vector.load %arg17[%c0_34, %c0_35] : memref<1024x128xbf16, #tpu.memory_space<vmem>>, vector<1024x128xbf16>
    %52 = arith.truncf %50 : vector<16x1024xf32> to vector<16x1024xbf16>
    %cst_36 = arith.constant dense<0.000000e+00> : vector<16x128xf32>
    %53 = tpu.matmul %52, %51, %cst_36 {dimension_numbers = #tpu.dot_dimension_numbers<[1], [0], [0], [1], [0, 0, 1, 1], [], []>} : vector<16x1024xbf16>, vector<1024x128xbf16>, vector<16x128xf32> -> vector<16x128xf32>
    %c0_37 = arith.constant 0 : index
    %c0_38 = arith.constant 0 : index
    %54 = vector.load %arg18[%c0_37, %c0_38] : memref<1x128xf32, #tpu.memory_space<vmem>>, vector<1x128xf32>
    %55 = vector.broadcast %54 : vector<1x128xf32> to vector<16x128xf32>
    %56 = arith.addf %53, %55 : vector<16x128xf32>
    %cst_39 = arith.constant 0.000000e+00 : f32
    %57 = vector.broadcast %cst_39 : f32 to vector<16x128xf32>
    %58 = arith.maximumf %56, %57 : vector<16x128xf32>
    %c0_40 = arith.constant 0 : index
    %c0_41 = arith.constant 0 : index
    %59 = vector.load %arg19[%c0_40, %c0_41] : memref<32x128xbf16, #tpu.memory_space<vmem>>, vector<32x128xbf16>
    %60 = arith.truncf %26 : vector<16x32xf32> to vector<16x32xbf16>
    %cst_42 = arith.constant dense<0.000000e+00> : vector<16x128xf32>
    %61 = tpu.matmul %60, %59, %cst_42 {dimension_numbers = #tpu.dot_dimension_numbers<[1], [0], [0], [1], [0, 0, 1, 1], [], []>} : vector<16x32xbf16>, vector<32x128xbf16>, vector<16x128xf32> -> vector<16x128xf32>
    %c0_43 = arith.constant 0 : index
    %c0_44 = arith.constant 0 : index
    %62 = vector.load %arg20[%c0_43, %c0_44] : memref<128x128xbf16, #tpu.memory_space<vmem>>, vector<128x128xbf16>
    %63 = arith.truncf %42 : vector<16x128xf32> to vector<16x128xbf16>
    %cst_45 = arith.constant dense<0.000000e+00> : vector<16x128xf32>
    %64 = tpu.matmul %63, %62, %cst_45 {dimension_numbers = #tpu.dot_dimension_numbers<[1], [0], [0], [1], [0, 0, 1, 1], [], []>} : vector<16x128xbf16>, vector<128x128xbf16>, vector<16x128xf32> -> vector<16x128xf32>
    %65 = arith.addf %61, %64 : vector<16x128xf32>
    %c0_46 = arith.constant 0 : index
    %c0_47 = arith.constant 0 : index
    %66 = vector.load %arg21[%c0_46, %c0_47] : memref<128x128xbf16, #tpu.memory_space<vmem>>, vector<128x128xbf16>
    %67 = arith.truncf %58 : vector<16x128xf32> to vector<16x128xbf16>
    %cst_48 = arith.constant dense<0.000000e+00> : vector<16x128xf32>
    %68 = tpu.matmul %67, %66, %cst_48 {dimension_numbers = #tpu.dot_dimension_numbers<[1], [0], [0], [1], [0, 0, 1, 1], [], []>} : vector<16x128xbf16>, vector<128x128xbf16>, vector<16x128xf32> -> vector<16x128xf32>
    %69 = arith.addf %65, %68 : vector<16x128xf32>
    %c0_49 = arith.constant 0 : index
    %c0_50 = arith.constant 0 : index
    %70 = vector.load %arg23[%c0_49, %c0_50] : memref<1x128xf32, #tpu.memory_space<vmem>>, vector<1x128xf32>
    %71 = vector.broadcast %70 : vector<1x128xf32> to vector<16x128xf32>
    %72 = arith.addf %69, %71 : vector<16x128xf32>
    %c0_51 = arith.constant 0 : index
    %c0_52 = arith.constant 0 : index
    %73 = vector.load %arg22[%c0_51, %c0_52] : memref<32x128xf32, #tpu.memory_space<vmem>>, vector<32x128xf32>
    %c0_53 = arith.constant 0 : index
    %c0_54 = arith.constant 0 : index
    %74 = vector.load %arg4[%c0_53, %c0_54] : memref<2x32xf32, #tpu.memory_space<vmem>>, vector<2x32xf32>
    %c0_55 = arith.constant 0 : index
    %c0_56 = arith.constant 0 : index
    %75 = vector.load %arg5[%c0_55, %c0_56] : memref<2x32xf32, #tpu.memory_space<vmem>>, vector<2x32xf32>
    %76 = vector.extract_strided_slice %72 {offsets = [0, 0], sizes = [2, 128], strides = [1, 1]} : vector<16x128xf32> to vector<2x128xf32>
    %cst_57 = arith.constant dense<0.000000e+00> : vector<2x128xf32>
    %77 = tpu.matmul %74, %73, %cst_57 {dimension_numbers = #tpu.dot_dimension_numbers<[1], [0], [0], [1], [0, 0, 1, 1], [], []>} : vector<2x32xf32>, vector<32x128xf32>, vector<2x128xf32> -> vector<2x128xf32>
    %78 = arith.addf %76, %77 : vector<2x128xf32>
    %79 = arith.negf %78 : vector<2x128xf32>
    %80 = math.exp %79 : vector<2x128xf32>
    %cst_58 = arith.constant 1.000000e+00 : f32
    %81 = vector.broadcast %cst_58 : f32 to vector<2x128xf32>
    %82 = arith.addf %81, %80 : vector<2x128xf32>
    %83 = arith.divf %81, %82 : vector<2x128xf32>
    %84 = math.tanh %78 : vector<2x128xf32>
    %85 = vector.extract_strided_slice %83 {offsets = [0, 0], sizes = [2, 32], strides = [1, 1]} : vector<2x128xf32> to vector<2x32xf32>
    %86 = vector.extract_strided_slice %83 {offsets = [0, 32], sizes = [2, 32], strides = [1, 1]} : vector<2x128xf32> to vector<2x32xf32>
    %87 = vector.extract_strided_slice %84 {offsets = [0, 64], sizes = [2, 32], strides = [1, 1]} : vector<2x128xf32> to vector<2x32xf32>
    %88 = vector.extract_strided_slice %83 {offsets = [0, 96], sizes = [2, 32], strides = [1, 1]} : vector<2x128xf32> to vector<2x32xf32>
    %89 = arith.mulf %86, %75 : vector<2x32xf32>
    %90 = arith.mulf %85, %87 : vector<2x32xf32>
    %91 = arith.addf %89, %90 : vector<2x32xf32>
    %92 = math.tanh %91 : vector<2x32xf32>
    %93 = arith.mulf %88, %92 : vector<2x32xf32>
    %94 = vector.extract_strided_slice %72 {offsets = [2, 0], sizes = [2, 128], strides = [1, 1]} : vector<16x128xf32> to vector<2x128xf32>
    %cst_59 = arith.constant dense<0.000000e+00> : vector<2x128xf32>
    %95 = tpu.matmul %93, %73, %cst_59 {dimension_numbers = #tpu.dot_dimension_numbers<[1], [0], [0], [1], [0, 0, 1, 1], [], []>} : vector<2x32xf32>, vector<32x128xf32>, vector<2x128xf32> -> vector<2x128xf32>
    %96 = arith.addf %94, %95 : vector<2x128xf32>
    %97 = arith.negf %96 : vector<2x128xf32>
    %98 = math.exp %97 : vector<2x128xf32>
    %cst_60 = arith.constant 1.000000e+00 : f32
    %99 = vector.broadcast %cst_60 : f32 to vector<2x128xf32>
    %100 = arith.addf %99, %98 : vector<2x128xf32>
    %101 = arith.divf %99, %100 : vector<2x128xf32>
    %102 = math.tanh %96 : vector<2x128xf32>
    %103 = vector.extract_strided_slice %101 {offsets = [0, 0], sizes = [2, 32], strides = [1, 1]} : vector<2x128xf32> to vector<2x32xf32>
    %104 = vector.extract_strided_slice %101 {offsets = [0, 32], sizes = [2, 32], strides = [1, 1]} : vector<2x128xf32> to vector<2x32xf32>
    %105 = vector.extract_strided_slice %102 {offsets = [0, 64], sizes = [2, 32], strides = [1, 1]} : vector<2x128xf32> to vector<2x32xf32>
    %106 = vector.extract_strided_slice %101 {offsets = [0, 96], sizes = [2, 32], strides = [1, 1]} : vector<2x128xf32> to vector<2x32xf32>
    %107 = arith.mulf %104, %91 : vector<2x32xf32>
    %108 = arith.mulf %103, %105 : vector<2x32xf32>
    %109 = arith.addf %107, %108 : vector<2x32xf32>
    %110 = math.tanh %109 : vector<2x32xf32>
    %111 = arith.mulf %106, %110 : vector<2x32xf32>
    %112 = vector.extract_strided_slice %72 {offsets = [4, 0], sizes = [2, 128], strides = [1, 1]} : vector<16x128xf32> to vector<2x128xf32>
    %cst_61 = arith.constant dense<0.000000e+00> : vector<2x128xf32>
    %113 = tpu.matmul %111, %73, %cst_61 {dimension_numbers = #tpu.dot_dimension_numbers<[1], [0], [0], [1], [0, 0, 1, 1], [], []>} : vector<2x32xf32>, vector<32x128xf32>, vector<2x128xf32> -> vector<2x128xf32>
    %114 = arith.addf %112, %113 : vector<2x128xf32>
    %115 = arith.negf %114 : vector<2x128xf32>
    %116 = math.exp %115 : vector<2x128xf32>
    %cst_62 = arith.constant 1.000000e+00 : f32
    %117 = vector.broadcast %cst_62 : f32 to vector<2x128xf32>
    %118 = arith.addf %117, %116 : vector<2x128xf32>
    %119 = arith.divf %117, %118 : vector<2x128xf32>
    %120 = math.tanh %114 : vector<2x128xf32>
    %121 = vector.extract_strided_slice %119 {offsets = [0, 0], sizes = [2, 32], strides = [1, 1]} : vector<2x128xf32> to vector<2x32xf32>
    %122 = vector.extract_strided_slice %119 {offsets = [0, 32], sizes = [2, 32], strides = [1, 1]} : vector<2x128xf32> to vector<2x32xf32>
    %123 = vector.extract_strided_slice %120 {offsets = [0, 64], sizes = [2, 32], strides = [1, 1]} : vector<2x128xf32> to vector<2x32xf32>
    %124 = vector.extract_strided_slice %119 {offsets = [0, 96], sizes = [2, 32], strides = [1, 1]} : vector<2x128xf32> to vector<2x32xf32>
    %125 = arith.mulf %122, %109 : vector<2x32xf32>
    %126 = arith.mulf %121, %123 : vector<2x32xf32>
    %127 = arith.addf %125, %126 : vector<2x32xf32>
    %128 = math.tanh %127 : vector<2x32xf32>
    %129 = arith.mulf %124, %128 : vector<2x32xf32>
    %130 = vector.extract_strided_slice %72 {offsets = [6, 0], sizes = [2, 128], strides = [1, 1]} : vector<16x128xf32> to vector<2x128xf32>
    %cst_63 = arith.constant dense<0.000000e+00> : vector<2x128xf32>
    %131 = tpu.matmul %129, %73, %cst_63 {dimension_numbers = #tpu.dot_dimension_numbers<[1], [0], [0], [1], [0, 0, 1, 1], [], []>} : vector<2x32xf32>, vector<32x128xf32>, vector<2x128xf32> -> vector<2x128xf32>
    %132 = arith.addf %130, %131 : vector<2x128xf32>
    %133 = arith.negf %132 : vector<2x128xf32>
    %134 = math.exp %133 : vector<2x128xf32>
    %cst_64 = arith.constant 1.000000e+00 : f32
    %135 = vector.broadcast %cst_64 : f32 to vector<2x128xf32>
    %136 = arith.addf %135, %134 : vector<2x128xf32>
    %137 = arith.divf %135, %136 : vector<2x128xf32>
    %138 = math.tanh %132 : vector<2x128xf32>
    %139 = vector.extract_strided_slice %137 {offsets = [0, 0], sizes = [2, 32], strides = [1, 1]} : vector<2x128xf32> to vector<2x32xf32>
    %140 = vector.extract_strided_slice %137 {offsets = [0, 32], sizes = [2, 32], strides = [1, 1]} : vector<2x128xf32> to vector<2x32xf32>
    %141 = vector.extract_strided_slice %138 {offsets = [0, 64], sizes = [2, 32], strides = [1, 1]} : vector<2x128xf32> to vector<2x32xf32>
    %142 = vector.extract_strided_slice %137 {offsets = [0, 96], sizes = [2, 32], strides = [1, 1]} : vector<2x128xf32> to vector<2x32xf32>
    %143 = arith.mulf %140, %127 : vector<2x32xf32>
    %144 = arith.mulf %139, %141 : vector<2x32xf32>
    %145 = arith.addf %143, %144 : vector<2x32xf32>
    %146 = math.tanh %145 : vector<2x32xf32>
    %147 = arith.mulf %142, %146 : vector<2x32xf32>
    %148 = vector.extract_strided_slice %72 {offsets = [8, 0], sizes = [2, 128], strides = [1, 1]} : vector<16x128xf32> to vector<2x128xf32>
    %cst_65 = arith.constant dense<0.000000e+00> : vector<2x128xf32>
    %149 = tpu.matmul %147, %73, %cst_65 {dimension_numbers = #tpu.dot_dimension_numbers<[1], [0], [0], [1], [0, 0, 1, 1], [], []>} : vector<2x32xf32>, vector<32x128xf32>, vector<2x128xf32> -> vector<2x128xf32>
    %150 = arith.addf %148, %149 : vector<2x128xf32>
    %151 = arith.negf %150 : vector<2x128xf32>
    %152 = math.exp %151 : vector<2x128xf32>
    %cst_66 = arith.constant 1.000000e+00 : f32
    %153 = vector.broadcast %cst_66 : f32 to vector<2x128xf32>
    %154 = arith.addf %153, %152 : vector<2x128xf32>
    %155 = arith.divf %153, %154 : vector<2x128xf32>
    %156 = math.tanh %150 : vector<2x128xf32>
    %157 = vector.extract_strided_slice %155 {offsets = [0, 0], sizes = [2, 32], strides = [1, 1]} : vector<2x128xf32> to vector<2x32xf32>
    %158 = vector.extract_strided_slice %155 {offsets = [0, 32], sizes = [2, 32], strides = [1, 1]} : vector<2x128xf32> to vector<2x32xf32>
    %159 = vector.extract_strided_slice %156 {offsets = [0, 64], sizes = [2, 32], strides = [1, 1]} : vector<2x128xf32> to vector<2x32xf32>
    %160 = vector.extract_strided_slice %155 {offsets = [0, 96], sizes = [2, 32], strides = [1, 1]} : vector<2x128xf32> to vector<2x32xf32>
    %161 = arith.mulf %158, %145 : vector<2x32xf32>
    %162 = arith.mulf %157, %159 : vector<2x32xf32>
    %163 = arith.addf %161, %162 : vector<2x32xf32>
    %164 = math.tanh %163 : vector<2x32xf32>
    %165 = arith.mulf %160, %164 : vector<2x32xf32>
    %166 = vector.extract_strided_slice %72 {offsets = [10, 0], sizes = [2, 128], strides = [1, 1]} : vector<16x128xf32> to vector<2x128xf32>
    %cst_67 = arith.constant dense<0.000000e+00> : vector<2x128xf32>
    %167 = tpu.matmul %165, %73, %cst_67 {dimension_numbers = #tpu.dot_dimension_numbers<[1], [0], [0], [1], [0, 0, 1, 1], [], []>} : vector<2x32xf32>, vector<32x128xf32>, vector<2x128xf32> -> vector<2x128xf32>
    %168 = arith.addf %166, %167 : vector<2x128xf32>
    %169 = arith.negf %168 : vector<2x128xf32>
    %170 = math.exp %169 : vector<2x128xf32>
    %cst_68 = arith.constant 1.000000e+00 : f32
    %171 = vector.broadcast %cst_68 : f32 to vector<2x128xf32>
    %172 = arith.addf %171, %170 : vector<2x128xf32>
    %173 = arith.divf %171, %172 : vector<2x128xf32>
    %174 = math.tanh %168 : vector<2x128xf32>
    %175 = vector.extract_strided_slice %173 {offsets = [0, 0], sizes = [2, 32], strides = [1, 1]} : vector<2x128xf32> to vector<2x32xf32>
    %176 = vector.extract_strided_slice %173 {offsets = [0, 32], sizes = [2, 32], strides = [1, 1]} : vector<2x128xf32> to vector<2x32xf32>
    %177 = vector.extract_strided_slice %174 {offsets = [0, 64], sizes = [2, 32], strides = [1, 1]} : vector<2x128xf32> to vector<2x32xf32>
    %178 = vector.extract_strided_slice %173 {offsets = [0, 96], sizes = [2, 32], strides = [1, 1]} : vector<2x128xf32> to vector<2x32xf32>
    %179 = arith.mulf %176, %163 : vector<2x32xf32>
    %180 = arith.mulf %175, %177 : vector<2x32xf32>
    %181 = arith.addf %179, %180 : vector<2x32xf32>
    %182 = math.tanh %181 : vector<2x32xf32>
    %183 = arith.mulf %178, %182 : vector<2x32xf32>
    %184 = vector.extract_strided_slice %72 {offsets = [12, 0], sizes = [2, 128], strides = [1, 1]} : vector<16x128xf32> to vector<2x128xf32>
    %cst_69 = arith.constant dense<0.000000e+00> : vector<2x128xf32>
    %185 = tpu.matmul %183, %73, %cst_69 {dimension_numbers = #tpu.dot_dimension_numbers<[1], [0], [0], [1], [0, 0, 1, 1], [], []>} : vector<2x32xf32>, vector<32x128xf32>, vector<2x128xf32> -> vector<2x128xf32>
    %186 = arith.addf %184, %185 : vector<2x128xf32>
    %187 = arith.negf %186 : vector<2x128xf32>
    %188 = math.exp %187 : vector<2x128xf32>
    %cst_70 = arith.constant 1.000000e+00 : f32
    %189 = vector.broadcast %cst_70 : f32 to vector<2x128xf32>
    %190 = arith.addf %189, %188 : vector<2x128xf32>
    %191 = arith.divf %189, %190 : vector<2x128xf32>
    %192 = math.tanh %186 : vector<2x128xf32>
    %193 = vector.extract_strided_slice %191 {offsets = [0, 0], sizes = [2, 32], strides = [1, 1]} : vector<2x128xf32> to vector<2x32xf32>
    %194 = vector.extract_strided_slice %191 {offsets = [0, 32], sizes = [2, 32], strides = [1, 1]} : vector<2x128xf32> to vector<2x32xf32>
    %195 = vector.extract_strided_slice %192 {offsets = [0, 64], sizes = [2, 32], strides = [1, 1]} : vector<2x128xf32> to vector<2x32xf32>
    %196 = vector.extract_strided_slice %191 {offsets = [0, 96], sizes = [2, 32], strides = [1, 1]} : vector<2x128xf32> to vector<2x32xf32>
    %197 = arith.mulf %194, %181 : vector<2x32xf32>
    %198 = arith.mulf %193, %195 : vector<2x32xf32>
    %199 = arith.addf %197, %198 : vector<2x32xf32>
    %200 = math.tanh %199 : vector<2x32xf32>
    %201 = arith.mulf %196, %200 : vector<2x32xf32>
    %202 = vector.extract_strided_slice %72 {offsets = [14, 0], sizes = [2, 128], strides = [1, 1]} : vector<16x128xf32> to vector<2x128xf32>
    %cst_71 = arith.constant dense<0.000000e+00> : vector<2x128xf32>
    %203 = tpu.matmul %201, %73, %cst_71 {dimension_numbers = #tpu.dot_dimension_numbers<[1], [0], [0], [1], [0, 0, 1, 1], [], []>} : vector<2x32xf32>, vector<32x128xf32>, vector<2x128xf32> -> vector<2x128xf32>
    %204 = arith.addf %202, %203 : vector<2x128xf32>
    %205 = arith.negf %204 : vector<2x128xf32>
    %206 = math.exp %205 : vector<2x128xf32>
    %cst_72 = arith.constant 1.000000e+00 : f32
    %207 = vector.broadcast %cst_72 : f32 to vector<2x128xf32>
    %208 = arith.addf %207, %206 : vector<2x128xf32>
    %209 = arith.divf %207, %208 : vector<2x128xf32>
    %210 = math.tanh %204 : vector<2x128xf32>
    %211 = vector.extract_strided_slice %209 {offsets = [0, 0], sizes = [2, 32], strides = [1, 1]} : vector<2x128xf32> to vector<2x32xf32>
    %212 = vector.extract_strided_slice %209 {offsets = [0, 32], sizes = [2, 32], strides = [1, 1]} : vector<2x128xf32> to vector<2x32xf32>
    %213 = vector.extract_strided_slice %210 {offsets = [0, 64], sizes = [2, 32], strides = [1, 1]} : vector<2x128xf32> to vector<2x32xf32>
    %214 = vector.extract_strided_slice %209 {offsets = [0, 96], sizes = [2, 32], strides = [1, 1]} : vector<2x128xf32> to vector<2x32xf32>
    %215 = arith.mulf %212, %199 : vector<2x32xf32>
    %216 = arith.mulf %211, %213 : vector<2x32xf32>
    %217 = arith.addf %215, %216 : vector<2x32xf32>
    %218 = math.tanh %217 : vector<2x32xf32>
    %219 = arith.mulf %214, %218 : vector<2x32xf32>
    %c0_i32_73 = arith.constant 0 : i32
    %220 = tpu.memref_slice %arg43[%c0_i32_73] : memref<6x!tpu.dma_semaphore, #tpu.memory_space<semaphore_mem>> -> memref<1x!tpu.dma_semaphore, #tpu.memory_space<semaphore_mem>>
    %221 = tpu.memref_squeeze %220 : memref<1x!tpu.dma_semaphore, #tpu.memory_space<semaphore_mem>> -> memref<!tpu.dma_semaphore, #tpu.memory_space<semaphore_mem>>
    tpu.wait_dma2 semaphore(%221 : memref<!tpu.dma_semaphore, #tpu.memory_space<semaphore_mem>>) src(%arg24 : memref<48x1024xbf16, #tpu.memory_space<any>>) dst(%arg37 : memref<48x1024xbf16, #tpu.memory_space<vmem>>)
    %c1_i32_74 = arith.constant 1 : i32
    %222 = tpu.memref_slice %arg43[%c1_i32_74] : memref<6x!tpu.dma_semaphore, #tpu.memory_space<semaphore_mem>> -> memref<1x!tpu.dma_semaphore, #tpu.memory_space<semaphore_mem>>
    %223 = tpu.memref_squeeze %222 : memref<1x!tpu.dma_semaphore, #tpu.memory_space<semaphore_mem>> -> memref<!tpu.dma_semaphore, #tpu.memory_space<semaphore_mem>>
    tpu.wait_dma2 semaphore(%223 : memref<!tpu.dma_semaphore, #tpu.memory_space<semaphore_mem>>) src(%arg25 : memref<1024x32xbf16, #tpu.memory_space<any>>) dst(%arg38 : memref<1024x32xbf16, #tpu.memory_space<vmem>>)
    %c2_i32_75 = arith.constant 2 : i32
    %224 = tpu.memref_slice %arg43[%c2_i32_75] : memref<6x!tpu.dma_semaphore, #tpu.memory_space<semaphore_mem>> -> memref<1x!tpu.dma_semaphore, #tpu.memory_space<semaphore_mem>>
    %225 = tpu.memref_squeeze %224 : memref<1x!tpu.dma_semaphore, #tpu.memory_space<semaphore_mem>> -> memref<!tpu.dma_semaphore, #tpu.memory_space<semaphore_mem>>
    tpu.wait_dma2 semaphore(%225 : memref<!tpu.dma_semaphore, #tpu.memory_space<semaphore_mem>>) src(%arg26 : memref<32x1024xbf16, #tpu.memory_space<any>>) dst(%arg39 : memref<32x1024xbf16, #tpu.memory_space<vmem>>)
    %c3_i32_76 = arith.constant 3 : i32
    %226 = tpu.memref_slice %arg43[%c3_i32_76] : memref<6x!tpu.dma_semaphore, #tpu.memory_space<semaphore_mem>> -> memref<1x!tpu.dma_semaphore, #tpu.memory_space<semaphore_mem>>
    %227 = tpu.memref_squeeze %226 : memref<1x!tpu.dma_semaphore, #tpu.memory_space<semaphore_mem>> -> memref<!tpu.dma_semaphore, #tpu.memory_space<semaphore_mem>>
    tpu.wait_dma2 semaphore(%227 : memref<!tpu.dma_semaphore, #tpu.memory_space<semaphore_mem>>) src(%arg27 : memref<32x1024xbf16, #tpu.memory_space<any>>) dst(%arg40 : memref<32x1024xbf16, #tpu.memory_space<vmem>>)
    %c4_i32_77 = arith.constant 4 : i32
    %228 = tpu.memref_slice %arg43[%c4_i32_77] : memref<6x!tpu.dma_semaphore, #tpu.memory_space<semaphore_mem>> -> memref<1x!tpu.dma_semaphore, #tpu.memory_space<semaphore_mem>>
    %229 = tpu.memref_squeeze %228 : memref<1x!tpu.dma_semaphore, #tpu.memory_space<semaphore_mem>> -> memref<!tpu.dma_semaphore, #tpu.memory_space<semaphore_mem>>
    tpu.wait_dma2 semaphore(%229 : memref<!tpu.dma_semaphore, #tpu.memory_space<semaphore_mem>>) src(%arg28 : memref<8x1024xbf16, #tpu.memory_space<any>>) dst(%arg41 : memref<8x1024xbf16, #tpu.memory_space<vmem>>)
    %c5_i32_78 = arith.constant 5 : i32
    %230 = tpu.memref_slice %arg43[%c5_i32_78] : memref<6x!tpu.dma_semaphore, #tpu.memory_space<semaphore_mem>> -> memref<1x!tpu.dma_semaphore, #tpu.memory_space<semaphore_mem>>
    %231 = tpu.memref_squeeze %230 : memref<1x!tpu.dma_semaphore, #tpu.memory_space<semaphore_mem>> -> memref<!tpu.dma_semaphore, #tpu.memory_space<semaphore_mem>>
    tpu.wait_dma2 semaphore(%231 : memref<!tpu.dma_semaphore, #tpu.memory_space<semaphore_mem>>) src(%arg29 : memref<1024x128xbf16, #tpu.memory_space<any>>) dst(%arg42 : memref<1024x128xbf16, #tpu.memory_space<vmem>>)
    %c0_79 = arith.constant 0 : index
    %c0_80 = arith.constant 0 : index
    %232 = vector.load %arg3[%c0_79, %c0_80] : memref<2x48xf32, #tpu.memory_space<vmem>>, vector<2x48xf32>
    %c0_81 = arith.constant 0 : index
    %c0_82 = arith.constant 0 : index
    %233 = vector.load %arg37[%c0_81, %c0_82] : memref<48x1024xbf16, #tpu.memory_space<vmem>>, vector<48x1024xbf16>
    %234 = arith.truncf %232 : vector<2x48xf32> to vector<2x48xbf16>
    %cst_83 = arith.constant dense<0.000000e+00> : vector<2x1024xf32>
    %235 = tpu.matmul %234, %233, %cst_83 {dimension_numbers = #tpu.dot_dimension_numbers<[1], [0], [0], [1], [0, 0, 1, 1], [], []>} : vector<2x48xbf16>, vector<48x1024xbf16>, vector<2x1024xf32> -> vector<2x1024xf32>
    %c0_84 = arith.constant 0 : index
    %c0_85 = arith.constant 0 : index
    %236 = vector.load %arg30[%c0_84, %c0_85] : memref<1x1024xf32, #tpu.memory_space<vmem>>, vector<1x1024xf32>
    %237 = vector.broadcast %236 : vector<1x1024xf32> to vector<2x1024xf32>
    %238 = arith.addf %235, %237 : vector<2x1024xf32>
    %cst_86 = arith.constant 0.000000e+00 : f32
    %239 = vector.broadcast %cst_86 : f32 to vector<2x1024xf32>
    %240 = arith.maximumf %238, %239 : vector<2x1024xf32>
    %c0_87 = arith.constant 0 : index
    %c0_88 = arith.constant 0 : index
    %241 = vector.load %arg38[%c0_87, %c0_88] : memref<1024x32xbf16, #tpu.memory_space<vmem>>, vector<1024x32xbf16>
    %242 = arith.truncf %240 : vector<2x1024xf32> to vector<2x1024xbf16>
    %cst_89 = arith.constant dense<0.000000e+00> : vector<2x32xf32>
    %243 = tpu.matmul %242, %241, %cst_89 {dimension_numbers = #tpu.dot_dimension_numbers<[1], [0], [0], [1], [0, 0, 1, 1], [], []>} : vector<2x1024xbf16>, vector<1024x32xbf16>, vector<2x32xf32> -> vector<2x32xf32>
    %c0_90 = arith.constant 0 : index
    %c0_91 = arith.constant 0 : index
    %244 = vector.load %arg31[%c0_90, %c0_91] : memref<1x32xf32, #tpu.memory_space<vmem>>, vector<1x32xf32>
    %245 = vector.broadcast %244 : vector<1x32xf32> to vector<2x32xf32>
    %246 = arith.addf %243, %245 : vector<2x32xf32>
    %cst_92 = arith.constant 0.000000e+00 : f32
    %247 = vector.broadcast %cst_92 : f32 to vector<2x32xf32>
    %248 = arith.maximumf %246, %247 : vector<2x32xf32>
    %c0_93 = arith.constant 0 : index
    %c0_94 = arith.constant 0 : index
    %249 = vector.load %arg39[%c0_93, %c0_94] : memref<32x1024xbf16, #tpu.memory_space<vmem>>, vector<32x1024xbf16>
    %250 = arith.truncf %219 : vector<2x32xf32> to vector<2x32xbf16>
    %cst_95 = arith.constant dense<0.000000e+00> : vector<2x1024xf32>
    %251 = tpu.matmul %250, %249, %cst_95 {dimension_numbers = #tpu.dot_dimension_numbers<[1], [0], [0], [1], [0, 0, 1, 1], [], []>} : vector<2x32xbf16>, vector<32x1024xbf16>, vector<2x1024xf32> -> vector<2x1024xf32>
    %c0_96 = arith.constant 0 : index
    %c0_97 = arith.constant 0 : index
    %252 = vector.load %arg40[%c0_96, %c0_97] : memref<32x1024xbf16, #tpu.memory_space<vmem>>, vector<32x1024xbf16>
    %253 = arith.truncf %248 : vector<2x32xf32> to vector<2x32xbf16>
    %cst_98 = arith.constant dense<0.000000e+00> : vector<2x1024xf32>
    %254 = tpu.matmul %253, %252, %cst_98 {dimension_numbers = #tpu.dot_dimension_numbers<[1], [0], [0], [1], [0, 0, 1, 1], [], []>} : vector<2x32xbf16>, vector<32x1024xbf16>, vector<2x1024xf32> -> vector<2x1024xf32>
    %255 = arith.addf %251, %254 : vector<2x1024xf32>
    %c0_99 = arith.constant 0 : index
    %c0_100 = arith.constant 0 : index
    %256 = vector.load %arg6[%c0_99, %c0_100] : memref<2x8xf32, #tpu.memory_space<vmem>>, vector<2x8xf32>
    %c0_101 = arith.constant 0 : index
    %c0_102 = arith.constant 0 : index
    %257 = vector.load %arg41[%c0_101, %c0_102] : memref<8x1024xbf16, #tpu.memory_space<vmem>>, vector<8x1024xbf16>
    %258 = arith.truncf %256 : vector<2x8xf32> to vector<2x8xbf16>
    %cst_103 = arith.constant dense<0.000000e+00> : vector<2x1024xf32>
    %259 = tpu.matmul %258, %257, %cst_103 {dimension_numbers = #tpu.dot_dimension_numbers<[1], [0], [0], [1], [0, 0, 1, 1], [], []>} : vector<2x8xbf16>, vector<8x1024xbf16>, vector<2x1024xf32> -> vector<2x1024xf32>
    %260 = arith.addf %255, %259 : vector<2x1024xf32>
    %c0_104 = arith.constant 0 : index
    %c0_105 = arith.constant 0 : index
    %261 = vector.load %arg32[%c0_104, %c0_105] : memref<1x1024xf32, #tpu.memory_space<vmem>>, vector<1x1024xf32>
    %262 = vector.broadcast %261 : vector<1x1024xf32> to vector<2x1024xf32>
    %263 = arith.addf %260, %262 : vector<2x1024xf32>
    %cst_106 = arith.constant 0.000000e+00 : f32
    %264 = vector.broadcast %cst_106 : f32 to vector<2x1024xf32>
    %265 = arith.maximumf %263, %264 : vector<2x1024xf32>
    %c0_107 = arith.constant 0 : index
    %c0_108 = arith.constant 0 : index
    %266 = vector.load %arg42[%c0_107, %c0_108] : memref<1024x128xbf16, #tpu.memory_space<vmem>>, vector<1024x128xbf16>
    %267 = arith.truncf %265 : vector<2x1024xf32> to vector<2x1024xbf16>
    %cst_109 = arith.constant dense<0.000000e+00> : vector<2x128xf32>
    %268 = tpu.matmul %267, %266, %cst_109 {dimension_numbers = #tpu.dot_dimension_numbers<[1], [0], [0], [1], [0, 0, 1, 1], [], []>} : vector<2x1024xbf16>, vector<1024x128xbf16>, vector<2x128xf32> -> vector<2x128xf32>
    %c0_110 = arith.constant 0 : index
    %c0_111 = arith.constant 0 : index
    %269 = vector.load %arg33[%c0_110, %c0_111] : memref<1x128xf32, #tpu.memory_space<vmem>>, vector<1x128xf32>
    %270 = vector.broadcast %269 : vector<1x128xf32> to vector<2x128xf32>
    %271 = arith.addf %268, %270 : vector<2x128xf32>
    %cst_112 = arith.constant 0.000000e+00 : f32
    %272 = vector.broadcast %cst_112 : f32 to vector<2x128xf32>
    %273 = arith.maximumf %271, %272 : vector<2x128xf32>
    %c0_113 = arith.constant 0 : index
    %c0_114 = arith.constant 0 : index
    %274 = vector.load %arg34[%c0_113, %c0_114] : memref<128x14xf32, #tpu.memory_space<vmem>>, vector<128x14xf32>
    %cst_115 = arith.constant dense<0.000000e+00> : vector<2x14xf32>
    %275 = tpu.matmul %273, %274, %cst_115 {dimension_numbers = #tpu.dot_dimension_numbers<[1], [0], [0], [1], [0, 0, 1, 1], [], []>} : vector<2x128xf32>, vector<128x14xf32>, vector<2x14xf32> -> vector<2x14xf32>
    %c0_116 = arith.constant 0 : index
    %c0_117 = arith.constant 0 : index
    %276 = vector.load %arg35[%c0_116, %c0_117] : memref<1x14xf32, #tpu.memory_space<vmem>>, vector<1x14xf32>
    %277 = vector.broadcast %276 : vector<1x14xf32> to vector<2x14xf32>
    %278 = arith.addf %275, %277 : vector<2x14xf32>
    %279 = vector.extract_strided_slice %278 {offsets = [0, 0], sizes = [2, 4], strides = [1, 1]} : vector<2x14xf32> to vector<2x4xf32>
    %cst_118 = arith.constant dense<0xFF800000> : vector<2xf32>
    %280 = vector.multi_reduction <maximumf>, %279, %cst_118 [1] : vector<2x4xf32> to vector<2xf32>
    %281 = vector.shape_cast %280 : vector<2xf32> to vector<2x1xf32>
    %282 = vector.broadcast %281 : vector<2x1xf32> to vector<2x4xf32>
    %283 = arith.subf %279, %282 : vector<2x4xf32>
    %284 = math.exp %283 : vector<2x4xf32>
    %cst_119 = arith.constant dense<0.000000e+00> : vector<2xf32>
    %285 = vector.multi_reduction <add>, %284, %cst_119 [1] : vector<2x4xf32> to vector<2xf32>
    %286 = vector.shape_cast %285 : vector<2xf32> to vector<2x1xf32>
    %287 = math.log %286 : vector<2x1xf32>
    %288 = vector.broadcast %287 : vector<2x1xf32> to vector<2x4xf32>
    %289 = arith.subf %283, %288 : vector<2x4xf32>
    %290 = vector.extract_strided_slice %278 {offsets = [0, 4], sizes = [2, 8], strides = [1, 1]} : vector<2x14xf32> to vector<2x8xf32>
    %cst_120 = arith.constant dense<0xFF800000> : vector<2xf32>
    %291 = vector.multi_reduction <maximumf>, %290, %cst_120 [1] : vector<2x8xf32> to vector<2xf32>
    %292 = vector.shape_cast %291 : vector<2xf32> to vector<2x1xf32>
    %293 = vector.broadcast %292 : vector<2x1xf32> to vector<2x8xf32>
    %294 = arith.subf %290, %293 : vector<2x8xf32>
    %295 = math.exp %294 : vector<2x8xf32>
    %cst_121 = arith.constant dense<0.000000e+00> : vector<2xf32>
    %296 = vector.multi_reduction <add>, %295, %cst_121 [1] : vector<2x8xf32> to vector<2xf32>
    %297 = vector.shape_cast %296 : vector<2xf32> to vector<2x1xf32>
    %298 = math.log %297 : vector<2x1xf32>
    %299 = vector.broadcast %298 : vector<2x1xf32> to vector<2x8xf32>
    %300 = arith.subf %294, %299 : vector<2x8xf32>
    %301 = vector.extract_strided_slice %278 {offsets = [0, 12], sizes = [2, 2], strides = [1, 1]} : vector<2x14xf32> to vector<2x2xf32>
    %cst_122 = arith.constant dense<0xFF800000> : vector<2xf32>
    %302 = vector.multi_reduction <maximumf>, %301, %cst_122 [1] : vector<2x2xf32> to vector<2xf32>
    %303 = vector.shape_cast %302 : vector<2xf32> to vector<2x1xf32>
    %304 = vector.broadcast %303 : vector<2x1xf32> to vector<2x2xf32>
    %305 = arith.subf %301, %304 : vector<2x2xf32>
    %306 = math.exp %305 : vector<2x2xf32>
    %cst_123 = arith.constant dense<0.000000e+00> : vector<2xf32>
    %307 = vector.multi_reduction <add>, %306, %cst_123 [1] : vector<2x2xf32> to vector<2xf32>
    %308 = vector.shape_cast %307 : vector<2xf32> to vector<2x1xf32>
    %309 = math.log %308 : vector<2x1xf32>
    %310 = vector.broadcast %309 : vector<2x1xf32> to vector<2x2xf32>
    %311 = arith.subf %305, %310 : vector<2x2xf32>
    %312 = tpu.concatenate %289, %300, %311 in 1 : vector<2x4xf32>, vector<2x8xf32>, vector<2x2xf32> -> vector<2x14xf32>
    %c0_124 = arith.constant 0 : index
    %c0_125 = arith.constant 0 : index
    %313 = vector.load %arg36[%c0_124, %c0_125] : memref<2x14xf32, #tpu.memory_space<vmem>>, vector<2x14xf32>
    tpu.vector_store %arg36[%c0_124, %c0_125], %312 {strides = array<i32>} : memref<2x14xf32, #tpu.memory_space<vmem>>, vector<2x14xf32>,
    return
  }
}

</mosaic_0001>

<bundles_post_ra>
// kernel: squeeze.13
= control target key start
LH: loop header
LB: loop body
LE: loop exit
PB: predicated region body
PF: predicated region fallthrough
CT: control target
= control target key end

     0   :  { %s7_s6 = smov 3  ;;  %s21_s9 = smov 3  ;;  %vm4_vm0 = vcmask 31744   ;;  %vm11_vm1 = vcmask 261344   ;;  %vm18_vm2 = vcmask 228544   ;;  %vm25_vm3 = vcmask 195744   ;;  %s119_s0 = inlined_call_operand.vmem [shape: f32[2,8,4], index: 0, kind: input, shape index: {}]   ;;  %s120_s1 = inlined_call_operand.vmem [shape: f32[2,32], index: 1, kind: output, shape index: {}]  }
   0x1   :  { %v61_v0 = vld [vmem:[%s119_s0 + $0x7] ss:$8 sm:%s7_s6]   ;;  %s75_s10 = smov 28   ;;  %v63_v1 = vld [vmem:[%s119_s0 + $0x5] ss:$8 sm:%s21_s9]   ;;  %s14_s13 = smov 3 }
   0x2   :  { %9 = vrot.lane.b32.xlu0 %v61_v0, %s75_s10  ;;  %s76_s14 = smov 20   ;;  %v62_v2 = vld [vmem:[%s119_s0 + $0x6] ss:$8 sm:%s14_s13]   ;;  %s28_s17 = smov 3  ;;  %vm32_vm4 = vcmask 162944   ;;  %vm39_vm5 = vcmask 130144  }
   0x3   :  { %23 = vrot.lane.b32.xlu1 %v63_v1, %s76_s14  ;;  %v64_v3 = vld [vmem:[%s119_s0 + $0x4] ss:$8 sm:%s28_s17]   ;;  %s35_s20 = smov 3  ;;  %s42_s21 = smov 3  ;;  %vm46_vm6 = vcmask 97344   ;;  %vm53_vm7 = vcmask 64544  }
   0x4   :  { %s77_s22 = smov 24   ;;  %s78_s23 = smov 16   ;;  %v65_v4 = vld [vmem:[%s119_s0 + $0x3] ss:$8 sm:%s35_s20]   ;;  %v66_v5 = vld [vmem:[%s119_s0 + $0x2] ss:$8 sm:%s42_s21]  }
   0x5   :  { %s2_s26 = smov 3  ;;  %s49_s29 = smov 3 }
   0x6   :  { %16 = vrot.lane.b32.xlu0 %v62_v2, %s77_s22  ;;  %v3_v6 = vld [vmem:[%s119_s0] ss:$8 sm:%s2_s26]   ;;  %s79_s3 = smov 12   ;;  %s80_s4 = smov 8  }
   0x7   :  { %30 = vrot.lane.b32.xlu1 %v64_v3, %s78_s23  ;;  %5 = vst.msk [vmem:[#allocation0] sm:$0x3] %vm4_vm0, %v3_v6   ;;  %v67_v7 = vld [vmem:[%s119_s0 + $0x1] ss:$8 sm:%s49_s29]   ;;  %s81_s0 = smov 4  }
   0xa   :  { %37 = vrot.lane.b32.xlu0 %v65_v4, %s79_s3 }
   0xb   :  { %44 = vrot.lane.b32.xlu1 %v66_v5, %s80_s4 }
   0xe   :  { %51 = vrot.lane.b32.xlu0 %v67_v7, %s81_s0 }
  0x74   :  { %v10_v8 = vpop.permute.xlu0 %9  }
  0x75   :  { %12 = vst.msk [vmem:[#allocation0] sm:$0x3] %vm11_vm1, %v10_v8   ;;  %v24_v9 = vpop.permute.xlu1 %23  }
  0x78   :  { %v17_v10 = vpop.permute.xlu0 %16  }
  0x79   :  { %19 = vst.msk [vmem:[#allocation0] sm:$0x3] %vm18_vm2, %v17_v10   ;;  %v31_v11 = vpop.permute.xlu1 %30  }
  0x7a   :  { %26 = vst.msk [vmem:[#allocation0] sm:$0x3] %vm25_vm3, %v24_v9  }
  0x7b   :  { %33 = vst.msk [vmem:[#allocation0] sm:$0x3] %vm32_vm4, %v31_v11  }
  0x7c   :  { %v38_v12 = vpop.permute.xlu0 %37  }
  0x7d   :  { %40 = vst.msk [vmem:[#allocation0] sm:$0x3] %vm39_vm5, %v38_v12   ;;  %v45_v13 = vpop.permute.xlu1 %44  }
  0x7e   :  { %47 = vst.msk [vmem:[#allocation0] sm:$0x3] %vm46_vm6, %v45_v13  }
  0x80   :  { %v52_v14 = vpop.permute.xlu0 %51  }
  0x81   :  { %54 = vst.msk [vmem:[#allocation0] sm:$0x3] %vm53_vm7, %v52_v14  }
  0x88   :  { %v58_v15 = vld [vmem:[#allocation0] sm:$0x3] }
  0x89   :  { %60 = vst [vmem:[%s120_s1] sm:$0x3] %v58_v15 }

// kernel: run.1
= control target key start
LH: loop header
LB: loop body
LE: loop exit
PB: predicated region body
PF: predicated region fallthrough
CT: control target
= control target key end

     0   :  { %s7439_s6 = smov 1   ;;  %s7440_s10 = smov 2   ;;  %s8691_s0 = inlined_call_operand.smem [shape: u32[37], index: -1, kind: input, shape index: {}] }
   0x1   :  { %s7519_s5 = sld [smem:[%s8691_s0]]   ;;  %s7441_s14 = smov 3  }
   0x2   :  { %s7524_s9 = sld [smem:[%s8691_s0 + %s7439_s6]]   ;;  %s7442_s18 = smov 4  }
   0x3   :  { %s7529_s13 = sld [smem:[%s8691_s0 + %s7440_s10]]   ;;  %s7443_s22 = smov 5  }
   0x4   :  { %s7534_s17 = sld [smem:[%s8691_s0 + %s7441_s14]]   ;;  %s7444_s26 = smov 6  }
   0x5   :  { %s7539_s21 = sld [smem:[%s8691_s0 + %s7442_s18]]   ;;  %s7445_s30 = smov 7  }
   0x6   :  { %s7544_s25 = sld [smem:[%s8691_s0 + %s7443_s22]]   ;;  %s7446_s4 = smov 8  }
   0x7   :  { %8712 = sst [smem:[#allocation53_spill]] %s7519_s5  ;;  %s7447_s10 = smov 9  }
   0x8   :  { %8713 = sst [smem:[#allocation54_spill]] %s7524_s9  ;;  %s7448_s15 = smov 10  }
   0x9   :  { %8714 = sst [smem:[#allocation55_spill]] %s7529_s13  ;;  %s7449_s20 = smov 11  }
   0xa   :  { %8715 = sst [smem:[#allocation56_spill]] %s7534_s17  ;;  %s7451_s1 = smov 13  }
   0xb   :  { %8716 = sst [smem:[#allocation57_spill]] %s7539_s21  ;;  %s7452_s7 = smov 14  }
   0xc   :  { %8717 = sst [smem:[#allocation58_spill]] %s7544_s25  ;;  %s7454_s22 = smov 16  }
   0xd   :  { %s7549_s29 = sld [smem:[%s8691_s0 + %s7444_s26]]   ;;  %s7450_s26 = smov 12  }
   0xe   :  { %s7554_s3 = sld [smem:[%s8691_s0 + %s7445_s30]]   ;;  %s7455_s28 = smov 17  }
   0xf   :  { %s7559_s8 = sld [smem:[%s8691_s0 + %s7446_s4]]  }
  0x10   :  { %s7564_s14 = sld [smem:[%s8691_s0 + %s7447_s10]]  }
  0x11   :  { %s7569_s19 = sld [smem:[%s8691_s0 + %s7448_s15]]   ;;  %s7453_s15 = smov 15  }
  0x12   :  { %s7574_s24 = sld [smem:[%s8691_s0 + %s7449_s20]]  }
  0x13   :  { %8718 = sst [smem:[#allocation59_spill]] %s7549_s29 }
  0x14   :  { %s7579_s30 = sld [smem:[%s8691_s0 + %s7450_s26]]  }
  0x15   :  { %8719 = sst [smem:[#allocation60_spill]] %s7559_s8 }
  0x16   :  { %8720 = sst [smem:[#allocation61_spill]] %s7564_s14 }
  0x17   :  { %s7584_s6 = sld [smem:[%s8691_s0 + %s7451_s1]]  }
  0x18   :  { %8721 = sst [smem:[#allocation62_spill]] %s7574_s24 }
  0x19   :  { %s7589_s12 = sld [smem:[%s8691_s0 + %s7452_s7]]   ;;  %s7456_s7 = smov 18  }
  0x1a   :  { %s7594_s20 = sld [smem:[%s8691_s0 + %s7453_s15]]   ;;  %s7457_s15 = smov 19  }
  0x1b   :  { %s7599_s27 = sld [smem:[%s8691_s0 + %s7454_s22]]   ;;  %s7458_s22 = smov 20  }
  0x1c   :  { %s7604_s4 = sld [smem:[%s8691_s0 + %s7455_s28]]   ;;  %s7459_s28 = smov 21  }
  0x1d   :  { %8722 = sst [smem:[#allocation63_spill]] %s7584_s6 }
  0x1e   :  { %s7609_s29 = sld [smem:[%s8691_s0 + %s7456_s7]]   ;;  %s7460_s7 = smov 22  }
  0x1f   :  { %s7614_s17 = sld [smem:[%s8691_s0 + %s7457_s15]]   ;;  %s7461_s15 = smov 23  }
  0x20   :  { %s7619_s25 = sld [smem:[%s8691_s0 + %s7458_s22]]   ;;  %s7462_s22 = smov 24  }
  0x21   :  { %s7624_s21 = sld [smem:[%s8691_s0 + %s7459_s28]]   ;;  %s7463_s28 = smov 25  }
  0x22   :  { %8723 = sst [smem:[#allocation64_spill]] %s7604_s4 }
  0x23   :  { %s7629_s4 = sld [smem:[%s8691_s0 + %s7460_s7]]   ;;  %s7464_s7 = smov 26  }
  0x24   :  { %s7634_s13 = sld [smem:[%s8691_s0 + %s7461_s15]]   ;;  %s7465_s15 = smov 27  }
  0x25   :  { %s7639_s8 = sld [smem:[%s8691_s0 + %s7462_s22]]   ;;  %s7466_s22 = smov 28  }
  0x26   :  { %s7644_s6 = sld [smem:[%s8691_s0 + %s7463_s28]]   ;;  %s7467_s28 = smov 29  }
  0x27   :  { %s7654_s14 = sld [smem:[%s8691_s0 + %s7465_s15]]   ;;  %s7469_s15 = smov 31  }
  0x28   :  { %s7659_s9 = sld [smem:[%s8691_s0 + %s7466_s22]]   ;;  %s7470_s22 = smov 32  }
  0x29   :  { %8724 = sst [smem:[#allocation65_spill]] %s7629_s4 }
  0x2a   :  { %s7649_s4 = sld [smem:[%s8691_s0 + %s7464_s7]]   ;;  %s7468_s7 = smov 30  }
  0x2b   :  { %s7664_s24 = sld [smem:[%s8691_s0 + %s7467_s28]]   ;;  %s7471_s28 = smov 33  }
  0x2c   :  { %s7669_s5 = sld [smem:[%s8691_s0 + %s7468_s7]]   ;;  %s7472_s7 = smov 34  }
  0x2d   :  { %8726 = sst [smem:[#allocation67_spill]] %s7654_s14 }
  0x2e   :  { %8727 = sst [smem:[#allocation68_spill]] %s7659_s9 }
  0x2f   :  { %s7674_s14 = sld [smem:[%s8691_s0 + %s7469_s15]]   ;;  %s7473_s15 = smov 35  }
  0x30   :  { %8725 = sst [smem:[#allocation66_spill]] %s7649_s4 }
  0x31   :  { %8728 = sst [smem:[#allocation69_spill]] %s7664_s24 }
  0x32   :  { %s7679_s9 = sld [smem:[%s8691_s0 + %s7470_s22]]   ;;  %s7474_s22 = smov 36  }
  0x33   :  { %s7684_s24 = sld [smem:[%s8691_s0 + %s7471_s28]]  }
  0x34   :  { %s7689_s4 = sld [smem:[%s8691_s0 + %s7472_s7]]  }
  0x35   :  { %8729 = sst [smem:[#allocation70_spill]] %s7674_s14 }
  0x36   :  { %s7694_s14 = sld [smem:[%s8691_s0 + %s7473_s15]]  }
  0x38   :  { %8730 = sst [smem:[#allocation71_spill]] %s7679_s9 }
  0x39   :  { %s7699_s9 = sld [smem:[%s8691_s0 + %s7474_s22]]  }
  0x3a   :  { %78 = vsyncpa [#allocation10], 0 }
  0x3b   :  { %79 = vsyncpa [#allocation12], 0 }
  0x3c   :  { %80 = vsyncpa [#allocation15], 0 }
  0x3d   :  { %81 = vsyncpa [#allocation18], 0 }
  0x3e   :  { %82 = vsyncpa [#allocation21], 0 }
  0x3f   :  { %83 = vsyncpa [#allocation24], 0 }
  0x40   :  { %84 = vsyncpa [#allocation27], 0  ;;  %s7475_s28 = smov [#allocation11]   ;;  %s7476_s2 = smov [#allocation14]  }
  0x41   :  { %s121_s1 = sshll.u32 %s7475_s28, 4  ;;  %s145_s7 = sshll.u32 %s7476_s2, 4  ;;  %s122_s1 = int_to_ptr.vmem [resolvable:$true] %s121_s1  ;;  %s146_s7 = int_to_ptr.vmem [resolvable:$true] %s145_s7 }
  0x42   :  { %s7127_s10 = scalar_lea.hbm %s7569_s19, 16 }
  0x43   :  { %p7128_p0 = scmp.ne.s32.totalorder %s7569_s19, %s7127_s10  ;;  %p7131_p1 = scmp.lt.u32.totalorder %s7127_s10, %s7569_s19 }
  0x45   :  { %p7133_p2 = pnand %p7131_p1, %p7128_p0 }
  0x47   :  { %7136 = shalt.err (!%p7133_p2)
}
  0x48   :  { %s7137_s0 = scalar_lea.vmem %s122_s1, 16  ;;  %s7141_s11 = scalar_lea.vmem %s122_s1, 32 }
  0x49   :  { %p7138_p3 = scmp.ne.s32.totalorder %s122_s1, %s7137_s0  ;;  %p7142_p4 = scmp.lt.s32.totalorder %s122_s1, %s122_s1 }
  0x4a   :  { %p7143_p5 = scmp.lt.s32.totalorder %s7141_s11, %s7137_s0 }
  0x4c   :  { %p7144_p6 = por %p7143_p5, %p7142_p4 }
  0x4e   :  { %p7145_p7 = pnand %p7144_p6, %p7138_p3 }
  0x50   :  { %7148 = shalt.err (!%p7145_p7)
}
  0x51   :  { %124 = dma.hbm_to_vmem [thread:$0]  %s7569_s19, 16, %s122_s1, [#allocation12]  }
  0x52   :  { %s7149_s15 = scalar_lea.hbm %s7589_s12, 16 }
  0x53   :  { %p7150_p8 = scmp.ne.s32.totalorder %s7589_s12, %s7149_s15  ;;  %p7153_p9 = scmp.lt.u32.totalorder %s7149_s15, %s7589_s12 }
  0x55   :  { %p7155_p10 = pnand %p7153_p9, %p7150_p8 }
  0x57   :  { %7158 = shalt.err (!%p7155_p10)
}
  0x58   :  { %s7159_s16 = scalar_lea.vmem %s146_s7, 16  ;;  %s7163_s18 = scalar_lea.vmem %s146_s7, 32 }
  0x59   :  { %p7160_p11 = scmp.ne.s32.totalorder %s146_s7, %s7159_s16  ;;  %p7164_p12 = scmp.lt.s32.totalorder %s146_s7, %s146_s7 }
  0x5a   :  { %p7165_p13 = scmp.lt.s32.totalorder %s7163_s18, %s7159_s16 }
  0x5c   :  { %p7166_p0 = por %p7165_p13, %p7164_p12 }
  0x5e   :  { %p7167_p1 = pnand %p7166_p0, %p7160_p11 }
  0x60   :  { %7170 = shalt.err (!%p7167_p1)
}
  0x61   :  { %148 = dma.hbm_to_vmem [thread:$0]  %s7589_s12, 16, %s146_s7, [#allocation15]  }
  0x62   :  { %s7477_s22 = smov [#allocation17]   ;;  %s7478_s23 = smov [#allocation20]  }
  0x63   :  { %s167_s19 = sshll.u32 %s7477_s22, 4  ;;  %s188_s26 = sshll.u32 %s7478_s23, 4  ;;  %s168_s19 = int_to_ptr.vmem [resolvable:$true] %s167_s19  ;;  %s189_s26 = int_to_ptr.vmem [resolvable:$true] %s188_s26 }
  0x64   :  { %s7171_s28 = scalar_lea.hbm %s7599_s27, 128 }
  0x65   :  { %p7172_p2 = scmp.ne.s32.totalorder %s7599_s27, %s7171_s28  ;;  %p7175_p3 = scmp.lt.u32.totalorder %s7171_s28, %s7599_s27 }
  0x67   :  { %p7177_p4 = pnand %p7175_p3, %p7172_p2 }
  0x69   :  { %7180 = shalt.err (!%p7177_p4)
}
  0x6a   :  { %s7181_s1 = scalar_lea.vmem %s168_s19, 128  ;;  %p7186_p6 = scmp.lt.s32.totalorder %s168_s19, %s168_s19 }
  0x6b   :  { %p7182_p5 = scmp.ne.s32.totalorder %s168_s19, %s7181_s1  ;;  %p7187_p7 = scmp.lt.s32.totalorder %s7181_s1, %s7181_s1 }
  0x6d   :  { %p7188_p8 = por %p7187_p7, %p7186_p6 }
  0x6f   :  { %p7189_p9 = pnand %p7188_p8, %p7182_p5 }
  0x71   :  { %7192 = shalt.err (!%p7189_p9)
}
  0x72   :  { %170 = dma.hbm_to_vmem [thread:$0]  %s7599_s27, 128, %s168_s19, [#allocation18]  }
  0x73   :  { %s7193_s12 = scalar_lea.hbm %s7614_s17, 256 }
  0x74   :  { %p7194_p10 = scmp.ne.s32.totalorder %s7614_s17, %s7193_s12  ;;  %p7197_p11 = scmp.lt.u32.totalorder %s7193_s12, %s7614_s17 }
  0x76   :  { %p7199_p12 = pnand %p7197_p11, %p7194_p10 }
  0x78   :  { %7202 = shalt.err (!%p7199_p12)
}
  0x79   :  { %s7203_s2 = scalar_lea.vmem %s189_s26, 256  ;;  %p7208_p0 = scmp.lt.s32.totalorder %s189_s26, %s189_s26 }
  0x7a   :  { %p7204_p13 = scmp.ne.s32.totalorder %s189_s26, %s7203_s2  ;;  %p7209_p1 = scmp.lt.s32.totalorder %s7203_s2, %s7203_s2 }
  0x7c   :  { %p7210_p2 = por %p7209_p1, %p7208_p0 }
  0x7e   :  { %p7211_p3 = pnand %p7210_p2, %p7204_p13 }
  0x80   :  { %7214 = shalt.err (!%p7211_p3)
}
  0x81   :  { %s7479_s7 = smov 64   ;;  %s7480_s10 = smov 4  }
  0x82   :  { %194 = dma.hbm_to_vmem [thread:$0]  %s7614_s17, 256, %s189_s26, [#allocation21], %s7479_s7, %s7479_s7, %s7480_s10  }
  0x83   :  { %s7481_s27 = smov [#allocation23]   ;;  %s7482_s11 = smov [#allocation9]  }
  0x84   :  { %s212_s0 = sshll.u32 %s7481_s27, 4  ;;  %s104_s15 = sshll.u32 %s7482_s11, 4  ;;  %s213_s0 = int_to_ptr.vmem [resolvable:$true] %s212_s0  ;;  %s7720_s15 = int_to_ptr.vmem [resolvable:$true] %s104_s15 }
  0x85   :  { %s7215_s16 = scalar_lea.hbm %s7624_s21, 1024 }
  0x86   :  { %p7216_p4 = scmp.ne.s32.totalorder %s7624_s21, %s7215_s16  ;;  %p7219_p5 = scmp.lt.u32.totalorder %s7215_s16, %s7624_s21 }
  0x88   :  { %p7221_p6 = pnand %p7219_p5, %p7216_p4 }
  0x8a   :  { %7224 = shalt.err (!%p7221_p6)
}
  0x8b   :  { %s7225_s18 = scalar_lea.vmem %s213_s0, 1024  ;;  %p7230_p8 = scmp.lt.s32.totalorder %s213_s0, %s213_s0 }
  0x8c   :  { %p7226_p7 = scmp.ne.s32.totalorder %s213_s0, %s7225_s18  ;;  %p7231_p9 = scmp.lt.s32.totalorder %s7225_s18, %s7225_s18 }
  0x8e   :  { %p7232_p10 = por %p7231_p9, %p7230_p8 }
  0x90   :  { %p7233_p11 = pnand %p7232_p10, %p7226_p7 }
  0x92   :  { %7236 = shalt.err (!%p7233_p11)
}
  0x93   :  { %218 = dma.hbm_to_vmem [thread:$0]  %s7624_s21, 1024, %s213_s0, [#allocation24], %s7479_s7, %s7479_s7, %s7480_s10  }
  0x94   :  { %s7237_s17 = scalar_lea.hbm %s7554_s3, 256 }
  0x95   :  { %p7238_p12 = scmp.ne.s32.totalorder %s7554_s3, %s7237_s17  ;;  %p7241_p13 = scmp.lt.u32.totalorder %s7237_s17, %s7554_s3 }
  0x97   :  { %p7243_p0 = pnand %p7241_p13, %p7238_p12 }
  0x99   :  { %7246 = shalt.err (!%p7243_p0)
}
  0x9a   :  { %s7247_s22 = scalar_lea.vmem %s7720_s15, 256  ;;  %p7252_p2 = scmp.lt.s32.totalorder %s7720_s15, %s7720_s15 }
  0x9b   :  { %p7248_p1 = scmp.ne.s32.totalorder %s7720_s15, %s7247_s22  ;;  %p7253_p3 = scmp.lt.s32.totalorder %s7247_s22, %s7247_s22 }
  0x9d   :  { %p7254_p4 = por %p7253_p3, %p7252_p2 }
  0x9f   :  { %p7255_p5 = pnand %p7254_p4, %p7248_p1 }
  0xa1   :  { %7258 = shalt.err (!%p7255_p5)
}
  0xa2   :  { %s7483_s19 = smov 128   ;;  %s7484_s21 = smov 8  }
  0xa3   :  { %110 = dma.hbm_to_vmem [thread:$0]  %s7554_s3, 256, %s7720_s15, [#allocation10], %s7483_s19, %s7483_s19, %s7484_s21  }
  0xa4   :  { %s7485_s23 = smov [#allocation13]   ;;  %s7486_s28 = smov [#allocation16]  }
  0xa5   :  { %s133_s26 = sshll.u32 %s7485_s23, 4  ;;  %s154_s1 = sshll.u32 %s7486_s28, 4  ;;  %s134_s26 = int_to_ptr.vmem [resolvable:$true] %s133_s26  ;;  %s7741_s1 = int_to_ptr.vmem [resolvable:$true] %s154_s1 }
  0xa6   :  { %s7259_s12 = scalar_lea.hbm %s7579_s30, 128 }
  0xa7   :  { %p7260_p6 = scmp.ne.s32.totalorder %s7579_s30, %s7259_s12  ;;  %p7263_p7 = scmp.lt.u32.totalorder %s7259_s12, %s7579_s30 }
  0xa9   :  { %p7265_p8 = pnand %p7263_p7, %p7260_p6 }
  0xab   :  { %7268 = shalt.err (!%p7265_p8)
}
  0xac   :  { %s7269_s2 = scalar_lea.vmem %s134_s26, 128  ;;  %p7274_p10 = scmp.lt.s32.totalorder %s134_s26, %s134_s26 }
  0xad   :  { %p7270_p9 = scmp.ne.s32.totalorder %s134_s26, %s7269_s2  ;;  %p7275_p11 = scmp.lt.s32.totalorder %s7269_s2, %s7269_s2 }
  0xaf   :  { %p7276_p12 = por %p7275_p11, %p7274_p10 }
  0xb1   :  { %p7277_p13 = pnand %p7276_p12, %p7270_p9 }
  0xb3   :  { %7280 = shalt.err (!%p7277_p13)
}
  0xb4   :  { %136 = dma.hbm_to_vmem [thread:$0]  %s7579_s30, 128, %s134_s26, [#allocation12]  }
  0xb5   :  { %s7281_s3 = scalar_lea.hbm %s7594_s20, 4096 }
  0xb6   :  { %p7282_p0 = scmp.ne.s32.totalorder %s7594_s20, %s7281_s3  ;;  %p7285_p1 = scmp.lt.u32.totalorder %s7281_s3, %s7594_s20 }
  0xb8   :  { %p7287_p2 = pnand %p7285_p1, %p7282_p0 }
  0xba   :  { %7290 = shalt.err (!%p7287_p2)
}
  0xbb   :  { %s7291_s27 = scalar_lea.vmem %s7741_s1, 4096  ;;  %p7296_p4 = scmp.lt.s32.totalorder %s7741_s1, %s7741_s1 }
  0xbc   :  { %p7292_p3 = scmp.ne.s32.totalorder %s7741_s1, %s7291_s27  ;;  %p7297_p5 = scmp.lt.s32.totalorder %s7291_s27, %s7291_s27 }
  0xbe   :  { %p7298_p6 = por %p7297_p5, %p7296_p4 }
  0xc0   :  { %p7299_p7 = pnand %p7298_p6, %p7292_p3 }
  0xc2   :  { %7302 = shalt.err (!%p7299_p7)
}
  0xc3   :  { %s7487_s0 = smov 1024   ;;  %s7488_s30 = smov [#allocation19]  }
  0xc4   :  { %160 = dma.hbm_to_vmem [thread:$0]  %s7594_s20, 4096, %s7741_s1, [#allocation15], %s7487_s0, %s7487_s0, %s7479_s7  }
  0xc5   :  { %s179_s11 = sshll.u32 %s7488_s30, 4  ;;  %s7489_s15 = smov [#allocation22]   ;;  %s180_s11 = int_to_ptr.vmem [resolvable:$true] %s179_s11 }
  0xc6   :  { %s200_s16 = sshll.u32 %s7489_s15, 4  ;;  %s7303_s18 = scalar_lea.hbm %s7609_s29, 16  ;;  %s201_s16 = int_to_ptr.vmem [resolvable:$true] %s200_s16 }
  0xc7   :  { %p7304_p8 = scmp.ne.s32.totalorder %s7609_s29, %s7303_s18  ;;  %p7307_p9 = scmp.lt.u32.totalorder %s7303_s18, %s7609_s29 }
  0xc9   :  { %p7309_p10 = pnand %p7307_p9, %p7304_p8 }
  0xcb   :  { %7312 = shalt.err (!%p7309_p10)
}
  0xcc   :  { %s7313_s17 = scalar_lea.vmem %s180_s11, 16  ;;  %s7317_s22 = scalar_lea.vmem %s180_s11, 32 }
  0xcd   :  { %p7314_p11 = scmp.ne.s32.totalorder %s180_s11, %s7313_s17  ;;  %p7318_p12 = scmp.lt.s32.totalorder %s180_s11, %s180_s11 }
  0xce   :  { %p7319_p13 = scmp.lt.s32.totalorder %s7317_s22, %s7313_s17 }
  0xd0   :  { %p7320_p0 = por %p7319_p13, %p7318_p12 }
  0xd2   :  { %p7321_p1 = pnand %p7320_p0, %p7314_p11 }
  0xd4   :  { %7324 = shalt.err (!%p7321_p1)
}
  0xd5   :  { %182 = dma.hbm_to_vmem [thread:$0]  %s7609_s29, 16, %s180_s11, [#allocation18]  }
  0xd6   :  { %s7325_s20 = scalar_lea.hbm %s7619_s25, 1024 }
  0xd7   :  { %p7326_p2 = scmp.ne.s32.totalorder %s7619_s25, %s7325_s20  ;;  %p7329_p3 = scmp.lt.u32.totalorder %s7325_s20, %s7619_s25 }
  0xd9   :  { %p7331_p4 = pnand %p7329_p3, %p7326_p2 }
  0xdb   :  { %7334 = shalt.err (!%p7331_p4)
}
  0xdc   :  { %s7335_s23 = scalar_lea.vmem %s201_s16, 1024  ;;  %p7340_p6 = scmp.lt.s32.totalorder %s201_s16, %s201_s16 }
  0xdd   :  { %p7336_p5 = scmp.ne.s32.totalorder %s201_s16, %s7335_s23  ;;  %p7341_p7 = scmp.lt.s32.totalorder %s7335_s23, %s7335_s23 }
  0xdf   :  { %p7342_p8 = por %p7341_p7, %p7340_p6 }
  0xe1   :  { %p7343_p9 = pnand %p7342_p8, %p7336_p5 }
  0xe3   :  { %7346 = shalt.err (!%p7343_p9)
}
  0xe4   :  { %206 = dma.hbm_to_vmem [thread:$0]  %s7619_s25, 1024, %s201_s16, [#allocation21], %s7479_s7, %s7479_s7, %s7480_s10  }
  0xe5   :  { %s7490_s29 = smov [#allocation25]   ;;  %s7491_s28 = smov [#allocation26]  }
  0xe6   :  { %s227_s26 = sshll.u32 %s7490_s29, 4  ;;  %s237_s1 = sshll.u32 %s7491_s28, 4  ;;  %s228_s26 = int_to_ptr.vmem [resolvable:$true] %s227_s26  ;;  %s238_s1 = int_to_ptr.vmem [resolvable:$true] %s237_s1 }
  0xe7   :  { %s7347_s12 = scalar_lea.hbm %s7634_s13, 16 }
  0xe8   :  { %p7348_p10 = scmp.ne.s32.totalorder %s7634_s13, %s7347_s12  ;;  %p7351_p11 = scmp.lt.u32.totalorder %s7347_s12, %s7634_s13 }
  0xea   :  { %p7353_p12 = pnand %p7351_p11, %p7348_p10 }
  0xec   :  { %7356 = shalt.err (!%p7353_p12)
}
  0xed   :  { %s7357_s2 = scalar_lea.vmem %s228_s26, 16  ;;  %s7361_s3 = scalar_lea.vmem %s228_s26, 32 }
  0xee   :  { %p7358_p13 = scmp.ne.s32.totalorder %s228_s26, %s7357_s2  ;;  %p7362_p0 = scmp.lt.s32.totalorder %s228_s26, %s228_s26 }
  0xef   :  { %p7363_p1 = scmp.lt.s32.totalorder %s7361_s3, %s7357_s2 }
  0xf1   :  { %p7364_p2 = por %p7363_p1, %p7362_p0 }
  0xf3   :  { %p7365_p3 = pnand %p7364_p2, %p7358_p13 }
  0xf5   :  { %7368 = shalt.err (!%p7365_p3)
}
  0xf6   :  { %230 = dma.hbm_to_vmem [thread:$0]  %s7634_s13, 16, %s228_s26, [#allocation24]  }
  0xf7   :  { %s7369_s25 = scalar_lea.hbm %s7669_s5, 128 }
  0xf8   :  { %p7370_p4 = scmp.ne.s32.totalorder %s7669_s5, %s7369_s25  ;;  %p7373_p5 = scmp.lt.u32.totalorder %s7369_s25, %s7669_s5 }
  0xfa   :  { %p7375_p6 = pnand %p7373_p5, %p7370_p4 }
  0xfc   :  { %7378 = shalt.err (!%p7375_p6)
}
  0xfd   :  { %s7379_s27 = scalar_lea.vmem %s238_s1, 128  ;;  %p7384_p8 = scmp.lt.s32.totalorder %s238_s1, %s238_s1 }
  0xfe   :  { %p7380_p7 = scmp.ne.s32.totalorder %s238_s1, %s7379_s27  ;;  %p7385_p9 = scmp.lt.s32.totalorder %s7379_s27, %s7379_s27 }
 0x100   :  { %p7386_p10 = por %p7385_p9, %p7384_p8 }
 0x102   :  { %p7387_p11 = pnand %p7386_p10, %p7380_p7 }
 0x104   :  { %7390 = shalt.err (!%p7387_p11)
}
 0x105   :  { %240 = dma.hbm_to_vmem [thread:$0]  %s7669_s5, 128, %s238_s1, [#allocation27]  }
 0x106   :  { %7413 = dma.done.wait [#allocation10], 256  }
 0x107   :  { %7414 = vsyncadd [#allocation10], 4294967040 }
 0x108   :  { %7415 = dma.done.wait [#allocation12], 144  }
 0x109   :  { %7416 = vsyncadd [#allocation12], 4294967152 }
 0x10a   :  { %7417 = dma.done.wait [#allocation15], 4112  }
 0x10b   :  { %7418 = vsyncadd [#allocation15], 4294963184 }
 0x10c   :  { %7419 = dma.done.wait [#allocation18], 144  }
 0x10d   :  { %7420 = vsyncadd [#allocation18], 4294967152 }
 0x10e   :  { %7421 = dma.done.wait [#allocation21], 1280  }
 0x10f   :  { %7422 = vsyncadd [#allocation21], 4294966016 }
 0x110   :  { %7423 = dma.done.wait [#allocation24], 1040  }
 0x111   :  { %7424 = vsyncadd [#allocation24], 4294966256 }
 0x112   :  { %7425 = dma.done.wait [#allocation27], 128  }
 0x113   :  { %7426 = vsyncadd [#allocation27], 4294967168  ;;  %s292_s13 = sld [smem:[#allocation0]]   ;;  %304 = sst [smem:[#allocation29]] %s7487_s0 }
 0x114   :  { %306 = sst [smem:[#allocation29 + $0x1]] %s7487_s0  ;;  %s7492_s5 = smov [#allocation2]  }
 0x115   :  { %308 = sst [smem:[#allocation29 + $0x2]] %s7484_s21  ;;  %s300_s30 = sshll.u32 %s7492_s5, 4  ;;  %s301_s30 = int_to_ptr.vmem [resolvable:$true] %s300_s30 }
 0x116   :  { %310 = sst [smem:[#allocation29 + $0x3]] %s7479_s7  ;;  %s7493_s11 = smov 2  }
 0x117   :  { %312 = sst [smem:[#allocation29 + $0x4]] %s7483_s19  ;;  %s7494_s16 = smov 512  }
 0x118   :  { %314 = sst [smem:[#allocation29 + $0x5]] %s7493_s11  ;;  %s7495_s17 = smov [#allocation8]  }
 0x119   :  { %s5805_s15 = sshll.u32 %s292_s13, 26  ;;  %316 = sst [smem:[#allocation29 + $0x6]] %s7494_s16 }
 0x11a   :  { %s7785_s18 = sadd.s32 134217728, %s5805_s15  ;;  %318 = sst [smem:[#allocation29 + $0x7]] %s7479_s7 }
 0x11b   :  { %320 = sst [smem:[#allocation29 + $0x8]] %s7480_s10  ;;  %s7496_s22 = smov [#allocation28]  }
 0x11c   :  { %322 = dma.general %s7639_s8, 3072, %s301_s30, %s7495_s17, %s7496_s22, [#allocation29], %s7785_s18, 0  }
 0x11d   :  { %v7792_v0 = vld [vmem:[%s7644_s6] sm:$0xff]  ;;  %v7795_v1 = vld [vmem:[%s7644_s6 + $0x8] sm:$0xff]  ;;  %v7798_v2 = vld [vmem:[%s7644_s6 + $0x10] sm:$0xff] }
 0x11e   :  { %v7801_v3 = vld [vmem:[%s7644_s6 + $0x18] sm:$0xff]  ;;  %v7804_v4 = vld [vmem:[%s7644_s6 + $0x20] sm:$0xff]  ;;  %v7807_v5 = vld [vmem:[%s7644_s6 + $0x28] sm:$0xff] }
 0x11f   :  { %v7810_v6 = vld [vmem:[%s7644_s6 + $0x30] sm:$0xff]  ;;  %v7813_v7 = vld [vmem:[%s7644_s6 + $0x38] sm:$0xff]  ;;  %v7816_v8 = vld [vmem:[%s7644_s6 + $0x40] sm:$0xff] }
 0x120   :  { %v7819_v9 = vld [vmem:[%s7644_s6 + $0x48] sm:$0xff]  ;;  %v7822_v10 = vld [vmem:[%s7644_s6 + $0x50] sm:$0xff]  ;;  %v7825_v11 = vld [vmem:[%s7644_s6 + $0x58] sm:$0xff] }
 0x121   :  { %v7828_v12 = vld [vmem:[%s7644_s6 + $0x60] sm:$0xff]  ;;  %v7831_v13 = vld [vmem:[%s7644_s6 + $0x68] sm:$0xff]  ;;  %v7834_v14 = vld [vmem:[%s7644_s6 + $0x70] sm:$0xff] }
 0x122   :  { %v7837_v15 = vld [vmem:[%s7644_s6 + $0x78] sm:$0xff]  ;;  %v7840_v16 = vld [vmem:[%s7644_s6 + $0x80] sm:$0xff]  ;;  %v7843_v17 = vld [vmem:[%s7644_s6 + $0x88] sm:$0xff] }
 0x123   :  { %v7846_v18 = vld [vmem:[%s7644_s6 + $0x90] sm:$0xff]  ;;  %v7849_v19 = vld [vmem:[%s7644_s6 + $0x98] sm:$0xff]  ;;  %v7852_v20 = vld [vmem:[%s7644_s6 + $0xa0] sm:$0xff] }
 0x124   :  { %v7855_v21 = vld [vmem:[%s7644_s6 + $0xa8] sm:$0xff]  ;;  %v7858_v22 = vld [vmem:[%s7644_s6 + $0xb0] sm:$0xff]  ;;  %v7861_v23 = vld [vmem:[%s7644_s6 + $0xb8] sm:$0xff] }
 0x125   :  { %8731 = vst [vmem:[#allocation72_spill] sm:$0xff] %v7855_v21  ;;  %8732 = vst [vmem:[#allocation73_spill] sm:$0xff] %v7858_v22  ;;  %v7864_v24 = vld [vmem:[%s7644_s6 + $0xc0] sm:$0xff]  ;;  %v7867_v25 = vld [vmem:[%s7644_s6 + $0xc8] sm:$0xff] }
 0x126   :  { %8733 = vst [vmem:[#allocation74_spill] sm:$0xff] %v7861_v23  ;;  %v7870_v26 = vld [vmem:[%s7644_s6 + $0xd0] sm:$0xff]  ;;  %v7873_v27 = vld [vmem:[%s7644_s6 + $0xd8] sm:$0xff]  ;;  %v7876_v28 = vld [vmem:[%s7644_s6 + $0xe0] sm:$0xff] }
 0x127   :  { %v7879_v29 = vld [vmem:[%s7644_s6 + $0xe8] sm:$0xff]  ;;  %v7882_v30 = vld [vmem:[%s7644_s6 + $0xf0] sm:$0xff]  ;;  %v7885_v31 = vld [vmem:[%s7644_s6 + $0xf8] sm:$0xff] }
 0x128   :  { %8734 = vst [vmem:[#allocation75_spill] sm:$0xff] %v7882_v30  ;;  %8735 = vst [vmem:[#allocation76_spill] sm:$0xff] %v7885_v31  ;;  %v7888_v32 = vld [vmem:[%s7644_s6 + $0x100] sm:$0xff]  ;;  %v7891_v33 = vld [vmem:[%s7644_s6 + $0x108] sm:$0xff] }
 0x129   :  { %8736 = vst [vmem:[#allocation77_spill] sm:$0xff] %v7888_v32  ;;  %8737 = vst [vmem:[#allocation78_spill] sm:$0xff] %v7891_v33  ;;  %v7894_v34 = vld [vmem:[%s7644_s6 + $0x110] sm:$0xff]  ;;  %v7897_v35 = vld [vmem:[%s7644_s6 + $0x118] sm:$0xff] }
 0x12a   :  { %8738 = vst [vmem:[#allocation79_spill] sm:$0xff] %v7894_v34  ;;  %8739 = vst [vmem:[#allocation80_spill] sm:$0xff] %v7897_v35  ;;  %v7900_v36 = vld [vmem:[%s7644_s6 + $0x120] sm:$0xff]  ;;  %v7903_v37 = vld [vmem:[%s7644_s6 + $0x128] sm:$0xff] }
 0x12b   :  { %8740 = vst [vmem:[#allocation81_spill] sm:$0xff] %v7900_v36  ;;  %8741 = vst [vmem:[#allocation82_spill] sm:$0xff] %v7903_v37  ;;  %v7906_v38 = vld [vmem:[%s7644_s6 + $0x130] sm:$0xff]  ;;  %v7909_v39 = vld [vmem:[%s7644_s6 + $0x138] sm:$0xff] }
 0x12c   :  { %8742 = vst [vmem:[#allocation83_spill] sm:$0xff] %v7906_v38  ;;  %8743 = vst [vmem:[#allocation84_spill] sm:$0xff] %v7909_v39  ;;  %v7912_v40 = vld [vmem:[%s7644_s6 + $0x140] sm:$0xff]  ;;  %v7915_v41 = vld [vmem:[%s7644_s6 + $0x148] sm:$0xff] }
 0x12d   :  { %8744 = vst [vmem:[#allocation85_spill] sm:$0xff] %v7915_v41  ;;  %v7918_v42 = vld [vmem:[%s7644_s6 + $0x150] sm:$0xff]  ;;  %v7921_v43 = vld [vmem:[%s7644_s6 + $0x158] sm:$0xff]  ;;  %v7924_v44 = vld [vmem:[%s7644_s6 + $0x160] sm:$0xff] }
 0x12e   :  { %8745 = vst [vmem:[#allocation86_spill] sm:$0xff] %v7918_v42  ;;  %8746 = vst [vmem:[#allocation87_spill] sm:$0xff] %v7921_v43  ;;  %v7927_v45 = vld [vmem:[%s7644_s6 + $0x168] sm:$0xff]  ;;  %v7930_v46 = vld [vmem:[%s7644_s6 + $0x170] sm:$0xff] }
 0x12f   :  { %8747 = vst [vmem:[#allocation88_spill] sm:$0xff] %v7924_v44  ;;  %8748 = vst [vmem:[#allocation89_spill] sm:$0xff] %v7927_v45  ;;  %v7933_v47 = vld [vmem:[%s7644_s6 + $0x178] sm:$0xff]  ;;  %v7936_v48 = vld [vmem:[%s7644_s6 + $0x180] sm:$0xff] }
 0x130   :  { %8749 = vst [vmem:[#allocation90_spill] sm:$0xff] %v7930_v46  ;;  %8750 = vst [vmem:[#allocation91_spill] sm:$0xff] %v7933_v47  ;;  %v7939_v49 = vld [vmem:[%s7644_s6 + $0x188] sm:$0xff]  ;;  %v7942_v50 = vld [vmem:[%s7644_s6 + $0x190] sm:$0xff] }
 0x131   :  { %8751 = vst [vmem:[#allocation92_spill] sm:$0xff] %v7936_v48  ;;  %8752 = vst [vmem:[#allocation93_spill] sm:$0xff] %v7939_v49  ;;  %v7945_v51 = vld [vmem:[%s7644_s6 + $0x198] sm:$0xff]  ;;  %v7948_v52 = vld [vmem:[%s7644_s6 + $0x1a0] sm:$0xff] }
 0x132   :  { %8753 = vst [vmem:[#allocation94_spill] sm:$0xff] %v7942_v50  ;;  %8754 = vst [vmem:[#allocation95_spill] sm:$0xff] %v7945_v51  ;;  %v7951_v53 = vld [vmem:[%s7644_s6 + $0x1a8] sm:$0xff]  ;;  %v7954_v54 = vld [vmem:[%s7644_s6 + $0x1b0] sm:$0xff] }
 0x133   :  { %8755 = vst [vmem:[#allocation96_spill] sm:$0xff] %v7948_v52  ;;  %8756 = vst [vmem:[#allocation97_spill] sm:$0xff] %v7951_v53  ;;  %v7957_v55 = vld [vmem:[%s7644_s6 + $0x1b8] sm:$0xff]  ;;  %v7960_v56 = vld [vmem:[%s7644_s6 + $0x1c0] sm:$0xff] }
 0x134   :  { %8757 = vst [vmem:[#allocation98_spill] sm:$0xff] %v7954_v54  ;;  %8758 = vst [vmem:[#allocation99_spill] sm:$0xff] %v7957_v55  ;;  %v7963_v57 = vld [vmem:[%s7644_s6 + $0x1c8] sm:$0xff]  ;;  %v7966_v58 = vld [vmem:[%s7644_s6 + $0x1d0] sm:$0xff] }
 0x135   :  { %8759 = vst [vmem:[#allocation100_spill] sm:$0xff] %v7960_v56  ;;  %8760 = vst [vmem:[#allocation101_spill] sm:$0xff] %v7963_v57  ;;  %v7969_v59 = vld [vmem:[%s7644_s6 + $0x1d8] sm:$0xff]  ;;  %v7972_v60 = vld [vmem:[%s7644_s6 + $0x1e0] sm:$0xff] }
 0x136   :  { %8761 = vst [vmem:[#allocation102_spill] sm:$0xff] %v7966_v58  ;;  %8762 = vst [vmem:[#allocation103_spill] sm:$0xff] %v7969_v59  ;;  %v7975_v61 = vld [vmem:[%s7644_s6 + $0x1e8] sm:$0xff]  ;;  %v7978_v62 = vld [vmem:[%s7644_s6 + $0x1f0] sm:$0xff] }
 0x137   :  { %8763 = vst [vmem:[#allocation104_spill] sm:$0xff] %v7972_v60  ;;  %8764 = vst [vmem:[#allocation105_spill] sm:$0xff] %v7975_v61  ;;  %v7981_v63 = vld [vmem:[%s7644_s6 + $0x1f8] sm:$0xff] }
 0x138   :  { %8765 = vst [vmem:[#allocation106_spill] sm:$0xff] %v7978_v62  ;;  %8766 = vst [vmem:[#allocation107_spill] sm:$0xff] %v7981_v63 }
 0x139   :  { %491 = vsyncadd [#allocation8 + $0x1], 8192  ;;  %s8767_s8 = sld [smem:[#allocation66_spill]]  ;;  %508 = sst [smem:[#allocation32]] %s7487_s0  ;;  %vm634_vm0 = vcmask 130048   ;;  %vm893_vm1 = vcmask 261120  }
 0x13a   :  { %s7497_s20 = smov [#allocation4]   ;;  %510 = sst [smem:[#allocation32 + $0x1]] %s7487_s0 }
 0x13b   :  { %s504_s23 = sshll.u32 %s7497_s20, 4  ;;  %512 = sst [smem:[#allocation32 + $0x2]] %s7484_s21  ;;  %s505_s23 = int_to_ptr.vmem [resolvable:$true] %s504_s23 }
 0x13c   :  { %514 = sst [smem:[#allocation32 + $0x3]] %s7479_s7  ;;  %s7498_s6 = smov [#allocation8 + $0x2]  }
 0x13d   :  { %516 = sst [smem:[#allocation32 + $0x4]] %s7483_s19  ;;  %s7499_s29 = smov [#allocation31]  }
 0x13e   :  { %518 = sst [smem:[#allocation32 + $0x5]] %s7493_s11  ;;  %s8768_s26 = sld [smem:[#allocation67_spill]] }
 0x13f   :  { %520 = sst [smem:[#allocation32 + $0x6]] %s7494_s16  ;;  %s7500_s1 = smov [#allocation5]  }
 0x140   :  { %522 = sst [smem:[#allocation32 + $0x7]] %s7479_s7  ;;  %s539_s12 = sshll.u32 %s7500_s1, 4  ;;  %s540_s12 = int_to_ptr.vmem [resolvable:$true] %s539_s12 }
 0x141   :  { %524 = sst [smem:[#allocation32 + $0x8]] %s7480_s10  ;;  %s7502_s25 = smov [#allocation33]  }
 0x142   :  { %526 = dma.general %s8767_s8, 2048, %s505_s23, %s7498_s6, %s7499_s29, [#allocation32], %s7785_s18, 0  }
 0x143   :  { %s8769_s28 = sld [smem:[#allocation68_spill]]  ;;  %543 = sst [smem:[#allocation34]] %s7487_s0 }
 0x144   :  { %545 = sst [smem:[#allocation34 + $0x1]] %s7487_s0  ;;  %s8770_s2 = sld [smem:[#allocation53_spill]] }
 0x145   :  { %547 = sst [smem:[#allocation34 + $0x2]] %s7484_s21  ;;  %s8771_s3 = sld [smem:[#allocation62_spill]] }
 0x146   :  { %549 = sst [smem:[#allocation34 + $0x3]] %s7479_s7  ;;  %s7501_s0 = smov [#allocation8 + $0x3]  }
 0x147   :  { %551 = sst [smem:[#allocation34 + $0x4]] %s7483_s19 }
 0x148   :  { %553 = sst [smem:[#allocation34 + $0x5]] %s7493_s11 }
 0x149   :  { %555 = sst [smem:[#allocation34 + $0x6]] %s7494_s16 }
 0x14a   :  { %557 = sst [smem:[#allocation34 + $0x7]] %s7479_s7 }
 0x14b   :  { %559 = sst [smem:[#allocation34 + $0x8]] %s7480_s10 }
 0x14c   :  { %561 = dma.general %s8768_s26, 2048, %s540_s12, %s7501_s0, %s7502_s25, [#allocation34], %s7785_s18, 0  }
 0x14d   :  { %v8006_v55 = vld [vmem:[%s8769_s28] sm:$0xff]  ;;  %v8009_v63 = vld [vmem:[%s8769_s28 + $0x8] sm:$0xff]  ;;  %v8012_v54 = vld [vmem:[%s8769_s28 + $0x10] sm:$0xff]  ;;  %s8776_s10 = sld [smem:[#allocation54_spill]]  ;;  %s8777_s19 = sld [smem:[#allocation61_spill]] }
 0x14e   :  { %8772 = vst [vmem:[#allocation108_spill] sm:$0xff] %v8006_v55  ;;  %8773 = vst [vmem:[#allocation109_spill] sm:$0xff] %v8009_v63  ;;  %v8015_v62 = vld [vmem:[%s8769_s28 + $0x18] sm:$0xff]  ;;  %v625_v53 = vld [vmem:[#allocation9] sm:$0xff]  ;;  %s8779_s21 = sld [smem:[#allocation63_spill]] }
 0x14f   :  { %8774 = vst [vmem:[#allocation110_spill] sm:$0xff] %v8012_v54  ;;  %8775 = vst [vmem:[#allocation111_spill] sm:$0xff] %v8015_v62  ;;  %v626_v61 = vld [vmem:[#allocation9 + $0x8] sm:$0xff]  ;;  %v623_v52 = vld [vmem:[%s8770_s2] sm:$0xff] }
 0x150   :  { %v6677_v39 = vpack.c.bf16 %v626_v61, %v625_v53  ;;  %6484 = vmatprep.mubr.msk.f32.mxu0 %vm634_vm0, %v623_v52  ;;  %v820_v60 = vld [vmem:[%s8771_s3 + $0x8] sm:$0xff]  ;;  %v819_v47 = vld [vmem:[%s8771_s3] sm:$0xff]  ;;  %v846_v46 = vld [vmem:[%s8771_s3 + $0xd8] sm:$0xff] }
 0x151   :  { %v828_v55 = vld [vmem:[%s8771_s3 + $0x48] sm:$0xff]  ;;  %v827_v51 = vld [vmem:[%s8771_s3 + $0x40] sm:$0xff]  ;;  %v834_v49 = vld [vmem:[%s8771_s3 + $0x78] sm:$0xff] }
 0x152   :  { %v6697_v63 = vpack.c.bf16 %v828_v55, %v820_v60  ;;  %v836_v54 = vld [vmem:[%s8771_s3 + $0x88] sm:$0xff]  ;;  %6678 = vmatprep.subr.bf16.mxu0 %v6677_v39  ;;  %v6699_v59 = vpack.c.bf16 %v827_v51, %v819_v47  ;;  %v835_v52 = vld [vmem:[%s8771_s3 + $0x80] sm:$0xff]  ;;  %v822_v55 = vld [vmem:[%s8771_s3 + $0x18] sm:$0xff]  ;;  %v8706_v47 = vmov 0.0  }
 0x153   :  { %v844_v62 = vld [vmem:[%s8771_s3 + $0xc8] sm:$0xff]  ;;  %6680 = vmatpush3.bf16.msra.mxu0 %v6677_v39  ;;  %v843_v61 = vld [vmem:[%s8771_s3 + $0xc0] sm:$0xff]  ;;  %v830_v60 = vld [vmem:[%s8771_s3 + $0x58] sm:$0xff] }
 0x154   :  { %v624_v38 = vld [vmem:[%s8770_s2 + $0x8] sm:$0xff]  ;;  %6698 = vmatprep.subr.bf16.mxu0 %v6697_v63  ;;  %v6701_v53 = vpack.c.bf16 %v844_v62, %v836_v54  ;;  %v6703_v39 = vpack.c.bf16 %v843_v61, %v835_v52  ;;  %v821_v51 = vld [vmem:[%s8771_s3 + $0x10] sm:$0xff]  ;;  %v6705_v54 = vpack.c.bf16 %v830_v60, %v822_v55  ;;  %v838_v63 = vld [vmem:[%s8771_s3 + $0x98] sm:$0xff] }
 0x155   :  { %v829_v62 = vld [vmem:[%s8771_s3 + $0x50] sm:$0xff]  ;;  %v8037_v50 = vld [vmem:[%s8776_s10] sm:$0xff]  ;;  %v826_v55 = vld [vmem:[%s8771_s3 + $0x38] sm:$0xff]  ;;  %v6709_v45 = vpack.c.bf16 %v846_v46, %v838_v63 }
 0x156   :  { %6485 = vmatmul.mubr.msk.f32.vlgmr.msra.gmra.mrb[0].mxu0 %vm634_vm0, %v624_v38  ;;  %v718_v37 = vld [vmem:[%s8777_s19] sm:$0xff]  ;;  %v719_v38 = vld [vmem:[%s8777_s19 + $0x8] sm:$0xff]  ;;  %v837_v52 = vld [vmem:[%s8771_s3 + $0x90] sm:$0xff]  ;;  %v6721_v63 = vpack.c.bf16 %v834_v49, %v826_v55 }
 0x157   :  { %6700 = vmatpush1.bf16.msra.mxu0 %v6699_v59  ;;  %964 = vmatprep.mubr.f32.mxu0 %v8706_v47  ;;  %v720_v59 = vld [vmem:[%s8777_s19 + $0x10] sm:$0xff]  ;;  %v6681_v58 = vpack.c.bf16 %v719_v38, %v718_v37  ;;  %v721_v47 = vld [vmem:[%s8777_s19 + $0x18] sm:$0xff]  ;;  %v722_v36 = vld [vmem:[%s8777_s19 + $0x20] sm:$0xff] }
 0x158   :  { %6702 = vmatprep.subr.bf16.mxu0 %v6701_v53  ;;  %v845_v61 = vld [vmem:[%s8771_s3 + $0xd0] sm:$0xff]  ;;  %v6707_v53 = vpack.c.bf16 %v829_v62, %v821_v51  ;;  %v6685_v60 = vpack.c.bf16 %v721_v47, %v720_v59  ;;  %v723_v57 = vld [vmem:[%s8777_s19 + $0x28] sm:$0xff]  ;;  %v8778_v51 = vmov 0.0   ;;  %v850_v62 = vld [vmem:[%s8771_s3 + $0xf8] sm:$0xff] }
 0x159   :  { %6682 = vmatprep.subr.bf16.mxu1 %v6681_v58  ;;  %v8050_v44 = vld [vmem:[%s8776_s10 + $0x8] sm:$0xff]  ;;  %v825_v37 = vld [vmem:[%s8771_s3 + $0x30] sm:$0xff]  ;;  %v6689_v47 = vpack.c.bf16 %v723_v57, %v722_v36  ;;  %v6711_v46 = vpack.c.bf16 %v845_v61, %v837_v52  ;;  %v6906_v59 = vld [vmem:[%s8779_s21 + $0x80] sm:$0xff]  }
 0x15a   :  { %6684 = vmatpush3.bf16.msra.mxu1 %v6681_v58  ;;  %v841_v58 = vld [vmem:[%s8771_s3 + $0xb0] sm:$0xff]  ;;  %v6907_v52 = vld [vmem:[%s8779_s21 + $0xc8] sm:$0xff]   ;;  %v725_v55 = vld [vmem:[%s8777_s19 + $0x38] sm:$0xff] }
 0x15b   :  { %6704 = vmatpush1.bf16.msra.mxu0 %v6703_v39  ;;  %v833_v39 = vld [vmem:[%s8771_s3 + $0x70] sm:$0xff]  ;;  %6686 = vmatprep.subr.bf16.mxu1 %v6685_v60  ;;  %v6908_v61 = vld [vmem:[%s8779_s21 + $0x88] sm:$0xff]  }
 0x15c   :  { %6706 = vmatprep.subr.bf16.mxu0 %v6705_v54  ;;  %v842_v54 = vld [vmem:[%s8771_s3 + $0xb8] sm:$0xff]  ;;  %v849_v38 = vld [vmem:[%s8771_s3 + $0xf0] sm:$0xff]  ;;  %v6723_v36 = vpack.c.bf16 %v833_v39, %v825_v37 }
 0x15d   :  { %v6725_v57 = vpack.c.bf16 %v850_v62, %v842_v54  ;;  %v6727_v49 = vpack.c.bf16 %v849_v38, %v841_v58  ;;  %v6909_v37 = vld [vmem:[%s8779_s21 + $0xd0] sm:$0xff]   ;;  %v6911_v62 = vld [vmem:[%s8779_s21 + $0xd8] sm:$0xff]   ;;  %v6913_v58 = vld [vmem:[%s8779_s21 + $0xe0] sm:$0xff]  }
 0x15e   :  { %5817 = vmatmul.mubr.msk.f32.vlgmr.msra.gmra.mrb[2].mxu0 %vm893_vm1, %v8037_v50  ;;  %6688 = vmatpush3.bf16.msra.mxu1 %v6685_v60  ;;  %v6910_v39 = vld [vmem:[%s8779_s21 + $0x90] sm:$0xff]   ;;  %v6914_v38 = vld [vmem:[%s8779_s21 + $0xa0] sm:$0xff]  }
 0x15f   :  { %6708 = vmatpush1.bf16.msra.mxu0 %v6707_v53  ;;  %970 = vmatprep.mubr.f32.mxu0 %v8778_v51  ;;  %v724_v53 = vld [vmem:[%s8777_s19 + $0x30] sm:$0xff] }
 0x160   :  { %6710 = vmatprep.subr.bf16.mxu0 %v6709_v45  ;;  %6690 = vmatprep.subr.bf16.mxu1 %v6689_v47  ;;  %v6905_v45 = vld [vmem:[%s8779_s21 + $0xc0] sm:$0xff]   ;;  %v6693_v60 = vpack.c.bf16 %v725_v55, %v724_v53 }
 0x162   :  { %5818 = vmatmul.mubr.msk.f32.gmra.mrb[4].mxu0 %vm893_vm1, %v8050_v44  ;;  %6692 = vmatpush3.bf16.msra.mxu1 %v6689_v47  ;;  %v824_v47 = vld [vmem:[%s8771_s3 + $0x28] sm:$0xff] }
 0x163   :  { %6712 = vmatpush1.bf16.msra.mxu0 %v6711_v46  ;;  %1041 = vmatprep.mubr.f32.mxu0 %v8778_v51  ;;  %v832_v46 = vld [vmem:[%s8771_s3 + $0x68] sm:$0xff] }
 0x164   :  { %6722 = vmatprep.subr.bf16.mxu0 %v6721_v63  ;;  %6694 = vmatprep.subr.bf16.mxu1 %v6693_v60  ;;  %v6713_v54 = vpack.c.bf16 %v832_v46, %v824_v47  ;;  %v6912_v63 = vld [vmem:[%s8779_s21 + $0x98] sm:$0xff]  }
 0x166   :  { %5819 = vmatmul.mubr.msk.f32.vlgmr.msra.gmra.mrb[6].mxu0 %vm893_vm1, %v8037_v50  ;;  %6696 = vmatpush3.bf16.msra.mxu1 %v6693_v60 }
 0x167   :  { %1047 = vmatprep.mubr.f32.mxu0 %v8778_v51  ;;  %6724 = vmatpush1.bf16.msra.mxu0 %v6723_v36  ;;  %v6915_v36 = vld [vmem:[%s8779_s21 + $0xe8] sm:$0xff]  }
 0x168   :  { %6726 = vmatprep.subr.bf16.mxu0 %v6725_v57  ;;  %6714 = vmatprep.subr.bf16.mxu1 %v6713_v54  ;;  %v6916_v57 = vld [vmem:[%s8779_s21 + $0xa8] sm:$0xff]  }
 0x16a   :  { %5820 = vmatmul.mubr.msk.f32.gmra.mrb[8].mxu0 %vm893_vm1, %v8050_v44 }
 0x16b   :  { %6728 = vmatpush1.bf16.msra.mxu0 %v6727_v49  ;;  %1195 = vmatprep.mubr.f32.mxu0 %v8778_v51  ;;  %v6918_v49 = vld [vmem:[%s8779_s21 + $0xb0] sm:$0xff]  }
 0x16c   :  { %6072 = vmatprep.subr.bf16.mxu0 %v6905_v45  ;;  %v6917_v45 = vld [vmem:[%s8779_s21 + $0xf0] sm:$0xff]  }
 0x16e   :  { %5823 = vmatmul.mubr.msk.f32.vlgmr.msra.gmra.mrb[10].mxu0 %vm893_vm1, %v8037_v50 }
 0x16f   :  { %1201 = vmatprep.mubr.f32.mxu0 %v8778_v51  ;;  %6073 = vmatpush3.bf16.msra.mxu0 %v6906_v59  ;;  %v6919_v59 = vld [vmem:[%s8779_s21 + $0xf8] sm:$0xff]  }
 0x170   :  { %6074 = vmatprep.subr.bf16.mxu0 %v6907_v52  ;;  %v6920_v52 = vld [vmem:[%s8779_s21 + $0xb8] sm:$0xff]  }
 0x172   :  { %5824 = vmatmul.mubr.msk.f32.gmra.mrb[12].mxu0 %vm893_vm1, %v8050_v44 }
 0x173   :  { %6075 = vmatpush3.bf16.msra.mxu0 %v6908_v61  ;;  %v6921_v61 = vld [vmem:[%s8779_s21 + $0x1c0] sm:$0xff]  }
 0x174   :  { %6076 = vmatprep.subr.bf16.mxu0 %v6909_v37 }
 0x177   :  { %6077 = vmatpush3.bf16.msra.mxu0 %v6910_v39 }
 0x178   :  { %6078 = vmatprep.subr.bf16.mxu0 %v6911_v62 }
 0x17b   :  { %6079 = vmatpush3.bf16.msra.mxu0 %v6912_v63 }
 0x17c   :  { %6080 = vmatprep.subr.bf16.mxu0 %v6913_v58 }
 0x17f   :  { %6081 = vmatpush3.bf16.msra.mxu0 %v6914_v38 }
 0x180   :  { %6082 = vmatprep.subr.bf16.mxu0 %v6915_v36 }
 0x183   :  { %6083 = vmatpush3.bf16.msra.mxu0 %v6916_v57 }
 0x184   :  { %6084 = vmatprep.subr.bf16.mxu0 %v6917_v45 }
 0x187   :  { %6085 = vmatpush3.bf16.msra.mxu0 %v6918_v49 }
 0x188   :  { %6086 = vmatprep.subr.bf16.mxu0 %v6919_v59 }
 0x18b   :  { %6087 = vmatpush3.bf16.msra.mxu0 %v6920_v52 }
 0x18c   :  { %6116 = vmatprep.subr.bf16.mxu0 %v6921_v61 }
 0x18d   :  { %610 = vsyncadd [#allocation8 + $0x4], 512  ;;  %s8780_s27 = sld [smem:[#allocation60_spill]]  ;;  %v853_v53 = vlaneseq  ;;  %v823_v46 = vld [vmem:[%s8771_s3 + $0x20] sm:$0xff]  ;;  %v840_v58 = vld [vmem:[%s8771_s3 + $0xa8] sm:$0xff]  ;;  %vm733_vm2 = vcmask 523264  }
 0x18e   :  { %v831_v54 = vld [vmem:[%s8771_s3 + $0x60] sm:$0xff]  ;;  %v848_v38 = vld [vmem:[%s8771_s3 + $0xe8] sm:$0xff]  ;;  %v8109_v49 = vld [vmem:[#allocation13] sm:$0xff]  ;;  %s8782_s13 = sld [smem:[#allocation55_spill]]  ;;  %s8783_s5 = sld [smem:[#allocation64_spill]]  ;;  %vm7504_vm3 = vmmov 0  }
 0x18f   :  { %v8097_v60 = vshrl.u32 %v853_v53, 7  ;;  %v6715_v45 = vpack.c.bf16 %v831_v54, %v823_v46  ;;  %v6717_v52 = vpack.c.bf16 %v848_v38, %v840_v58  ;;  %v839_v61 = vld [vmem:[%s8771_s3 + $0xa0] sm:$0xff]  ;;  %s8784_s30 = sld [smem:[#allocation65_spill]]  ;;  %s8787_s15 = sld [smem:[#allocation58_spill]] }
 0x190   :  { %v847_v53 = vld [vmem:[%s8771_s3 + $0xe0] sm:$0xff]  ;;  %s8785_s11 = sld [smem:[#allocation57_spill]]  ;;  %s7506_s16 = smov 32  }
 0x191   :  { %v8102_v62 = vsub.s32 0, %v8097_v60  ;;  %v8107_v36 = vsub.s32 1, %v8097_v60  ;;  %v6937_v58 = vld [vmem:[%s8779_s21 + $0x40] sm:$0xff]   ;;  %s8788_s18 = sld [smem:[#allocation69_spill]]  ;;  %s7507_s17 = smov [#allocation7]  }
 0x192   :  { %v1943_v21 = vld [vmem:[#allocation16 + $0xc0] sm:$0xff]  ;;  %s619_s22 = sshll.u32 %s7507_s17, 4  ;;  %s620_s22 = int_to_ptr.vmem [resolvable:$true] %s619_s22 }
 0x193   :  { %v5811_v55 = vld [vmem:[%s8780_s27] ss:$0 sm:$0xff] }
 0x197   :  { %s7391_s8 = scalar_lea.hbm %s8788_s18, 8192 }
 0x198   :  { %p7392_p12 = scmp.ne.s32.totalorder %s8788_s18, %s7391_s8  ;;  %p7395_p13 = scmp.lt.u32.totalorder %s7391_s8, %s8788_s18 }
 0x19a   :  { %p7397_p0 = pnand %p7395_p13, %p7392_p12 }
 0x229   :  { %v6486_v37 = vpop.f32.mrb[0].mxu0 }
 0x22a   :  { %v713_v39 = vadd.f32 %v6486_v37, %v5811_v55  ;;  %v707_v47 = vpop.f32.mrb[1].mxu0  ;;  %v856_v37 = vrot.slane %v8109_v49, %v8102_v62 }
 0x22b   :  { %v708_v63 = vadd.f32 %v5811_v55, %v707_v47  ;;  %v860_v55 = vrot.slane %v8109_v49, %v8107_v36  ;;  %v6719_v47 = vpack.c.bf16 %v847_v53, %v839_v61 }
 0x22c   :  { %v717_v59 = vmax.f32 %v713_v39, 0.0 }
 0x22d   :  { %v716_v57 = vmax.f32 %v708_v63, 0.0  ;;  %v8119_v63 = vsub.s32 2, %v8097_v60 }
 0x22f   :  { %6503 = vmatprep.mubr.msk.f32.mxu1 %vm733_vm2, %v716_v57  ;;  %v8123_v57 = vsub.s32 3, %v8097_v60 }
 0x230   :  { %6504 = vmatmul.mubr.msk.f32.vlgmr.msra.gmra.mrb[0].mxu1 %vm733_vm2, %v717_v59  ;;  %v6938_v59 = vld [vmem:[%s8779_s21] sm:$0xff]  }
 0x231   :  { %6716 = vmatpush1.bf16.msra.mxu1 %v6715_v45  ;;  %1118 = vmatprep.mubr.f32.mxu1 %v8778_v51  ;;  %v966_v46 = vpop.f32.mrb[2].mxu0 }
 0x232   :  { %6718 = vmatprep.subr.bf16.mxu1 %v6717_v52  ;;  %v967_v39 = vadd.f32 %v966_v46, %v856_v37  ;;  %v968_v54 = vpop.f32.mrb[3].mxu0  ;;  %v864_v52 = vrot.slane %v8109_v49, %v8119_v63  ;;  %v6939_v46 = vld [vmem:[%s8779_s21 + $0x48] sm:$0xff]  }
 0x233   :  { %v969_v38 = vadd.f32 %v968_v54, %v860_v55  ;;  %v868_v54 = vrot.slane %v8109_v49, %v8123_v57 }
 0x234   :  { %v1208_v45 = vmax.f32 %v967_v39, 0.0 }
 0x235   :  { %6720 = vmatpush1.bf16.msra.mxu1 %v6719_v47  ;;  %v972_v48 = vpop.f32.mrb[4].mxu0  ;;  %v1209_v35 = vmax.f32 %v969_v38, 0.0  ;;  %v6941_v38 = vld [vmem:[%s8779_s21 + $0x50] sm:$0xff]  }
 0x236   :  { %v973_v61 = vadd.f32 %v972_v48, %v856_v37  ;;  %v974_v53 = vpop.f32.mrb[5].mxu0  ;;  %6050 = vmatprep.subr.bf16.mxu1 %v6937_v58  ;;  %v6940_v37 = vld [vmem:[%s8779_s21 + $0x8] sm:$0xff]  }
 0x237   :  { %v975_v43 = vadd.f32 %v974_v53, %v860_v55  ;;  %v8138_v55 = vsub.s32 6, %v8097_v60 }
 0x238   :  { %5821 = vmatmul.mubr.msk.f32.vlgmr.msra.gmra.mrb[2].mxu1 %vm893_vm1, %v8037_v50  ;;  %v1216_v47 = vmax.f32 %v973_v61, 0.0 }
 0x239   :  { %v1217_v34 = vmax.f32 %v975_v43, 0.0  ;;  %1124 = vmatprep.mubr.f32.mxu1 %v8778_v51  ;;  %v1043_v48 = vpop.f32.mrb[6].mxu0  ;;  %6051 = vmatpush3.bf16.msra.mxu1 %v6938_v59  ;;  %8781 = vst [vmem:[#allocation112_spill] sm:$0xff] %v8138_v55  ;;  %v8142_v43 = vsub.s32 7, %v8097_v60 }
 0x23a   :  { %v8135_v39 = vpack.c.bf16 %v1216_v47, %v1208_v45  ;;  %v1044_v58 = vadd.f32 %v1043_v48, %v864_v52  ;;  %v1045_v42 = vpop.f32.mrb[7].mxu0  ;;  %6052 = vmatprep.subr.bf16.mxu1 %v6939_v46  ;;  %v6942_v45 = vld [vmem:[%s8779_s21 + $0x10] sm:$0xff]   ;;  %v880_v46 = vrot.slane %v8109_v49, %v8138_v55 }
 0x23b   :  { %v1353_v53 = vpack.c.bf16 %v1217_v34, %v1209_v35  ;;  %v1046_v50 = vadd.f32 %v1045_v42, %v868_v54  ;;  %v6943_v34 = vld [vmem:[%s8779_s21 + $0x58] sm:$0xff]  }
 0x23c   :  { %5822 = vmatmul.mubr.msk.f32.gmra.mrb[4].mxu1 %vm893_vm1, %v8050_v44  ;;  %v1210_v61 = vmax.f32 %v1044_v58, 0.0  ;;  %v884_v44 = vrot.slane %v8109_v49, %v8142_v43 }
 0x23d   :  { %v1049_v59 = vpop.f32.mrb[8].mxu0  ;;  %6053 = vmatpush3.bf16.msra.mxu1 %v6940_v37  ;;  %1783 = vmatprep.mubr.bf16.mxu1 %v1353_v53  ;;  %v1211_v35 = vmax.f32 %v1046_v50, 0.0  ;;  %v6922_v50 = vld [vmem:[%s8779_s21 + $0x180] sm:$0xff]  }
 0x23e   :  { %v1050_v47 = vadd.f32 %v1049_v59, %v864_v52  ;;  %v1051_v48 = vpop.f32.mrb[9].mxu0  ;;  %6054 = vmatprep.subr.bf16.mxu1 %v6941_v38  ;;  %v6944_v52 = vld [vmem:[%s8779_s21 + $0x18] sm:$0xff]   ;;  %v6945_v38 = vld [vmem:[%s8779_s21 + $0x60] sm:$0xff]  }
 0x23f   :  { %v1052_v42 = vadd.f32 %v1051_v48, %v868_v54  ;;  %v6923_v54 = vld [vmem:[%s8779_s21 + $0x1c8] sm:$0xff]  }
 0x240   :  { %v1218_v37 = vmax.f32 %v1050_v47, 0.0  ;;  %v6946_v47 = vld [vmem:[%s8779_s21 + $0x20] sm:$0xff]  }
 0x241   :  { %v1219_v33 = vmax.f32 %v1052_v42, 0.0  ;;  %v1197_v53 = vpop.f32.mrb[10].mxu0  ;;  %6055 = vmatpush3.bf16.msra.mxu1 %v6942_v45 }
 0x242   :  { %v1354_v58 = vpack.c.bf16 %v1218_v37, %v1210_v61  ;;  %v1198_v59 = vadd.f32 %v1197_v53, %v880_v46  ;;  %v1199_v41 = vpop.f32.mrb[11].mxu0  ;;  %6056 = vmatprep.subr.bf16.mxu1 %v6943_v34  ;;  %v6947_v34 = vld [vmem:[%s8779_s21 + $0x68] sm:$0xff]  }
 0x243   :  { %v1355_v32 = vpack.c.bf16 %v1219_v33, %v1211_v35  ;;  %v1200_v56 = vadd.f32 %v1199_v41, %v884_v44  ;;  %v6924_v37 = vld [vmem:[%s8779_s21 + $0x188] sm:$0xff]  }
 0x244   :  { %v1214_v45 = vmax.f32 %v1198_v59, 0.0  ;;  %v6926_v59 = vld [vmem:[%s8779_s21 + $0x190] sm:$0xff]  }
 0x245   :  { %1824 = vmatprep.mubr.bf16.mxu0 %v1355_v32  ;;  %v1203_v48 = vpop.f32.mrb[12].mxu0  ;;  %6057 = vmatpush3.bf16.msra.mxu1 %v6944_v52  ;;  %v1215_v33 = vmax.f32 %v1200_v56, 0.0  ;;  %v6925_v32 = vld [vmem:[%s8779_s21 + $0x1d0] sm:$0xff]   ;;  %v6948_v52 = vld [vmem:[%s8779_s21 + $0x28] sm:$0xff]  }
 0x246   :  { %1825 = vmatmul.mubr.bf16.vlgmr.msra.gmra.mrb[16].mxu0 %v1354_v58  ;;  %v1204_v42 = vadd.f32 %v1203_v48, %v880_v46  ;;  %v1205_v61 = vpop.f32.mrb[13].mxu0  ;;  %6058 = vmatprep.subr.bf16.mxu1 %v6945_v38  ;;  %v6949_v58 = vld [vmem:[%s8779_s21 + $0x70] sm:$0xff]   ;;  %v6929_v48 = vld [vmem:[%s8779_s21 + $0x1e0] sm:$0xff]  }
 0x247   :  { %6117 = vmatpush3.bf16.msra.mxu0 %v6922_v50  ;;  %v1206_v41 = vadd.f32 %v1205_v61, %v884_v44  ;;  %v6927_v44 = vld [vmem:[%s8779_s21 + $0x1d8] sm:$0xff]   ;;  %v6950_v38 = vld [vmem:[%s8779_s21 + $0x30] sm:$0xff]   ;;  %v6931_v61 = vld [vmem:[%s8779_s21 + $0x1e8] sm:$0xff]  }
 0x248   :  { %6118 = vmatprep.subr.bf16.mxu0 %v6923_v54  ;;  %v1222_v35 = vmax.f32 %v1204_v42, 0.0  ;;  %v6951_v50 = vld [vmem:[%s8779_s21 + $0x78] sm:$0xff]   ;;  %v6930_v42 = vld [vmem:[%s8779_s21 + $0x1a0] sm:$0xff]  }
 0x249   :  { %v1223_v53 = vmax.f32 %v1206_v41, 0.0  ;;  %6059 = vmatpush3.bf16.msra.mxu1 %v6946_v47  ;;  %v6928_v54 = vld [vmem:[%s8779_s21 + $0x198] sm:$0xff]   ;;  %v6933_v41 = vld [vmem:[%s8779_s21 + $0x1f0] sm:$0xff]  }
 0x24a   :  { %v8161_v46 = vpack.c.bf16 %v1222_v35, %v1214_v45  ;;  %6060 = vmatprep.subr.bf16.mxu1 %v6947_v34  ;;  %v6952_v47 = vld [vmem:[%s8779_s21 + $0x38] sm:$0xff]   ;;  %v6953_v45 = vld [vmem:[%s8779_s21 + $0x140] sm:$0xff]   ;;  %v6957_v35 = vld [vmem:[%s8779_s21 + $0x150] sm:$0xff]  }
 0x24b   :  { %6119 = vmatpush3.bf16.msra.mxu0 %v6924_v37  ;;  %v1359_v56 = vpack.c.bf16 %v1223_v53, %v1215_v33  ;;  %v6954_v34 = vld [vmem:[%s8779_s21 + $0x100] sm:$0xff]   ;;  %v6955_v37 = vld [vmem:[%s8779_s21 + $0x148] sm:$0xff]   ;;  %v6934_v53 = vld [vmem:[%s8779_s21 + $0x1b0] sm:$0xff]  }
 0x24c   :  { %6120 = vmatprep.subr.bf16.mxu0 %v6925_v32  ;;  %v6932_v33 = vld [vmem:[%s8779_s21 + $0x1a8] sm:$0xff]  }
 0x24d   :  { %1906 = vmatprep.mubr.bf16.mxu0 %v1359_v56  ;;  %6061 = vmatpush3.bf16.msra.mxu1 %v6948_v52  ;;  %v6956_v32 = vld [vmem:[%s8779_s21 + $0x108] sm:$0xff]   ;;  %v6935_v52 = vld [vmem:[%s8779_s21 + $0x1f8] sm:$0xff]   ;;  %v6958_v56 = vld [vmem:[%s8779_s21 + $0x110] sm:$0xff]  }
 0x24e   :  { %6062 = vmatprep.subr.bf16.mxu1 %v6949_v58  ;;  %v1922_v58 = vld [vmem:[#allocation16 + $0x18] sm:$0xff] }
 0x24f   :  { %6121 = vmatpush3.bf16.msra.mxu0 %v6926_v59  ;;  %v1930_v59 = vld [vmem:[#allocation16 + $0x58] sm:$0xff] }
 0x250   :  { %6122 = vmatprep.subr.bf16.mxu0 %v6927_v44  ;;  %v6959_v44 = vld [vmem:[%s8779_s21 + $0x158] sm:$0xff]  }
 0x251   :  { %6063 = vmatpush3.bf16.msra.mxu1 %v6950_v38  ;;  %v6936_v38 = vld [vmem:[%s8779_s21 + $0x1b8] sm:$0xff]  }
 0x252   :  { %6064 = vmatprep.subr.bf16.mxu1 %v6951_v50  ;;  %v6737_v50 = vpack.c.bf16 %v1930_v59, %v1922_v58  ;;  %v1950_v58 = vld [vmem:[#allocation16 + $0xf8] sm:$0xff]  ;;  %v8189_v59 = vld [vmem:[%s8782_s13] sm:$0xff] }
 0x253   :  { %6123 = vmatpush3.bf16.msra.mxu0 %v6928_v54  ;;  %v1929_v54 = vld [vmem:[#allocation16 + $0x50] sm:$0xff] }
 0x254   :  { %6124 = vmatprep.subr.bf16.mxu0 %v6929_v48  ;;  %v1938_v48 = vld [vmem:[#allocation16 + $0x98] sm:$0xff] }
 0x255   :  { %6065 = vmatpush3.bf16.msra.mxu1 %v6952_v47  ;;  %v1946_v47 = vld [vmem:[#allocation16 + $0xd8] sm:$0xff] }
 0x256   :  { %6094 = vmatprep.subr.bf16.mxu1 %v6953_v45 }
 0x257   :  { %6125 = vmatpush3.bf16.msra.mxu0 %v6930_v42  ;;  %v6741_v42 = vpack.c.bf16 %v1946_v47, %v1938_v48  ;;  %v6961_v48 = vld [vmem:[%s8779_s21 + $0x160] sm:$0xff]  }
 0x258   :  { %6126 = vmatprep.subr.bf16.mxu0 %v6931_v61  ;;  %1784 = vmatmul.mubr.bf16.vlgmr.msra.gmra.mrb[8].mxu1 %v8135_v39  ;;  %v1921_v39 = vld [vmem:[#allocation16 + $0x10] sm:$0xff]  ;;  %v6962_v47 = vld [vmem:[%s8779_s21 + $0x120] sm:$0xff]  }
 0x259   :  { %6095 = vmatpush3.bf16.msra.mxu1 %v6954_v34  ;;  %v6739_v45 = vpack.c.bf16 %v1929_v54, %v1921_v39  ;;  %v1937_v61 = vld [vmem:[#allocation16 + $0x90] sm:$0xff]  ;;  %v6960_v54 = vld [vmem:[%s8779_s21 + $0x118] sm:$0xff]  }
 0x25a   :  { %6096 = vmatprep.subr.bf16.mxu1 %v6955_v37  ;;  %v1945_v34 = vld [vmem:[#allocation16 + $0xd0] sm:$0xff]  ;;  %v1926_v37 = vld [vmem:[#allocation16 + $0x38] sm:$0xff] }
 0x25b   :  { %6127 = vmatpush3.bf16.msra.mxu0 %v6932_v33  ;;  %v1934_v33 = vld [vmem:[#allocation16 + $0x78] sm:$0xff] }
 0x25c   :  { %6128 = vmatprep.subr.bf16.mxu0 %v6933_v41  ;;  %v6743_v41 = vpack.c.bf16 %v1945_v34, %v1937_v61  ;;  %v6965_v61 = vld [vmem:[%s8779_s21 + $0x170] sm:$0xff]  }
 0x25d   :  { %6097 = vmatpush3.bf16.msra.mxu1 %v6956_v32  ;;  %v6753_v32 = vpack.c.bf16 %v1934_v33, %v1926_v37  ;;  %v6966_v34 = vld [vmem:[%s8779_s21 + $0x130] sm:$0xff]   ;;  %v6967_v37 = vld [vmem:[%s8779_s21 + $0x178] sm:$0xff]  }
 0x25e   :  { %6098 = vmatprep.subr.bf16.mxu1 %v6957_v35  ;;  %v1925_v35 = vld [vmem:[#allocation16 + $0x30] sm:$0xff]  ;;  %v6968_v33 = vld [vmem:[%s8779_s21 + $0x138] sm:$0xff]  }
 0x25f   :  { %6129 = vmatpush3.bf16.msra.mxu0 %v6934_v53  ;;  %v1933_v53 = vld [vmem:[#allocation16 + $0x70] sm:$0xff] }
 0x260   :  { %6130 = vmatprep.subr.bf16.mxu0 %v6935_v52  ;;  %v1942_v52 = vld [vmem:[#allocation16 + $0xb8] sm:$0xff] }
 0x261   :  { %6099 = vmatpush3.bf16.msra.mxu1 %v6958_v56  ;;  %v6755_v56 = vpack.c.bf16 %v1933_v53, %v1925_v35  ;;  %v6969_v53 = vld [vmem:[%s8783_s5 + $0xc0] sm:$0xff]  }
 0x262   :  { %6100 = vmatprep.subr.bf16.mxu1 %v6959_v44  ;;  %v6757_v44 = vpack.c.bf16 %v1950_v58, %v1942_v52  ;;  %v6970_v52 = vld [vmem:[%s8783_s5 + $0x80] sm:$0xff]   ;;  %v6971_v58 = vld [vmem:[%s8783_s5 + $0xc8] sm:$0xff]  }
 0x263   :  { %6131 = vmatpush3.bf16.msra.mxu0 %v6936_v38  ;;  %v1941_v38 = vld [vmem:[#allocation16 + $0xb0] sm:$0xff] }
 0x264   :  { %6738 = vmatprep.subr.bf16.mxu0 %v6737_v50  ;;  %v8195_v50 = vld [vmem:[%s8782_s13 + $0x8] sm:$0xff] }
 0x265   :  { %6101 = vmatpush3.bf16.msra.mxu1 %v6960_v54  ;;  %v6977_v54 = vld [vmem:[%s8783_s5 + $0xe0] sm:$0xff]  }
 0x266   :  { %1907 = vmatmul.mubr.bf16.vlgmr.msra.gmra.mrb[20].mxu0 %v8161_v46  ;;  %v1949_v46 = vld [vmem:[#allocation16 + $0xf0] sm:$0xff]  ;;  %6102 = vmatprep.subr.bf16.mxu1 %v6961_v48  ;;  %v6978_v48 = vld [vmem:[%s8783_s5 + $0xa0] sm:$0xff]  }
 0x267   :  { %6740 = vmatpush1.bf16.msra.mxu0 %v6739_v45  ;;  %2140 = vmatprep.mubr.f32.mxu0 %v8778_v51  ;;  %v6759_v39 = vpack.c.bf16 %v1949_v46, %v1941_v38  ;;  %v6963_v45 = vld [vmem:[%s8779_s21 + $0x168] sm:$0xff]   ;;  %v6974_v38 = vld [vmem:[%s8783_s5 + $0x90] sm:$0xff]   ;;  %v6975_v46 = vld [vmem:[%s8783_s5 + $0xd8] sm:$0xff]  }
 0x268   :  { %6742 = vmatprep.subr.bf16.mxu0 %v6741_v42  ;;  %v6964_v42 = vld [vmem:[%s8779_s21 + $0x128] sm:$0xff]  }
 0x269   :  { %6103 = vmatpush3.bf16.msra.mxu1 %v6962_v47  ;;  %v6979_v47 = vld [vmem:[%s8783_s5 + $0xe8] sm:$0xff]  }
 0x26a   :  { %6104 = vmatprep.subr.bf16.mxu1 %v6963_v45  ;;  %v6980_v45 = vld [vmem:[%s8783_s5 + $0xa8] sm:$0xff]  }
 0x26b   :  { %6744 = vmatpush1.bf16.msra.mxu0 %v6743_v41  ;;  %v1920_v41 = vld [vmem:[#allocation16 + $0x8] sm:$0xff] }
 0x26c   :  { %6754 = vmatprep.subr.bf16.mxu0 %v6753_v32  ;;  %v1928_v32 = vld [vmem:[#allocation16 + $0x48] sm:$0xff] }
 0x26d   :  { %6105 = vmatpush3.bf16.msra.mxu1 %v6964_v42  ;;  %v6729_v35 = vpack.c.bf16 %v1928_v32, %v1920_v41  ;;  %v6981_v42 = vld [vmem:[%s8783_s5 + $0xf0] sm:$0xff]  }
 0x26e   :  { %5892 = vmatmul.mubr.msk.f32.vlgmr.msra.gmra.mrb[14].mxu0 %vm893_vm1, %v8189_v59  ;;  %6106 = vmatprep.subr.bf16.mxu1 %v6965_v61  ;;  %v6982_v61 = vld [vmem:[%s8783_s5 + $0xb0] sm:$0xff]  }
 0x26f   :  { %2146 = vmatprep.mubr.f32.mxu0 %v8778_v51  ;;  %6756 = vmatpush1.bf16.msra.mxu0 %v6755_v56  ;;  %v6972_v56 = vld [vmem:[%s8783_s5 + $0x88] sm:$0xff]   ;;  %v5814_v41 = vld [vmem:[#allocation11] ss:$0 sm:$0xff] }
 0x270   :  { %6758 = vmatprep.subr.bf16.mxu0 %v6757_v44  ;;  %v6973_v44 = vld [vmem:[%s8783_s5 + $0xd0] sm:$0xff]  }
 0x271   :  { %6107 = vmatpush3.bf16.msra.mxu1 %v6966_v34  ;;  %v6983_v34 = vld [vmem:[%s8783_s5 + $0xf8] sm:$0xff]  }
 0x272   :  { %5893 = vmatmul.mubr.msk.f32.gmra.mrb[24].mxu0 %vm893_vm1, %v8195_v50  ;;  %6108 = vmatprep.subr.bf16.mxu1 %v6967_v37  ;;  %v6984_v37 = vld [vmem:[%s8783_s5 + $0xb8] sm:$0xff]  }
 0x273   :  { %6760 = vmatpush1.bf16.msra.mxu0 %v6759_v39  ;;  %2294 = vmatprep.mubr.f32.mxu0 %v8778_v51  ;;  %v6976_v39 = vld [vmem:[%s8783_s5 + $0x98] sm:$0xff]  }
 0x274   :  { %6160 = vmatprep.subr.bf16.mxu0 %v6969_v53 }
 0x275   :  { %6109 = vmatpush3.bf16.msra.mxu1 %v6968_v33  ;;  %v6985_v33 = vld [vmem:[%s8783_s5 + $0x1c0] sm:$0xff]  }
 0x276   :  { %5896 = vmatmul.mubr.msk.f32.vlgmr.msra.gmra.mrb[26].mxu0 %vm893_vm1, %v8189_v59  ;;  %6730 = vmatprep.subr.bf16.mxu1 %v6729_v35 }
 0x277   :  { %2300 = vmatprep.mubr.f32.mxu0 %v8778_v51  ;;  %6161 = vmatpush3.bf16.msra.mxu0 %v6970_v52 }
 0x278   :  { %6162 = vmatprep.subr.bf16.mxu0 %v6971_v58 }
 0x27a   :  { %5897 = vmatmul.mubr.msk.f32.gmra.mrb[28].mxu0 %vm893_vm1, %v8195_v50 }
 0x27b   :  { %6163 = vmatpush3.bf16.msra.mxu0 %v6972_v56  ;;  %v8232_v56 = vsub.s32 4, %v8097_v60 }
 0x27c   :  { %6164 = vmatprep.subr.bf16.mxu0 %v6973_v44 }
 0x27f   :  { %6165 = vmatpush3.bf16.msra.mxu0 %v6974_v38  ;;  %v8235_v38 = vsub.s32 5, %v8097_v60  ;;  %v1919_v60 = vld [vmem:[#allocation16] sm:$0xff] }
 0x280   :  { %6166 = vmatprep.subr.bf16.mxu0 %v6975_v46 }
 0x283   :  { %6167 = vmatpush3.bf16.msra.mxu0 %v6976_v39  ;;  %v872_v39 = vrot.slane %v8109_v49, %v8232_v56 }
 0x284   :  { %6168 = vmatprep.subr.bf16.mxu0 %v6977_v54 }
 0x287   :  { %6169 = vmatpush3.bf16.msra.mxu0 %v6978_v48  ;;  %v876_v48 = vrot.slane %v8109_v49, %v8235_v38  ;;  %v1935_v49 = vld [vmem:[#allocation16 + $0x80] sm:$0xff] }
 0x288   :  { %6170 = vmatprep.subr.bf16.mxu0 %v6979_v47 }
 0x28b   :  { %6171 = vmatpush3.bf16.msra.mxu0 %v6980_v45 }
 0x28c   :  { %6172 = vmatprep.subr.bf16.mxu0 %v6981_v42 }
 0x28f   :  { %6173 = vmatpush3.bf16.msra.mxu0 %v6982_v61 }
 0x290   :  { %6174 = vmatprep.subr.bf16.mxu0 %v6983_v34 }
 0x293   :  { %6175 = vmatpush3.bf16.msra.mxu0 %v6984_v37 }
 0x294   :  { %6204 = vmatprep.subr.bf16.mxu0 %v6985_v33 }
 0x303   :  { %v6505_v32 = vpop.f32.mrb[0].mxu1 }
 0x304   :  { %v812_v35 = vadd.f32 %v6505_v32, %v5814_v41  ;;  %v806_v53 = vpop.f32.mrb[1].mxu1 }
 0x305   :  { %v807_v52 = vadd.f32 %v5814_v41, %v806_v53 }
 0x306   :  { %v816_v58 = vmax.f32 %v812_v35, 0.0  ;;  %v1927_v35 = vld [vmem:[#allocation16 + $0x40] sm:$0xff] }
 0x307   :  { %v815_v44 = vmax.f32 %v807_v52, 0.0  ;;  %v6731_v22 = vpack.c.bf16 %v1927_v35, %v1919_v60  ;;  %v1947_v35 = vld [vmem:[#allocation16 + $0xe0] sm:$0xff] }
 0x309   :  { %v8237_v46 = vpack.c.bf16 %v816_v58, %v815_v44  ;;  %v1936_v58 = vld [vmem:[#allocation16 + $0x88] sm:$0xff] }
 0x30a   :  { %v1944_v44 = vld [vmem:[#allocation16 + $0xc8] sm:$0xff] }
 0x30b   :  { %v1120_v54 = vpop.f32.mrb[2].mxu1  ;;  %v6733_v30 = vpack.c.bf16 %v1944_v44, %v1936_v58  ;;  %v7005_v58 = vld [vmem:[%s8783_s5 + $0x48] sm:$0xff]  }
 0x30c   :  { %v1122_v47 = vpop.f32.mrb[3].mxu1  ;;  %v1121_v45 = vadd.f32 %v1120_v54, %v872_v39  ;;  %v1924_v54 = vld [vmem:[#allocation16 + $0x28] sm:$0xff] }
 0x30d   :  { %v1123_v42 = vadd.f32 %v1122_v47, %v876_v48  ;;  %v1932_v47 = vld [vmem:[#allocation16 + $0x68] sm:$0xff] }
 0x30e   :  { %v1212_v41 = vmax.f32 %v1121_v45, 0.0  ;;  %v6745_v45 = vpack.c.bf16 %v1932_v47, %v1924_v54  ;;  %v7006_v44 = vld [vmem:[%s8783_s5 + $0x8] sm:$0xff]  }
 0x30f   :  { %v1126_v61 = vpop.f32.mrb[4].mxu1  ;;  %v1213_v53 = vmax.f32 %v1123_v42, 0.0  ;;  %v1923_v42 = vld [vmem:[#allocation16 + $0x20] sm:$0xff] }
 0x310   :  { %v1127_v34 = vadd.f32 %v1126_v61, %v872_v39  ;;  %v1128_v37 = vpop.f32.mrb[5].mxu1  ;;  %v6735_v39 = vpack.c.bf16 %v1943_v21, %v1935_v49  ;;  %v1931_v61 = vld [vmem:[#allocation16 + $0x60] sm:$0xff]  ;;  %v7007_v49 = vld [vmem:[%s8783_s5 + $0x50] sm:$0xff]  }
 0x311   :  { %v1129_v33 = vadd.f32 %v1128_v37, %v876_v48  ;;  %v1940_v37 = vld [vmem:[#allocation16 + $0xa8] sm:$0xff] }
 0x312   :  { %v1220_v32 = vmax.f32 %v1127_v34, 0.0 }
 0x313   :  { %v1221_v52 = vmax.f32 %v1129_v33, 0.0  ;;  %v1948_v33 = vld [vmem:[#allocation16 + $0xe8] sm:$0xff] }
 0x314   :  { %v1356_v23 = vpack.c.bf16 %v1220_v32, %v1212_v41  ;;  %v6749_v21 = vpack.c.bf16 %v1948_v33, %v1940_v37 }
 0x315   :  { %v1357_v31 = vpack.c.bf16 %v1221_v52, %v1213_v53  ;;  %v7003_v53 = vld [vmem:[%s8783_s5 + $0x40] sm:$0xff]  }
 0x316   :  { %v7004_v52 = vld [vmem:[%s8783_s5] sm:$0xff]  }
 0x317   :  { %1865 = vmatprep.mubr.bf16.mxu1 %v1357_v31  ;;  %v6747_v31 = vpack.c.bf16 %v1931_v61, %v1923_v42 }
 0x318   :  { %1866 = vmatmul.mubr.bf16.vlgmr.msra.gmra.mrb[12].mxu1 %v1356_v23 }
 0x319   :  { %6732 = vmatpush1.bf16.msra.mxu1 %v6731_v22  ;;  %2063 = vmatprep.mubr.f32.mxu1 %v8778_v51  ;;  %v6088_v48 = vpop.f32.mrb[16].mxu0  ;;  %v1939_v22 = vld [vmem:[#allocation16 + $0xa0] sm:$0xff] }
 0x31a   :  { %6734 = vmatprep.subr.bf16.mxu1 %v6733_v30  ;;  %v6089_v34 = vpop.f32.mrb[17].mxu0  ;;  %v6751_v30 = vpack.c.bf16 %v1947_v35, %v1939_v22  ;;  %v5825_v22 = vld [vmem:[#allocation14] ss:$0 sm:$0xff] }
 0x31b   :  { %v6090_v41 = vadd.f32 %v6089_v34, %v6088_v48  ;;  %v6091_v32 = vpop.f32.mrb[18].mxu0 }
 0x31c   :  { %v6092_v60 = vpop.f32.mrb[19].mxu0 }
 0x31d   :  { %6736 = vmatpush1.bf16.msra.mxu1 %v6735_v39  ;;  %v6093_v23 = vadd.f32 %v6092_v60, %v6091_v32  ;;  %v8263_v32 = vld [vmem:[#allocation17] sm:$0xff] }
 0x31e   :  { %6746 = vmatprep.subr.bf16.mxu1 %v6745_v45  ;;  %v7008_v45 = vld [vmem:[%s8783_s5 + $0x10] sm:$0xff]  }
 0x320   :  { %5890 = vmatmul.mubr.msk.f32.vlgmr.msra.gmra.mrb[6].mxu1 %vm893_vm1, %v8189_v59 }
 0x321   :  { %2069 = vmatprep.mubr.f32.mxu1 %v8778_v51  ;;  %6748 = vmatpush1.bf16.msra.mxu1 %v6747_v31 }
 0x322   :  { %6750 = vmatprep.subr.bf16.mxu1 %v6749_v21  ;;  %v1968_v21 = vrot.slane %v8263_v32, %v8123_v57 }
 0x324   :  { %5891 = vmatmul.mubr.msk.f32.gmra.mrb[16].mxu1 %vm893_vm1, %v8195_v50 }
 0x325   :  { %6752 = vmatpush1.bf16.msra.mxu1 %v6751_v30  ;;  %2217 = vmatprep.mubr.f32.mxu1 %v8778_v51 }
 0x326   :  { %6138 = vmatprep.subr.bf16.mxu1 %v7003_v53 }
 0x328   :  { %5894 = vmatmul.mubr.msk.f32.vlgmr.msra.gmra.mrb[18].mxu1 %vm893_vm1, %v8189_v59 }
 0x329   :  { %2223 = vmatprep.mubr.f32.mxu1 %v8778_v51  ;;  %6139 = vmatpush3.bf16.msra.mxu1 %v7004_v52 }
 0x32a   :  { %6140 = vmatprep.subr.bf16.mxu1 %v7005_v58 }
 0x32b   :  { %v6066_v54 = vpop.f32.mrb[8].mxu1 }
 0x32c   :  { %5895 = vmatmul.mubr.msk.f32.gmra.mrb[20].mxu1 %vm893_vm1, %v8195_v50  ;;  %v6067_v47 = vpop.f32.mrb[9].mxu1  ;;  %v1964_v50 = vrot.slane %v8263_v32, %v8119_v63 }
 0x32d   :  { %v6068_v39 = vadd.f32 %v6067_v47, %v6066_v54  ;;  %v6069_v48 = vpop.f32.mrb[10].mxu1  ;;  %6141 = vmatpush3.bf16.msra.mxu1 %v7006_v44  ;;  %v1980_v54 = vrot.slane %v8263_v32, %v8138_v55 }
 0x32e   :  { %v6070_v42 = vpop.f32.mrb[11].mxu1  ;;  %6142 = vmatprep.subr.bf16.mxu1 %v7007_v49 }
 0x32f   :  { %v6071_v61 = vadd.f32 %v6070_v42, %v6069_v48  ;;  %v1786_v52 = vadd.f32 %v6068_v39, %v5825_v22  ;;  %v1984_v39 = vrot.slane %v8263_v32, %v8142_v43 }
 0x331   :  { %6143 = vmatpush3.bf16.msra.mxu1 %v7008_v45  ;;  %v1789_v58 = vadd.f32 %v6071_v61, %v5825_v22  ;;  %v8273_v42 = vadd.f32 %v6090_v41, %v1786_v52  ;;  %v6987_v41 = vld [vmem:[%s8783_s5 + $0x1c8] sm:$0xff]  }
 0x339   :  { %v6132_v59 = vpop.f32.mrb[20].mxu0 }
 0x33a   :  { %v6133_v34 = vpop.f32.mrb[21].mxu0 }
 0x33b   :  { %v8261_v37 = vadd.f32 %v6133_v34, %v6132_v59  ;;  %v6135_v33 = vpop.f32.mrb[22].mxu0  ;;  %v8275_v59 = vadd.f32 %v6093_v23, %v1789_v58 }
 0x33c   :  { %v6136_v60 = vpop.f32.mrb[23].mxu0 }
 0x33d   :  { %v8265_v31 = vadd.f32 %v6136_v60, %v6135_v33 }
 0x341   :  { %v2142_v35 = vpop.f32.mrb[14].mxu0 }
 0x342   :  { %v2143_v30 = vadd.f32 %v2142_v35, %v1964_v50  ;;  %v2144_v53 = vpop.f32.mrb[15].mxu0 }
 0x343   :  { %v2145_v44 = vadd.f32 %v2144_v53, %v1968_v21 }
 0x344   :  { %v2309_v47 = vmax.f32 %v2143_v30, 0.0  ;;  %v6986_v30 = vld [vmem:[%s8783_s5 + $0x180] sm:$0xff]  }
 0x345   :  { %v2148_v49 = vpop.f32.mrb[24].mxu0  ;;  %v2310_v34 = vmax.f32 %v2145_v44, 0.0  ;;  %v6988_v44 = vld [vmem:[%s8783_s5 + $0x188] sm:$0xff]  }
 0x346   :  { %v2149_v48 = vadd.f32 %v2148_v49, %v1964_v50  ;;  %v2150_v45 = vpop.f32.mrb[25].mxu0 }
 0x347   :  { %v2151_v33 = vadd.f32 %v2150_v45, %v1968_v21  ;;  %v6989_v45 = vld [vmem:[%s8783_s5 + $0x1d0] sm:$0xff]  }
 0x348   :  { %v2317_v61 = vmax.f32 %v2149_v48, 0.0 }
 0x349   :  { %v2318_v60 = vmax.f32 %v2151_v33, 0.0  ;;  %v2296_v22 = vpop.f32.mrb[26].mxu0 }
 0x34a   :  { %v2453_v35 = vpack.c.bf16 %v2317_v61, %v2309_v47  ;;  %v2297_v53 = vadd.f32 %v2296_v22, %v1980_v54  ;;  %v2298_v55 = vpop.f32.mrb[27].mxu0  ;;  %v6990_v61 = vld [vmem:[%s8783_s5 + $0x190] sm:$0xff]   ;;  %v6992_v22 = vld [vmem:[%s8783_s5 + $0x198] sm:$0xff]  }
 0x34b   :  { %v2454_v50 = vpack.c.bf16 %v2318_v60, %v2310_v34  ;;  %v2299_v49 = vadd.f32 %v2298_v55, %v1984_v39 }
 0x34c   :  { %v2313_v21 = vmax.f32 %v2297_v53, 0.0  ;;  %v6995_v53 = vld [vmem:[%s8783_s5 + $0x1e8] sm:$0xff]  }
 0x34d   :  { %2923 = vmatprep.mubr.bf16.mxu0 %v2454_v50  ;;  %v2302_v23 = vpop.f32.mrb[28].mxu0  ;;  %v2314_v48 = vmax.f32 %v2299_v49, 0.0  ;;  %v6996_v50 = vld [vmem:[%s8783_s5 + $0x1a8] sm:$0xff]   ;;  %v6998_v49 = vld [vmem:[%s8783_s5 + $0x1b0] sm:$0xff]  }
 0x34e   :  { %2924 = vmatmul.mubr.bf16.vlgmr.msra.gmra.mrb[32].mxu0 %v2453_v35  ;;  %v2303_v52 = vadd.f32 %v2302_v23, %v1980_v54  ;;  %v2304_v58 = vpop.f32.mrb[29].mxu0  ;;  %v6991_v54 = vld [vmem:[%s8783_s5 + $0x1d8] sm:$0xff]   ;;  %v6994_v35 = vld [vmem:[%s8783_s5 + $0x1a0] sm:$0xff]  }
 0x34f   :  { %6205 = vmatpush3.bf16.msra.mxu0 %v6986_v30  ;;  %v2305_v47 = vadd.f32 %v2304_v58, %v1984_v39  ;;  %v6993_v39 = vld [vmem:[%s8783_s5 + $0x1e0] sm:$0xff]   ;;  %v6997_v30 = vld [vmem:[%s8783_s5 + $0x1f0] sm:$0xff]   ;;  %v7000_v23 = vld [vmem:[%s8783_s5 + $0x1b8] sm:$0xff]  }
 0x350   :  { %6206 = vmatprep.subr.bf16.mxu0 %v6987_v41  ;;  %v2321_v34 = vmax.f32 %v2303_v52, 0.0  ;;  %v6999_v41 = vld [vmem:[%s8783_s5 + $0x1f8] sm:$0xff]   ;;  %v7001_v52 = vld [vmem:[#allocation20] sm:$0xff]  }
 0x351   :  { %v2322_v55 = vmax.f32 %v2305_v47, 0.0  ;;  %v7010_v58 = vld [vmem:[%s8783_s5 + $0x18] sm:$0xff]   ;;  %v7012_v47 = vld [vmem:[%s8783_s5 + $0x20] sm:$0xff]  }
 0x352   :  { %v2457_v33 = vpack.c.bf16 %v2321_v34, %v2313_v21  ;;  %v7009_v21 = vld [vmem:[%s8783_s5 + $0x58] sm:$0xff]   ;;  %v7014_v34 = vld [vmem:[%s8783_s5 + $0x28] sm:$0xff]  }
 0x353   :  { %6207 = vmatpush3.bf16.msra.mxu0 %v6988_v44  ;;  %v2458_v60 = vpack.c.bf16 %v2322_v55, %v2314_v48  ;;  %6144 = vmatprep.subr.bf16.mxu1 %v7009_v21  ;;  %v7011_v44 = vld [vmem:[%s8783_s5 + $0x60] sm:$0xff]   ;;  %v7002_v48 = vld [vmem:[#allocation20 + $0x8] sm:$0xff]  }
 0x354   :  { %6208 = vmatprep.subr.bf16.mxu0 %v6989_v45  ;;  %6145 = vmatpush3.bf16.msra.mxu1 %v7010_v58  ;;  %v7013_v45 = vld [vmem:[%s8783_s5 + $0x68] sm:$0xff]   ;;  %v7015_v55 = vld [vmem:[%s8783_s5 + $0x70] sm:$0xff]   ;;  %v1960_v58 = vrot.slane %v8263_v32, %v8107_v36 }
 0x355   :  { %3005 = vmatprep.mubr.bf16.mxu0 %v2458_v60  ;;  %6146 = vmatprep.subr.bf16.mxu1 %v7011_v44  ;;  %v7018_v60 = vld [vmem:[%s8783_s5 + $0x38] sm:$0xff]  }
 0x357   :  { %6209 = vmatpush3.bf16.msra.mxu0 %v6990_v61  ;;  %v7017_v61 = vld [vmem:[%s8783_s5 + $0x78] sm:$0xff]  }
 0x358   :  { %6210 = vmatprep.subr.bf16.mxu0 %v6991_v54  ;;  %6147 = vmatpush3.bf16.msra.mxu1 %v7012_v47  ;;  %v7019_v54 = vld [vmem:[%s8783_s5 + $0x140] sm:$0xff]  }
 0x359   :  { %6148 = vmatprep.subr.bf16.mxu1 %v7013_v45 }
 0x35b   :  { %6211 = vmatpush3.bf16.msra.mxu0 %v6992_v22 }
 0x35c   :  { %6212 = vmatprep.subr.bf16.mxu0 %v6993_v39  ;;  %6149 = vmatpush3.bf16.msra.mxu1 %v7014_v34 }
 0x35d   :  { %6150 = vmatprep.subr.bf16.mxu1 %v7015_v55 }
 0x35f   :  { %6213 = vmatpush3.bf16.msra.mxu0 %v6994_v35 }
 0x360   :  { %6214 = vmatprep.subr.bf16.mxu0 %v6995_v53 }
 0x363   :  { %6215 = vmatpush3.bf16.msra.mxu0 %v6996_v50 }
 0x364   :  { %6216 = vmatprep.subr.bf16.mxu0 %v6997_v30 }
 0x367   :  { %6217 = vmatpush3.bf16.msra.mxu0 %v6998_v49 }
 0x368   :  { %6218 = vmatprep.subr.bf16.mxu0 %v6999_v41 }
 0x36b   :  { %6219 = vmatpush3.bf16.msra.mxu0 %v7000_v23  ;;  %v1956_v23 = vrot.slane %v8263_v32, %v8102_v62 }
 0x36c   :  { %6526 = vmatprep.subr.bf16.mxu0 %v8778_v51 }
 0x36e   :  { %3006 = vmatmul.mubr.bf16.vlgmr.msra.gmra.mrb[36].mxu0 %v2457_v33  ;;  %v7016_v33 = vld [vmem:[%s8783_s5 + $0x30] sm:$0xff]  }
 0x36f   :  { %6527 = vmatpush3.bf16.msra.mxu0 %v7001_v52  ;;  %6530 = vmatprep.mubr.msk.bf16.mxu0 %vm7504_vm3, %v8778_v51 }
 0x370   :  { %6528 = vmatprep.subr.bf16.mxu0 %v8778_v51  ;;  %6151 = vmatpush3.bf16.msra.mxu1 %v7016_v33  ;;  %v1972_v33 = vrot.slane %v8263_v32, %v8232_v56 }
 0x371   :  { %6152 = vmatprep.subr.bf16.mxu1 %v7017_v61  ;;  %v1976_v61 = vrot.slane %v8263_v32, %v8235_v38 }
 0x373   :  { %6529 = vmatpush3.bf16.msra.mxu0 %v7002_v48 }
 0x374   :  { %6534 = vmatprep.subr.bf16.mxu0 %v8778_v51  ;;  %6153 = vmatpush3.bf16.msra.mxu1 %v7018_v60 }
 0x375   :  { %6182 = vmatprep.subr.bf16.mxu1 %v7019_v54 }
 0x376   :  { %6531 = vmatmul.mubr.msk.bf16.vlgmr.msra.gmra.mrb[40].mxu0 %vm893_vm1, %v8237_v46 }
 0x377   :  { %6550 = vmatprep.mubr.msk.bf16.mxu0 %vm7504_vm3, %v8778_v51 }
 0x3eb   :  { %v6110_v22 = vpop.f32.mrb[12].mxu1 }
 0x3ec   :  { %v6111_v39 = vpop.f32.mrb[13].mxu1 }
 0x3ed   :  { %v6112_v35 = vadd.f32 %v6111_v39, %v6110_v22  ;;  %v6113_v53 = vpop.f32.mrb[14].mxu1 }
 0x3ee   :  { %v6114_v50 = vpop.f32.mrb[15].mxu1 }
 0x3ef   :  { %v1868_v46 = vadd.f32 %v6112_v35, %v8273_v42  ;;  %v6115_v30 = vadd.f32 %v6114_v50, %v6113_v53 }
 0x3f1   :  { %v1909_v49 = vadd.f32 %v8261_v37, %v1868_v46  ;;  %v1871_v41 = vadd.f32 %v6115_v30, %v8275_v59 }
 0x3f3   :  { %v1912_v21 = vadd.f32 %v8265_v31, %v1871_v41  ;;  %v2065_v52 = vpop.f32.mrb[6].mxu1  ;;  %v1915_v48 = vmax.f32 %v1909_v49, 0.0  ;;  %v7020_v49 = vld [vmem:[%s8783_s5 + $0x100] sm:$0xff]  }
 0x3f4   :  { %v2067_v44 = vpop.f32.mrb[7].mxu1  ;;  %v2066_v45 = vadd.f32 %v2065_v52, %v1956_v23 }
 0x3f5   :  { %v1916_v47 = vmax.f32 %v1912_v21, 0.0  ;;  %v2068_v42 = vadd.f32 %v2067_v44, %v1960_v58  ;;  %v7022_v44 = vld [vmem:[%s8783_s5 + $0x108] sm:$0xff]  }
 0x3f6   :  { %v2307_v60 = vmax.f32 %v2066_v45, 0.0  ;;  %v7023_v45 = vld [vmem:[%s8783_s5 + $0x150] sm:$0xff]  }
 0x3f7   :  { %v8322_v34 = vpack.c.bf16 %v1916_v47, %v1915_v48  ;;  %v2071_v37 = vpop.f32.mrb[16].mxu1  ;;  %v2308_v22 = vmax.f32 %v2068_v42, 0.0 }
 0x3f8   :  { %v2072_v55 = vadd.f32 %v2071_v37, %v1956_v23  ;;  %v2073_v59 = vpop.f32.mrb[17].mxu1  ;;  %v7021_v23 = vld [vmem:[%s8783_s5 + $0x148] sm:$0xff]  }
 0x3f9   :  { %v2074_v31 = vadd.f32 %v2073_v59, %v1960_v58  ;;  %v7024_v59 = vld [vmem:[%s8783_s5 + $0x110] sm:$0xff]  }
 0x3fa   :  { %v2315_v54 = vmax.f32 %v2072_v55, 0.0 }
 0x3fb   :  { %v2316_v39 = vmax.f32 %v2074_v31, 0.0  ;;  %v2219_v35 = vpop.f32.mrb[18].mxu1 }
 0x3fc   :  { %v2451_v53 = vpack.c.bf16 %v2315_v54, %v2307_v60  ;;  %v2220_v50 = vadd.f32 %v2219_v35, %v1972_v33  ;;  %v2221_v46 = vpop.f32.mrb[19].mxu1  ;;  %v7026_v60 = vld [vmem:[%s8783_s5 + $0x118] sm:$0xff]   ;;  %v7028_v54 = vld [vmem:[%s8783_s5 + $0x120] sm:$0xff]   ;;  %v7031_v35 = vld [vmem:[%s8783_s5 + $0x170] sm:$0xff]  }
 0x3fd   :  { %v2452_v30 = vpack.c.bf16 %v2316_v39, %v2308_v22  ;;  %v2222_v41 = vadd.f32 %v2221_v46, %v1976_v61  ;;  %v7029_v22 = vld [vmem:[%s8783_s5 + $0x168] sm:$0xff]   ;;  %v7034_v46 = vld [vmem:[%s8783_s5 + $0x138] sm:$0xff]  }
 0x3fe   :  { %v2311_v52 = vmax.f32 %v2220_v50, 0.0  ;;  %v7030_v39 = vld [vmem:[%s8783_s5 + $0x128] sm:$0xff]   ;;  %v7033_v50 = vld [vmem:[%s8783_s5 + $0x178] sm:$0xff]  }
 0x3ff   :  { %2882 = vmatprep.mubr.bf16.mxu1 %v2452_v30  ;;  %v2225_v21 = vpop.f32.mrb[20].mxu1  ;;  %v2312_v48 = vmax.f32 %v2222_v41, 0.0  ;;  %v7035_v30 = vld [vmem:[#allocation22] sm:$0xff]  }
 0x400   :  { %2883 = vmatmul.mubr.bf16.vlgmr.msra.gmra.mrb[24].mxu1 %v2451_v53  ;;  %v2226_v32 = vadd.f32 %v2225_v21, %v1972_v33  ;;  %v2227_v58 = vpop.f32.mrb[21].mxu1  ;;  %v7025_v33 = vld [vmem:[%s8783_s5 + $0x158] sm:$0xff]   ;;  %v7032_v53 = vld [vmem:[%s8783_s5 + $0x130] sm:$0xff]  }
 0x401   :  { %6183 = vmatpush3.bf16.msra.mxu1 %v7020_v49  ;;  %v2228_v47 = vadd.f32 %v2227_v58, %v1976_v61  ;;  %v7027_v61 = vld [vmem:[%s8783_s5 + $0x160] sm:$0xff]  }
 0x402   :  { %6184 = vmatprep.subr.bf16.mxu1 %v7021_v23  ;;  %v2319_v42 = vmax.f32 %v2226_v32, 0.0  ;;  %v7036_v49 = vld [vmem:[#allocation22 + $0x8] sm:$0xff]   ;;  %v7037_v58 = vld [vmem:[#allocation22 + $0x10] sm:$0xff]  }
 0x403   :  { %v2320_v37 = vmax.f32 %v2228_v47, 0.0  ;;  %v7039_v47 = vld [vmem:[#allocation22 + $0x20] sm:$0xff]  }
 0x404   :  { %v2455_v55 = vpack.c.bf16 %v2319_v42, %v2311_v52  ;;  %v7041_v42 = vld [vmem:[#allocation22 + $0x30] sm:$0xff]  }
 0x405   :  { %6185 = vmatpush3.bf16.msra.mxu1 %v7022_v44  ;;  %v2456_v31 = vpack.c.bf16 %v2320_v37, %v2312_v48  ;;  %v7038_v48 = vld [vmem:[#allocation22 + $0x18] sm:$0xff]  }
 0x406   :  { %6186 = vmatprep.subr.bf16.mxu1 %v7023_v45  ;;  %v7040_v45 = vld [vmem:[#allocation22 + $0x28] sm:$0xff]   ;;  %v7042_v37 = vld [vmem:[#allocation22 + $0x38] sm:$0xff]  }
 0x407   :  { %2964 = vmatprep.mubr.bf16.mxu1 %v2456_v31 }
 0x409   :  { %6187 = vmatpush3.bf16.msra.mxu1 %v7024_v59 }
 0x40a   :  { %6188 = vmatprep.subr.bf16.mxu1 %v7025_v33 }
 0x40d   :  { %6189 = vmatpush3.bf16.msra.mxu1 %v7026_v60 }
 0x40e   :  { %6190 = vmatprep.subr.bf16.mxu1 %v7027_v61 }
 0x411   :  { %6191 = vmatpush3.bf16.msra.mxu1 %v7028_v54 }
 0x412   :  { %6192 = vmatprep.subr.bf16.mxu1 %v7029_v22 }
 0x415   :  { %6193 = vmatpush3.bf16.msra.mxu1 %v7030_v39 }
 0x416   :  { %6194 = vmatprep.subr.bf16.mxu1 %v7031_v35 }
 0x419   :  { %6195 = vmatpush3.bf16.msra.mxu1 %v7032_v53  ;;  %v7043_v53 = vld [vmem:[#allocation23] sm:$0xff]  }
 0x41a   :  { %6196 = vmatprep.subr.bf16.mxu1 %v7033_v50  ;;  %6535 = vmatpush3.bf16.msra.mxu0 %v7043_v53  ;;  %v7045_v50 = vld [vmem:[#allocation23 + $0x10] sm:$0xff]  }
 0x41b   :  { %6536 = vmatprep.subr.bf16.mxu0 %v8778_v51 }
 0x41d   :  { %6197 = vmatpush3.bf16.msra.mxu1 %v7034_v46  ;;  %v7046_v46 = vld [vmem:[#allocation23 + $0x18] sm:$0xff]  }
 0x41e   :  { %6506 = vmatprep.subr.bf16.mxu1 %v8778_v51 }
 0x420   :  { %2965 = vmatmul.mubr.bf16.vlgmr.msra.gmra.mrb[28].mxu1 %v2455_v55 }
 0x421   :  { %6507 = vmatpush3.bf16.msra.mxu1 %v7035_v30  ;;  %6522 = vmatprep.mubr.msk.bf16.mxu1 %vm7504_vm3, %v8778_v51  ;;  %v6176_v41 = vpop.f32.mrb[32].mxu0  ;;  %v7047_v30 = vld [vmem:[#allocation23 + $0x20] sm:$0xff]  }
 0x422   :  { %6508 = vmatprep.subr.bf16.mxu1 %v8778_v51  ;;  %v6177_v23 = vpop.f32.mrb[33].mxu0 }
 0x423   :  { %v8347_v21 = vadd.f32 %v6177_v23, %v6176_v41  ;;  %v6179_v52 = vpop.f32.mrb[34].mxu0  ;;  %v7049_v41 = vld [vmem:[#allocation23 + $0x30] sm:$0xff]  }
 0x424   :  { %v6180_v32 = vpop.f32.mrb[35].mxu0  ;;  %v3300_v23 = vld [vmem:[%s8784_s30] sm:$0xff] }
 0x425   :  { %6509 = vmatpush3.bf16.msra.mxu1 %v7036_v49  ;;  %v8349_v44 = vadd.f32 %v6180_v32, %v6179_v52  ;;  %v7048_v49 = vld [vmem:[#allocation23 + $0x28] sm:$0xff]   ;;  %v3301_v52 = vld [vmem:[%s8784_s30 + $0x8] sm:$0xff] }
 0x426   :  { %6510 = vmatprep.subr.bf16.mxu1 %v8778_v51  ;;  %v8377_v32 = vpack.c.bf16 %v3301_v52, %v3300_v23 }
 0x429   :  { %6511 = vmatpush3.bf16.msra.mxu1 %v7037_v58  ;;  %v8710_v58 = vmov 0.0|0.0  }
 0x42a   :  { %6512 = vmatprep.subr.bf16.mxu1 %v8778_v51 }
 0x42d   :  { %6513 = vmatpush3.bf16.msra.mxu1 %v7038_v48  ;;  %v7050_v48 = vld [vmem:[#allocation23 + $0x38] sm:$0xff]  }
 0x42e   :  { %6514 = vmatprep.subr.bf16.mxu1 %v8778_v51 }
 0x431   :  { %6515 = vmatpush3.bf16.msra.mxu1 %v7039_v47  ;;  %v3302_v47 = vld [vmem:[%s8784_s30 + $0x10] sm:$0xff] }
 0x432   :  { %6516 = vmatprep.subr.bf16.mxu1 %v8778_v51 }
 0x435   :  { %6517 = vmatpush3.bf16.msra.mxu1 %v7040_v45  ;;  %v3303_v45 = vld [vmem:[%s8784_s30 + $0x18] sm:$0xff] }
 0x436   :  { %6518 = vmatprep.subr.bf16.mxu1 %v8778_v51 }
 0x439   :  { %6519 = vmatpush3.bf16.msra.mxu1 %v7041_v42  ;;  %v8384_v42 = vpack.c.bf16 %v3303_v45, %v3302_v47 }
 0x43a   :  { %6520 = vmatprep.subr.bf16.mxu1 %v8778_v51 }
 0x43d   :  { %6521 = vmatpush3.bf16.msra.mxu1 %v7042_v37  ;;  %v3304_v37 = vld [vmem:[%s8785_s11] sm:$0x3] }
 0x43e   :  { %6761 = vmatprep.subr.bf16.mxu1 %v8710_v58 }
 0x440   :  { %6523 = vmatmul.mubr.bf16.vlgmr.msra.gmra.mrb[32].mxu1 %v8322_v34  ;;  %v7044_v34 = vld [vmem:[#allocation23 + $0x8] sm:$0xff]  }
 0x441   :  { %v6220_v55 = vpop.f32.mrb[36].mxu0  ;;  %6562 = vmatprep.mubr.msk.f32.mxu1 %vm7504_vm3, %v8778_v51  ;;  %6537 = vmatpush3.bf16.msra.mxu0 %v7044_v34 }
 0x442   :  { %v6221_v59 = vpop.f32.mrb[37].mxu0  ;;  %6538 = vmatprep.subr.bf16.mxu0 %v8778_v51  ;;  %6763 = vmatpush3.bf16.msra.mxu1 %v8377_v32 }
 0x443   :  { %v8360_v31 = vadd.f32 %v6221_v59, %v6220_v55  ;;  %v6223_v33 = vpop.f32.mrb[38].mxu0  ;;  %6764 = vmatprep.subr.bf16.mxu1 %v8710_v58  ;;  %v5898_v59 = vld [vmem:[#allocation19] ss:$0 sm:$0xff] }
 0x444   :  { %v6224_v60 = vpop.f32.mrb[39].mxu0 }
 0x445   :  { %v8362_v61 = vadd.f32 %v6224_v60, %v6223_v33  ;;  %6539 = vmatpush3.bf16.msra.mxu0 %v7045_v50 }
 0x446   :  { %6540 = vmatprep.subr.bf16.mxu0 %v8778_v51  ;;  %6766 = vmatpush3.bf16.msra.mxu1 %v8384_v42 }
 0x447   :  { %6767 = vmatprep.subr.bf16.mxu1 %v8710_v58 }
 0x449   :  { %v8364_v54 = vpop.f32.mrb[40].mxu0  ;;  %6541 = vmatpush3.bf16.msra.mxu0 %v7046_v46  ;;  %6563 = vmatmul.mubr.msk.f32.vlgmr.msra.gmra.mrb[22].mxu1 %vm893_vm1, %v3304_v37 }
 0x44a   :  { %v6532_v22 = vpop.f32.mrb[41].mxu0  ;;  %6542 = vmatprep.subr.bf16.mxu0 %v8778_v51  ;;  %6769 = vmatpush3.bf16.msra.mxu1 %v8377_v32 }
 0x44b   :  { %v8366_v39 = vpop.f32.mrb[42].mxu0  ;;  %6573 = vmatprep.mubr.msk.f32.mxu1 %vm7504_vm3, %v8778_v51  ;;  %6770 = vmatprep.subr.bf16.mxu1 %v8710_v58 }
 0x44c   :  { %v6533_v35 = vpop.f32.mrb[43].mxu0 }
 0x44d   :  { %6543 = vmatpush3.bf16.msra.mxu0 %v7047_v30 }
 0x44e   :  { %6544 = vmatprep.subr.bf16.mxu0 %v8778_v51  ;;  %6772 = vmatpush3.bf16.msra.mxu1 %v8384_v42 }
 0x44f   :  { %6779 = vmatprep.subr.bf16.mxu1 %v8710_v58 }
 0x451   :  { %6545 = vmatpush3.bf16.msra.mxu0 %v7048_v49 }
 0x452   :  { %6546 = vmatprep.subr.bf16.mxu0 %v8778_v51 }
 0x455   :  { %6547 = vmatpush3.bf16.msra.mxu0 %v7049_v41 }
 0x456   :  { %6548 = vmatprep.subr.bf16.mxu0 %v8778_v51 }
 0x459   :  { %6549 = vmatpush3.bf16.msra.mxu0 %v7050_v48 }
 0x45a   :  { %6773 = vmatprep.subr.bf16.mxu0 %v8710_v58 }
 0x4d3   :  { %v6154_v55 = vpop.f32.mrb[24].mxu1 }
 0x4d4   :  { %v6155_v33 = vpop.f32.mrb[25].mxu1 }
 0x4d5   :  { %v6156_v60 = vadd.f32 %v6155_v33, %v6154_v55  ;;  %v6157_v22 = vpop.f32.mrb[26].mxu1 }
 0x4d6   :  { %v6158_v35 = vpop.f32.mrb[27].mxu1 }
 0x4d7   :  { %v2885_v53 = vadd.f32 %v6156_v60, %v5898_v59  ;;  %v6159_v34 = vadd.f32 %v6158_v35, %v6157_v22 }
 0x4d9   :  { %v2888_v50 = vadd.f32 %v6159_v34, %v5898_v59  ;;  %v2926_v46 = vadd.f32 %v8347_v21, %v2885_v53  ;;  %v8786_v21 = vmov 0.0|0.0  }
 0x4db   :  { %v2929_v30 = vadd.f32 %v8349_v44, %v2888_v50 }
 0x4f3   :  { %v6198_v49 = vpop.f32.mrb[28].mxu1 }
 0x4f4   :  { %v6199_v41 = vpop.f32.mrb[29].mxu1 }
 0x4f5   :  { %v6200_v23 = vadd.f32 %v6199_v41, %v6198_v49  ;;  %v6201_v52 = vpop.f32.mrb[30].mxu1 }
 0x4f6   :  { %v6202_v48 = vpop.f32.mrb[31].mxu1 }
 0x4f7   :  { %v2967_v47 = vadd.f32 %v6200_v23, %v2926_v46  ;;  %v6203_v45 = vadd.f32 %v6202_v48, %v6201_v52  ;;  %v5982_v46 = vld [vmem:[#allocation25] ss:$0 sm:$0xff] }
 0x4f9   :  { %v3008_v37 = vadd.f32 %v8360_v31, %v2967_v47  ;;  %v2970_v58 = vadd.f32 %v6203_v45, %v2929_v30 }
 0x4fb   :  { %v3011_v55 = vadd.f32 %v8362_v61, %v2970_v58  ;;  %v3014_v33 = vmax.f32 %v3008_v37, 0.0 }
 0x4fd   :  { %v3015_v60 = vmax.f32 %v3011_v55, 0.0 }
 0x4ff   :  { %v3199_v22 = vpack.c.bf16 %v3015_v60, %v3014_v33 }
 0x501   :  { %6551 = vmatmul.mubr.bf16.vlgmr.msra.gmra.mrb[44].mxu0 %v3199_v22 }
 0x502   :  { %6775 = vmatpush3.bf16.msra.mxu0 %v8377_v32  ;;  %6584 = vmatprep.mubr.msk.f32.mxu0 %vm7504_vm3, %v8778_v51 }
 0x503   :  { %6776 = vmatprep.subr.bf16.mxu0 %v8786_v21 }
 0x506   :  { %6778 = vmatpush3.bf16.msra.mxu0 %v8384_v42 }
 0x507   :  { %6785 = vmatprep.subr.bf16.mxu0 %v8786_v21 }
 0x513   :  { %v3120_v44 = vpop.f32.mrb[32].mxu1 }
 0x514   :  { %v3177_v31 = vadd.f32 %v8364_v54, %v3120_v44  ;;  %v6524_v59 = vpop.f32.mrb[33].mxu1 }
 0x515   :  { %v3123_v61 = vpop.f32.mrb[34].mxu1 }
 0x516   :  { %v3180_v58 = vadd.f32 %v8366_v39, %v3123_v61  ;;  %v6525_v35 = vpop.f32.mrb[35].mxu1  ;;  %v3305_v39 = vld [vmem:[%s8787_s15] sm:$0x3] }
 0x51c   :  { %v3375_v53 = vpop.f32.mrb[22].mxu1 }
 0x51d   :  { %v6564_v34 = vpop.f32.mrb[23].mxu1 }
 0x5d4   :  { %v3282_v50 = vpop.f32.mrb[44].mxu0 }
 0x5d5   :  { %v3289_v30 = vadd.f32 %v3282_v50, %v3177_v31  ;;  %v6552_v49 = vpop.f32.mrb[45].mxu0 }
 0x5d6   :  { %v3285_v41 = vpop.f32.mrb[46].mxu0 }
 0x5d7   :  { %v8409_v23 = vadd.f32 %v5982_v46, %v3289_v30  ;;  %v3290_v52 = vadd.f32 %v3285_v41, %v3180_v58  ;;  %v6553_v48 = vpop.f32.mrb[47].mxu0 }
 0x5d9   :  { %v8411_v47 = vadd.f32 %v5982_v46, %v3290_v52  ;;  %v3379_v54 = vadd.f32 %v3375_v53, %v8409_v23 }
 0x5db   :  { %7051 = vtanh.f32 %v3379_v54  ;;  %v5984_v37 = vmul.f32 -1.442695, %v3379_v54 }
 0x5dd   :  { %7053 = vpow2.f32 %v5984_v37 }
 0x5e5   :  { %v7052_v45 = vpop.eup %7051 }
 0x5e6   :  { %3393 = vrot.lane.b32.xlu0 %v7052_v45, %s7479_s7 }
 0x5e7   :  { %v7054_v55 = vpop.eup %7053 }
 0x5e8   :  { %v3383_v33 = vadd.f32 1.0, %v7054_v55 }
 0x5ea   :  { %3388 = vrot.lane.b32.xlu0 %v3305_v39, %s7506_s16  ;;  %7055 = vrcp.f32 %v3383_v33 }
 0x5f4   :  { %v7056_v60 = vpop.eup %7055 }
 0x658   :  { %v3394_v22 = vpop.permute.xlu0 %3393 }
 0x659   :  { %v3396_v44 = vmul.f32 %v7056_v60, %v3394_v22 }
 0x65b   :  { %3398 = vrot.lane.b32.xlu1 %v3396_v44, %s7506_s16 }
 0x65c   :  { %v3389_v31 = vpop.permute.xlu0 %3388 }
 0x65d   :  { %v3391_v59 = vmul.f32 %v7056_v60, %v3389_v31 }
 0x6cd   :  { %v3399_v61 = vpop.permute.xlu1 %3398 }
 0x6ce   :  { %v3401_v58 = vadd.f32 %v3399_v61, %v3391_v59 }
 0x6d0   :  { %7057 = vtanh.f32 %v3401_v58  ;;  %v3495_v33 = vrot.slane %v3401_v58, 6 }
 0x6da   :  { %v7058_v35 = vpop.eup %7057 }
 0x6db   :  { %3404 = vrot.lane.b32.xlu1 %v7058_v35, %s7479_s7 }
 0x74d   :  { %v3405_v53 = vpop.permute.xlu1 %3404 }
 0x74e   :  { %v3407_v34 = vmul.f32 %v7056_v60, %v3405_v53 }
 0x750   :  { %3409 = vrot.lane.b32.xlu0 %v3407_v34, %s7506_s16 }
 0x7c2   :  { %v3410_v50 = vpop.permute.xlu0 %3409 }
 0x7c3   :  { %6574 = vmatmul.mubr.msk.f32.vlgmr.msra.gmra.mrb[36].mxu1 %vm893_vm1, %v3410_v50 }
 0x7c4   :  { %6781 = vmatpush3.bf16.msra.mxu1 %v8377_v32  ;;  %6595 = vmatprep.mubr.msk.f32.mxu1 %vm7504_vm3, %v8778_v51 }
 0x7c5   :  { %6782 = vmatprep.subr.bf16.mxu1 %v8786_v21 }
 0x7c8   :  { %6784 = vmatpush3.bf16.msra.mxu1 %v8384_v42 }
 0x7c9   :  { %6791 = vmatprep.subr.bf16.mxu1 %v8786_v21 }
 0x896   :  { %v3479_v46 = vpop.f32.mrb[36].mxu1 }
 0x897   :  { %v3484_v30 = vrot.slane %v3479_v46, 6  ;;  %v6575_v49 = vpop.f32.mrb[37].mxu1 }
 0x899   :  { %v3486_v41 = vadd.f32 %v3484_v30, %v8409_v23 }
 0x89b   :  { %7059 = vtanh.f32 %v3486_v41  ;;  %v5986_v48 = vmul.f32 -1.442695, %v3486_v41 }
 0x89d   :  { %7061 = vpow2.f32 %v5986_v48 }
 0x8a5   :  { %v7060_v52 = vpop.eup %7059 }
 0x8a6   :  { %3499 = vrot.lane.b32.xlu1 %v7060_v52, %s7479_s7 }
 0x8a7   :  { %v7062_v54 = vpop.eup %7061 }
 0x8a8   :  { %v3490_v45 = vadd.f32 1.0, %v7062_v54 }
 0x8aa   :  { %7063 = vrcp.f32 %v3490_v45 }
 0x8b4   :  { %v7064_v39 = vpop.eup %7063 }
 0x8b5   :  { %v3497_v60 = vmul.f32 %v7064_v39, %v3495_v33 }
 0x918   :  { %v3500_v37 = vpop.permute.xlu1 %3499 }
 0x919   :  { %v3502_v55 = vmul.f32 %v7064_v39, %v3500_v37 }
 0x91b   :  { %3504 = vrot.lane.b32.xlu0 %v3502_v55, %s7506_s16 }
 0x98d   :  { %v3505_v22 = vpop.permute.xlu0 %3504 }
 0x98e   :  { %v3507_v44 = vadd.f32 %v3505_v22, %v3497_v60 }
 0x990   :  { %7065 = vtanh.f32 %v3507_v44 }
 0x99a   :  { %v7066_v31 = vpop.eup %7065 }
 0x99b   :  { %3510 = vrot.lane.b32.xlu1 %v7066_v31, %s7479_s7 }
 0xa0d   :  { %v3511_v59 = vpop.permute.xlu1 %3510 }
 0xa0e   :  { %v3513_v61 = vmul.f32 %v7064_v39, %v3511_v59  ;;  %v3602_v39 = vrot.slane %v3507_v44, 6 }
 0xa10   :  { %v3515_v35 = vrot.slane %v3513_v61, 2 }
 0xa12   :  { %3516 = vrot.lane.b32.xlu0 %v3515_v35, %s7506_s16 }
 0xa84   :  { %v3517_v53 = vpop.permute.xlu0 %3516 }
 0xa85   :  { %6585 = vmatmul.mubr.msk.f32.vlgmr.msra.gmra.mrb[30].mxu0 %vm893_vm1, %v3517_v53 }
 0xa86   :  { %6787 = vmatpush3.bf16.msra.mxu0 %v8377_v32  ;;  %6606 = vmatprep.mubr.msk.f32.mxu0 %vm7504_vm3, %v8778_v51 }
 0xa87   :  { %6788 = vmatprep.subr.bf16.mxu0 %v8786_v21 }
 0xa8a   :  { %6790 = vmatpush3.bf16.msra.mxu0 %v8384_v42 }
 0xa8b   :  { %6797 = vmatprep.subr.bf16.mxu0 %v8786_v21 }
 0xb58   :  { %v3586_v58 = vpop.f32.mrb[30].mxu0 }
 0xb59   :  { %v3591_v34 = vrot.slane %v3586_v58, 4  ;;  %v6586_v50 = vpop.f32.mrb[31].mxu0 }
 0xb5b   :  { %v3593_v46 = vadd.f32 %v3591_v34, %v8409_v23 }
 0xb5d   :  { %7067 = vtanh.f32 %v3593_v46  ;;  %v5988_v49 = vmul.f32 -1.442695, %v3593_v46 }
 0xb5f   :  { %7069 = vpow2.f32 %v5988_v49 }
 0xb67   :  { %v7068_v30 = vpop.eup %7067 }
 0xb68   :  { %3606 = vrot.lane.b32.xlu1 %v7068_v30, %s7479_s7 }
 0xb69   :  { %v7070_v41 = vpop.eup %7069 }
 0xb6a   :  { %v3597_v52 = vadd.f32 1.0, %v7070_v41 }
 0xb6c   :  { %7071 = vrcp.f32 %v3597_v52 }
 0xb76   :  { %v7072_v48 = vpop.eup %7071 }
 0xb77   :  { %v3604_v37 = vmul.f32 %v7072_v48, %v3602_v39 }
 0xbda   :  { %v3607_v54 = vpop.permute.xlu1 %3606 }
 0xbdb   :  { %v3609_v45 = vmul.f32 %v7072_v48, %v3607_v54 }
 0xbdd   :  { %3611 = vrot.lane.b32.xlu0 %v3609_v45, %s7506_s16 }
 0xc4f   :  { %v3612_v55 = vpop.permute.xlu0 %3611 }
 0xc50   :  { %v3614_v33 = vadd.f32 %v3612_v55, %v3604_v37 }
 0xc52   :  { %7073 = vtanh.f32 %v3614_v33 }
 0xc5c   :  { %v7074_v60 = vpop.eup %7073 }
 0xc5d   :  { %3617 = vrot.lane.b32.xlu1 %v7074_v60, %s7479_s7 }
 0xccf   :  { %v3618_v22 = vpop.permute.xlu1 %3617 }
 0xcd0   :  { %v3620_v31 = vmul.f32 %v7072_v48, %v3618_v22  ;;  %v3709_v48 = vrot.slane %v3614_v33, 6 }
 0xcd2   :  { %v3622_v59 = vrot.slane %v3620_v31, 4 }
 0xcd4   :  { %3623 = vrot.lane.b32.xlu0 %v3622_v59, %s7506_s16 }
 0xd46   :  { %v3624_v61 = vpop.permute.xlu0 %3623 }
 0xd47   :  { %6596 = vmatmul.mubr.msk.f32.vlgmr.msra.gmra.mrb[38].mxu1 %vm893_vm1, %v3624_v61 }
 0xd48   :  { %6793 = vmatpush3.bf16.msra.mxu1 %v8377_v32  ;;  %6617 = vmatprep.mubr.msk.f32.mxu1 %vm7504_vm3, %v8778_v51 }
 0xd49   :  { %6794 = vmatprep.subr.bf16.mxu1 %v8786_v21 }
 0xd4c   :  { %6796 = vmatpush3.bf16.msra.mxu1 %v8384_v42 }
 0xd4d   :  { %6803 = vmatprep.subr.bf16.mxu1 %v8786_v21 }
 0xe1a   :  { %v3693_v44 = vpop.f32.mrb[38].mxu1 }
 0xe1b   :  { %v3698_v35 = vrot.slane %v3693_v44, 2  ;;  %v6597_v53 = vpop.f32.mrb[39].mxu1 }
 0xe1d   :  { %v3700_v58 = vadd.f32 %v3698_v35, %v8409_v23 }
 0xe1f   :  { %7075 = vtanh.f32 %v3700_v58  ;;  %v5990_v50 = vmul.f32 -1.442695, %v3700_v58 }
 0xe21   :  { %7077 = vpow2.f32 %v5990_v50 }
 0xe29   :  { %v7076_v34 = vpop.eup %7075 }
 0xe2a   :  { %3713 = vrot.lane.b32.xlu1 %v7076_v34, %s7479_s7 }
 0xe2b   :  { %v7078_v46 = vpop.eup %7077 }
 0xe2c   :  { %v3704_v30 = vadd.f32 1.0, %v7078_v46 }
 0xe2e   :  { %7079 = vrcp.f32 %v3704_v30 }
 0xe38   :  { %v7080_v49 = vpop.eup %7079 }
 0xe39   :  { %v3711_v54 = vmul.f32 %v7080_v49, %v3709_v48 }
 0xe9c   :  { %v3714_v41 = vpop.permute.xlu1 %3713 }
 0xe9d   :  { %v3716_v52 = vmul.f32 %v7080_v49, %v3714_v41 }
 0xe9f   :  { %3718 = vrot.lane.b32.xlu0 %v3716_v52, %s7506_s16 }
 0xf11   :  { %v3719_v45 = vpop.permute.xlu0 %3718 }
 0xf12   :  { %v3721_v39 = vadd.f32 %v3719_v45, %v3711_v54 }
 0xf14   :  { %7081 = vtanh.f32 %v3721_v39  ;;  %v3813_v46 = vrot.slane %v3721_v39, 6 }
 0xf1e   :  { %v7082_v23 = vpop.eup %7081 }
 0xf1f   :  { %3724 = vrot.lane.b32.xlu1 %v7082_v23, %s7479_s7 }
 0xf91   :  { %v3725_v37 = vpop.permute.xlu1 %3724 }
 0xf92   :  { %v3727_v55 = vmul.f32 %v7080_v49, %v3725_v37 }
 0xf94   :  { %v3729_v60 = vrot.slane %v3727_v55, 6 }
 0xf96   :  { %3730 = vrot.lane.b32.xlu0 %v3729_v60, %s7506_s16 }
0x1008   :  { %v3731_v22 = vpop.permute.xlu0 %3730 }
0x1009   :  { %6607 = vmatmul.mubr.msk.f32.vlgmr.msra.gmra.mrb[48].mxu0 %vm893_vm1, %v3731_v22 }
0x100a   :  { %6799 = vmatpush3.bf16.msra.mxu0 %v8377_v32  ;;  %6628 = vmatprep.mubr.msk.f32.mxu0 %vm7504_vm3, %v8778_v51 }
0x100b   :  { %6800 = vmatprep.subr.bf16.mxu0 %v8786_v21 }
0x100e   :  { %6802 = vmatpush3.bf16.msra.mxu0 %v8384_v42 }
0x10dc   :  { %v3800_v33 = vpop.f32.mrb[48].mxu0 }
0x10dd   :  { %v3804_v31 = vadd.f32 %v3800_v33, %v8411_v47  ;;  %v6608_v59 = vpop.f32.mrb[49].mxu0 }
0x10df   :  { %7083 = vtanh.f32 %v3804_v31  ;;  %v5992_v44 = vmul.f32 -1.442695, %v3804_v31 }
0x10e1   :  { %7085 = vpow2.f32 %v5992_v44 }
0x10e9   :  { %v7084_v61 = vpop.eup %7083 }
0x10ea   :  { %3817 = vrot.lane.b32.xlu1 %v7084_v61, %s7479_s7 }
0x10eb   :  { %v7086_v35 = vpop.eup %7085 }
0x10ec   :  { %v3808_v53 = vadd.f32 1.0, %v7086_v35 }
0x10ee   :  { %7087 = vrcp.f32 %v3808_v53 }
0x10f8   :  { %v7088_v58 = vpop.eup %7087 }
0x10f9   :  { %v3815_v30 = vmul.f32 %v7088_v58, %v3813_v46 }
0x115c   :  { %v3818_v34 = vpop.permute.xlu1 %3817 }
0x115d   :  { %v3820_v50 = vmul.f32 %v7088_v58, %v3818_v34 }
0x115f   :  { %3822 = vrot.lane.b32.xlu0 %v3820_v50, %s7506_s16 }
0x11d1   :  { %v3823_v49 = vpop.permute.xlu0 %3822 }
0x11d2   :  { %v3825_v41 = vadd.f32 %v3823_v49, %v3815_v30 }
0x11d4   :  { %7089 = vtanh.f32 %v3825_v41 }
0x11de   :  { %v7090_v52 = vpop.eup %7089 }
0x11df   :  { %3828 = vrot.lane.b32.xlu1 %v7090_v52, %s7479_s7 }
0x1251   :  { %v3829_v48 = vpop.permute.xlu1 %3828 }
0x1252   :  { %v3831_v54 = vmul.f32 %v7088_v58, %v3829_v48 }
0x1254   :  { %3833 = vrot.lane.b32.xlu0 %v3831_v54, %s7506_s16 }
0x12c6   :  { %v3834_v45 = vpop.permute.xlu0 %3833 }
0x12c7   :  { %6618 = vmatmul.mubr.msk.f32.vlgmr.msra.gmra.mrb[40].mxu1 %vm893_vm1, %v3834_v45 }
0x12c8   :  { %6805 = vmatpush3.bf16.msra.mxu1 %v8377_v32  ;;  %6639 = vmatprep.mubr.msk.f32.mxu1 %vm7504_vm3, %v8778_v51 }
0x12c9   :  { %6806 = vmatprep.subr.bf16.mxu1 %v8786_v21 }
0x12cc   :  { %6808 = vmatpush3.bf16.msra.mxu1 %v8384_v42  ;;  %v3919_v42 = vrot.slane %v3825_v41, 6 }
0x139a   :  { %v3903_v39 = vpop.f32.mrb[40].mxu1 }
0x139b   :  { %v3908_v23 = vrot.slane %v3903_v39, 6  ;;  %v6619_v37 = vpop.f32.mrb[41].mxu1 }
0x139d   :  { %v3910_v55 = vadd.f32 %v3908_v23, %v8411_v47 }
0x139f   :  { %7091 = vtanh.f32 %v3910_v55  ;;  %v5994_v22 = vmul.f32 -1.442695, %v3910_v55 }
0x13a1   :  { %7093 = vpow2.f32 %v5994_v22 }
0x13a9   :  { %v7092_v60 = vpop.eup %7091 }
0x13aa   :  { %3923 = vrot.lane.b32.xlu1 %v7092_v60, %s7479_s7 }
0x13ab   :  { %v7094_v33 = vpop.eup %7093 }
0x13ac   :  { %v3914_v32 = vadd.f32 1.0, %v7094_v33 }
0x13ae   :  { %7095 = vrcp.f32 %v3914_v32 }
0x13b8   :  { %v7096_v31 = vpop.eup %7095 }
0x13b9   :  { %v3921_v44 = vmul.f32 %v7096_v31, %v3919_v42 }
0x141c   :  { %v3924_v59 = vpop.permute.xlu1 %3923 }
0x141d   :  { %v3926_v61 = vmul.f32 %v7096_v31, %v3924_v59 }
0x141f   :  { %3928 = vrot.lane.b32.xlu0 %v3926_v61, %s7506_s16 }
0x1491   :  { %v3929_v35 = vpop.permute.xlu0 %3928 }
0x1492   :  { %v3931_v53 = vadd.f32 %v3929_v35, %v3921_v44 }
0x1494   :  { %7097 = vtanh.f32 %v3931_v53  ;;  %v4026_v22 = vrot.slane %v3931_v53, 6 }
0x149e   :  { %v7098_v58 = vpop.eup %7097 }
0x149f   :  { %3934 = vrot.lane.b32.xlu1 %v7098_v58, %s7479_s7 }
0x1511   :  { %v3935_v34 = vpop.permute.xlu1 %3934 }
0x1512   :  { %v3937_v50 = vmul.f32 %v7096_v31, %v3935_v34 }
0x1514   :  { %v3939_v46 = vrot.slane %v3937_v50, 2 }
0x1516   :  { %3940 = vrot.lane.b32.xlu0 %v3939_v46, %s7506_s16 }
0x1588   :  { %v3941_v30 = vpop.permute.xlu0 %3940 }
0x1589   :  { %6629 = vmatmul.mubr.msk.f32.vlgmr.msra.gmra.mrb[50].mxu0 %vm893_vm1, %v3941_v30 }
0x165c   :  { %v4010_v49 = vpop.f32.mrb[50].mxu0 }
0x165d   :  { %v4015_v52 = vrot.slane %v4010_v49, 4  ;;  %v6630_v48 = vpop.f32.mrb[51].mxu0 }
0x165f   :  { %v4017_v41 = vadd.f32 %v4015_v52, %v8411_v47 }
0x1661   :  { %7099 = vtanh.f32 %v4017_v41  ;;  %v5996_v45 = vmul.f32 -1.442695, %v4017_v41 }
0x1663   :  { %7101 = vpow2.f32 %v5996_v45 }
0x166b   :  { %v7100_v54 = vpop.eup %7099 }
0x166c   :  { %4030 = vrot.lane.b32.xlu1 %v7100_v54, %s7479_s7 }
0x166d   :  { %v7102_v39 = vpop.eup %7101 }
0x166e   :  { %v4021_v23 = vadd.f32 1.0, %v7102_v39 }
0x1670   :  { %7103 = vrcp.f32 %v4021_v23 }
0x167a   :  { %v7104_v37 = vpop.eup %7103 }
0x167b   :  { %v4028_v33 = vmul.f32 %v7104_v37, %v4026_v22 }
0x16de   :  { %v4031_v55 = vpop.permute.xlu1 %4030 }
0x16df   :  { %v4033_v60 = vmul.f32 %v7104_v37, %v4031_v55 }
0x16e1   :  { %4035 = vrot.lane.b32.xlu0 %v4033_v60, %s7506_s16 }
0x1753   :  { %v4036_v32 = vpop.permute.xlu0 %4035 }
0x1754   :  { %v4038_v31 = vadd.f32 %v4036_v32, %v4028_v33 }
0x1756   :  { %7105 = vtanh.f32 %v4038_v31  ;;  %v4133_v45 = vrot.slane %v4038_v31, 6 }
0x1760   :  { %v7106_v59 = vpop.eup %7105 }
0x1761   :  { %4041 = vrot.lane.b32.xlu1 %v7106_v59, %s7479_s7 }
0x17d3   :  { %v4042_v61 = vpop.permute.xlu1 %4041 }
0x17d4   :  { %v4044_v42 = vmul.f32 %v7104_v37, %v4042_v61 }
0x17d6   :  { %v4046_v44 = vrot.slane %v4044_v42, 4 }
0x17d8   :  { %4047 = vrot.lane.b32.xlu0 %v4046_v44, %s7506_s16 }
0x184a   :  { %v4048_v35 = vpop.permute.xlu0 %4047 }
0x184b   :  { %6640 = vmatmul.mubr.msk.f32.vlgmr.msra.gmra.mrb[42].mxu1 %vm893_vm1, %v4048_v35 }
0x191e   :  { %v4117_v58 = vpop.f32.mrb[42].mxu1 }
0x191f   :  { %v4122_v34 = vrot.slane %v4117_v58, 2  ;;  %v6641_v50 = vpop.f32.mrb[43].mxu1 }
0x1921   :  { %v4124_v53 = vadd.f32 %v4122_v34, %v8411_v47 }
0x1923   :  { %7107 = vtanh.f32 %v4124_v53  ;;  %v5998_v30 = vmul.f32 -1.442695, %v4124_v53 }
0x1925   :  { %7109 = vpow2.f32 %v5998_v30 }
0x192d   :  { %v7108_v46 = vpop.eup %7107 }
0x192e   :  { %4137 = vrot.lane.b32.xlu1 %v7108_v46, %s7479_s7 }
0x192f   :  { %v7110_v49 = vpop.eup %7109 }
0x1930   :  { %v4128_v52 = vadd.f32 1.0, %v7110_v49 }
0x1932   :  { %7111 = vrcp.f32 %v4128_v52 }
0x193c   :  { %v7112_v48 = vpop.eup %7111 }
0x193d   :  { %v4135_v39 = vmul.f32 %v7112_v48, %v4133_v45 }
0x19a0   :  { %v4138_v41 = vpop.permute.xlu1 %4137 }
0x19a1   :  { %v4140_v54 = vmul.f32 %v7112_v48, %v4138_v41 }
0x19a3   :  { %4142 = vrot.lane.b32.xlu0 %v4140_v54, %s7506_s16 }
0x1a15   :  { %v4143_v47 = vpop.permute.xlu0 %4142 }
0x1a16   :  { %v4145_v23 = vadd.f32 %v4143_v47, %v4135_v39 }
0x1a17   :  { %7400 = shalt.err (!%p7397_p0)  }
0x1a18   :  { %s7401_s20 = scalar_lea.vmem %s620_s22, 8192  ;;  %p7406_p2 = scmp.lt.s32.totalorder %s620_s22, %s620_s22 }
0x1a19   :  { %p7402_p1 = scmp.ne.s32.totalorder %s620_s22, %s7401_s20  ;;  %p7407_p3 = scmp.lt.s32.totalorder %s7401_s20, %s7401_s20 }
0x1a1b   :  { %p7408_p4 = por %p7407_p3, %p7406_p2 }
0x1a1d   :  { %p7409_p5 = pnand %p7408_p4, %p7402_p1 }
0x1a1f   :  { %7412 = shalt.err (!%p7409_p5)  }
0x1a20   :  { %622 = dma.hbm_to_vmem [thread:$0]  %s8788_s18, 8192, %s620_s22, [#allocation8 + $0x5]  ;;  %7113 = vtanh.f32 %v4145_v23 }
0x1a2a   :  { %v7114_v37 = vpop.eup %7113 }
0x1a2b   :  { %4148 = vrot.lane.b32.xlu1 %v7114_v37, %s7479_s7 }
0x1a9d   :  { %v4149_v55 = vpop.permute.xlu1 %4148 }
0x1a9e   :  { %v8493_v60 = vmul.f32 %v7112_v48, %v4149_v55 }
0x1a9f   :  { %7427 = dma.done.wait [#allocation8], 3072 }
0x1aa0   :  { %7428 = vsyncadd [#allocation8], 4294964224 }
0x1aa1   :  { %7429 = dma.done.wait [#allocation8 + $0x1], 8192 }
0x1aa2   :  { %7430 = vsyncadd [#allocation8 + $0x1], 4294959104 }
0x1aa3   :  { %7431 = dma.done.wait [#allocation8 + $0x2], 2048 }
0x1aa4   :  { %7432 = vsyncadd [#allocation8 + $0x2], 4294965248 }
0x1aa5   :  { %7433 = dma.done.wait [#allocation8 + $0x3], 2048 }
0x1aa6   :  { %7434 = vsyncadd [#allocation8 + $0x3], 4294965248 }
0x1aa7   :  { %7435 = dma.done.wait [#allocation8 + $0x4], 512 }
0x1aa8   :  { %7436 = vsyncadd [#allocation8 + $0x4], 4294966784 }
0x1aa9   :  { %7437 = dma.done.wait [#allocation8 + $0x5], 8192 }
0x1aaa   :  { %7438 = vsyncadd [#allocation8 + $0x5], 4294959104  ;;  %v7508_v22 = vmov 0   ;;  %s8789_s23 = sld [smem:[#allocation56_spill]]  ;;  %v4174_v33 = vld [vmem:[#allocation2 + $0x8] sm:$0xff]  ;;  %v4173_v32 = vld [vmem:[#allocation2] sm:$0xff] }
0x1aab   :  { %4276 = vmatprep.mubr.bf16.mxu1 %v7508_v22  ;;  %4358 = vmatprep.mubr.bf16.mxu0 %v7508_v22  ;;  %v4182_v31 = vld [vmem:[#allocation2 + $0x48] sm:$0xff]  ;;  %v4181_v59 = vld [vmem:[#allocation2 + $0x40] sm:$0xff]  ;;  %v4176_v53 = vld [vmem:[#allocation2 + $0x18] sm:$0xff]  ;;  %vm4240_vm4 = vcmask 392192   ;;  %s8827_s7 = sld [smem:[#allocation70_spill]]  ;;  %s8830_s6 = sld [smem:[#allocation59_spill]] }
0x1aac   :  { %4244 = vmatprep.subr.bf16.mxu1 %v4174_v33  ;;  %v4190_v61 = vld [vmem:[#allocation2 + $0x88] sm:$0xff]  ;;  %v4177_v44 = vld [vmem:[#allocation2 + $0x20] sm:$0xff]  ;;  %v4175_v49 = vld [vmem:[#allocation2 + $0x10] sm:$0xff]  ;;  %vm5058_vm5 = vcmask 1043456   ;;  %vm5054_vm6 = vcmask 64512   ;;  %s8833_s29 = sld [smem:[#allocation71_spill]] }
0x1aad   :  { %4245 = vmatpush1.bf16.msra.mxu1 %v4173_v32  ;;  %v4178_v42 = vld [vmem:[#allocation2 + $0x28] sm:$0xff]  ;;  %v4189_v34 = vld [vmem:[#allocation2 + $0x80] sm:$0xff]  ;;  %v4184_v52 = vld [vmem:[#allocation2 + $0x58] sm:$0xff]  ;;  %vm5677_vm7 = vcmask 107616   ;;  %vm5659_vm8 = vcmask 91168   ;;  %vm5646_vm9 = vcmask 25600  }
0x1aae   :  { %4246 = vmatprep.subr.bf16.mxu1 %v4182_v31  ;;  %4326 = vmatprep.subr.bf16.mxu0 %v4178_v42  ;;  %v4186_v35 = vld [vmem:[#allocation2 + $0x68] sm:$0xff]  ;;  %v4185_v50 = vld [vmem:[#allocation2 + $0x60] sm:$0xff]  ;;  %v4183_v41 = vld [vmem:[#allocation2 + $0x50] sm:$0xff]  ;;  %vm5670_vm10 = vcmask 58368   ;;  %vm5688_vm11 = vcmask 9216   ;;  %vm5695_vm12 = vcmask 31744  }
0x1aaf   :  { %4327 = vmatpush1.bf16.msra.mxu0 %v4177_v44  ;;  %v4194_v46 = vld [vmem:[#allocation2 + $0xa8] sm:$0xff]  ;;  %v4193_v48 = vld [vmem:[#allocation2 + $0xa0] sm:$0xff]  ;;  %v4192_v54 = vld [vmem:[#allocation2 + $0x98] sm:$0xff]  ;;  %vm5697_vm13 = vcmask 97280   ;;  %vm5699_vm14 = vcmask 107520  }
0x1ab0   :  { %v4172_v58 = vld [vmem:[%s8789_s23] sm:$0x3]  ;;  %4328 = vmatprep.subr.bf16.mxu0 %v4186_v35  ;;  %v4191_v45 = vld [vmem:[#allocation2 + $0x90] sm:$0xff]  ;;  %v4180_v39 = vld [vmem:[#allocation2 + $0x38] sm:$0xff] }
0x1ab1   :  { %4247 = vmatpush1.bf16.msra.mxu1 %v4181_v59  ;;  %v4197_v30 = vpack.c.bf16 %v4172_v58, %v4172_v58  ;;  %v4179_v47 = vld [vmem:[#allocation2 + $0x30] sm:$0xff]  ;;  %v4188_v23 = vld [vmem:[#allocation2 + $0x78] sm:$0xff]  ;;  %v8796_v32 = vld [vmem:[#allocation77_spill] sm:$0xff] }
0x1ab2   :  { %4248 = vmatprep.subr.bf16.mxu1 %v4190_v61  ;;  %v8797_v59 = vld [vmem:[#allocation85_spill] sm:$0xff] }
0x1ab3   :  { %4329 = vmatpush1.bf16.msra.mxu0 %v4185_v50 }
0x1ab4   :  { %4330 = vmatprep.subr.bf16.mxu0 %v4194_v46 }
0x1ab5   :  { %4249 = vmatpush1.bf16.msra.mxu1 %v4189_v34  ;;  %v8798_v34 = vld [vmem:[#allocation78_spill] sm:$0xff] }
0x1ab6   :  { %4285 = vmatprep.subr.bf16.mxu1 %v4176_v53 }
0x1ab7   :  { %4331 = vmatpush1.bf16.msra.mxu0 %v4193_v48  ;;  %v8800_v48 = vld [vmem:[#allocation79_spill] sm:$0xff] }
0x1ab8   :  { %5999 = vmatmul.mubr.msk.bf16.vlgmr.msra.gmra.mrb[44].mxu1 %vm4240_vm4, %v4197_v30  ;;  %6287 = vmatprep.subr.bf16.mxu0 %v7816_v8  ;;  %v4187_v8 = vld [vmem:[#allocation2 + $0x70] sm:$0xff] }
0x1ab9   :  { %4286 = vmatpush1.bf16.msra.mxu1 %v4175_v49  ;;  %4317 = vmatprep.mubr.bf16.mxu1 %v7508_v22 }
0x1aba   :  { %4287 = vmatprep.subr.bf16.mxu1 %v4184_v52  ;;  %6001 = vmatmul.mubr.msk.bf16.vlgmr.msra.gmra.mrb[52].mxu0 %vm4240_vm4, %v4197_v30 }
0x1abb   :  { %6288 = vmatpush3.bf16.msra.mxu0 %v7792_v0  ;;  %v4196_v0 = vld [vmem:[#allocation2 + $0xb8] sm:$0xff] }
0x1abc   :  { %6289 = vmatprep.subr.bf16.mxu0 %v7819_v9  ;;  %v4195_v9 = vld [vmem:[#allocation2 + $0xb0] sm:$0xff] }
0x1abd   :  { %4288 = vmatpush1.bf16.msra.mxu1 %v4183_v41 }
0x1abe   :  { %4289 = vmatprep.subr.bf16.mxu1 %v4192_v54  ;;  %v8801_v54 = vld [vmem:[#allocation87_spill] sm:$0xff] }
0x1abf   :  { %6290 = vmatpush3.bf16.msra.mxu0 %v7795_v1  ;;  %v8790_v1 = vld [vmem:[#allocation72_spill] sm:$0xff] }
0x1ac0   :  { %6291 = vmatprep.subr.bf16.mxu0 %v7822_v10 }
0x1ac1   :  { %4290 = vmatpush1.bf16.msra.mxu1 %v4191_v45  ;;  %v8802_v45 = vld [vmem:[#allocation80_spill] sm:$0xff] }
0x1ac2   :  { %4367 = vmatprep.subr.bf16.mxu1 %v4180_v39  ;;  %v8803_v39 = vld [vmem:[#allocation92_spill] sm:$0xff] }
0x1ac3   :  { %6292 = vmatpush3.bf16.msra.mxu0 %v7798_v2  ;;  %v8791_v2 = vld [vmem:[#allocation75_spill] sm:$0xff] }
0x1ac4   :  { %6000 = vmatmul.mubr.msk.bf16.vlgmr.msra.gmra.mrb[48].mxu1 %vm4240_vm4, %v4197_v30  ;;  %6293 = vmatprep.subr.bf16.mxu0 %v7825_v11  ;;  %v8541_v11 = vld [vmem:[#allocation26] sm:$0xff] }
0x1ac5   :  { %4368 = vmatpush1.bf16.msra.mxu1 %v4179_v47  ;;  %4399 = vmatprep.mubr.bf16.mxu1 %v7508_v22  ;;  %v4215_v31 = vrot.slane %v8541_v11, %v8123_v57  ;;  %v4231_v47 = vrot.slane %v8541_v11, %v8142_v43 }
0x1ac6   :  { %4369 = vmatprep.subr.bf16.mxu1 %v4188_v23  ;;  %v8804_v23 = vld [vmem:[#allocation88_spill] sm:$0xff] }
0x1ac7   :  { %6294 = vmatpush3.bf16.msra.mxu0 %v7801_v3  ;;  %v8792_v3 = vld [vmem:[#allocation73_spill] sm:$0xff] }
0x1ac8   :  { %6295 = vmatprep.subr.bf16.mxu0 %v7828_v12  ;;  %v4203_v12 = vrot.slane %v8541_v11, %v8102_v62 }
0x1ac9   :  { %4370 = vmatpush1.bf16.msra.mxu1 %v4187_v8  ;;  %v8805_v8 = vld [vmem:[#allocation101_spill] sm:$0xff] }
0x1aca   :  { %4371 = vmatprep.subr.bf16.mxu1 %v4196_v0 }
0x1acb   :  { %6296 = vmatpush3.bf16.msra.mxu0 %v7804_v4  ;;  %v8793_v4 = vld [vmem:[#allocation76_spill] sm:$0xff] }
0x1acc   :  { %6297 = vmatprep.subr.bf16.mxu0 %v7831_v13  ;;  %v4207_v13 = vrot.slane %v8541_v11, %v8107_v36 }
0x1acd   :  { %4372 = vmatpush1.bf16.msra.mxu1 %v4195_v9  ;;  %v4219_v9 = vrot.slane %v8541_v11, %v8232_v56 }
0x1ace   :  { %6309 = vmatprep.subr.bf16.mxu1 %v7864_v24  ;;  %v4223_v24 = vrot.slane %v8541_v11, %v8235_v38 }
0x1acf   :  { %6298 = vmatpush3.bf16.msra.mxu0 %v7807_v5  ;;  %v8794_v5 = vld [vmem:[#allocation74_spill] sm:$0xff] }
0x1ad0   :  { %6002 = vmatmul.mubr.msk.bf16.vlgmr.msra.gmra.mrb[52].mxu1 %vm4240_vm4, %v4197_v30  ;;  %6299 = vmatprep.subr.bf16.mxu0 %v7834_v14  ;;  %v8799_v30 = vld [vmem:[#allocation86_spill] sm:$0xff] }
0x1ad1   :  { %6310 = vmatpush3.bf16.msra.mxu1 %v7840_v16 }
0x1ad2   :  { %6311 = vmatprep.subr.bf16.mxu1 %v7867_v25 }
0x1ad3   :  { %6300 = vmatpush3.bf16.msra.mxu0 %v7810_v6  ;;  %v8795_v6 = vld [vmem:[#allocation100_spill] sm:$0xff] }
0x1ad4   :  { %6301 = vmatprep.subr.bf16.mxu0 %v7837_v15 }
0x1ad5   :  { %6312 = vmatpush3.bf16.msra.mxu1 %v7843_v17 }
0x1ad6   :  { %6313 = vmatprep.subr.bf16.mxu1 %v7870_v26 }
0x1ad7   :  { %6302 = vmatpush3.bf16.msra.mxu0 %v7813_v7  ;;  %v4672_v7 = vpack.c.bf16 %v8493_v60, %v8493_v60  ;;  %v4211_v60 = vrot.slane %v8541_v11, %v8119_v63 }
0x1ad8   :  { %6331 = vmatprep.subr.bf16.mxu0 %v7912_v40 }
0x1ad9   :  { %6314 = vmatpush3.bf16.msra.mxu1 %v7846_v18  ;;  %v4858_v10 = vrot.slane %v4672_v7, 3  ;;  %v8809_v7 = vld [vmem:[#allocation102_spill] sm:$0xff] }
0x1ada   :  { %6315 = vmatprep.subr.bf16.mxu1 %v7873_v27 }
0x1adb   :  { %4859 = vrot.lane.b32.xlu0 %v4858_v10, %s7506_s16 }
0x1add   :  { %6316 = vmatpush3.bf16.msra.mxu1 %v7849_v19 }
0x1ade   :  { %6317 = vmatprep.subr.bf16.mxu1 %v7876_v28 }
0x1ae1   :  { %6318 = vmatpush3.bf16.msra.mxu1 %v7852_v20 }
0x1ae2   :  { %6319 = vmatprep.subr.bf16.mxu1 %v7879_v29 }
0x1ae5   :  { %6320 = vmatpush3.bf16.msra.mxu1 %v8790_v1 }
0x1ae6   :  { %6321 = vmatprep.subr.bf16.mxu1 %v8791_v2  ;;  %v8806_v2 = vld [vmem:[#allocation81_spill] sm:$0xff] }
0x1ae9   :  { %6322 = vmatpush3.bf16.msra.mxu1 %v8792_v3  ;;  %v8807_v3 = vld [vmem:[#allocation93_spill] sm:$0xff] }
0x1aea   :  { %6323 = vmatprep.subr.bf16.mxu1 %v8793_v4 }
0x1aed   :  { %6324 = vmatpush3.bf16.msra.mxu1 %v8794_v5 }
0x1aee   :  { %6353 = vmatprep.subr.bf16.mxu1 %v8795_v6  ;;  %v8808_v6 = vld [vmem:[#allocation89_spill] sm:$0xff] }
0x1b8b   :  { %v4278_v14 = vpop.f32.mrb[44].mxu1 }
0x1b8c   :  { %v4279_v15 = vadd.f32 %v4278_v14, %v4203_v12  ;;  %v4280_v16 = vpop.f32.mrb[45].mxu1  ;;  %v8810_v14 = vld [vmem:[#allocation82_spill] sm:$0xff] }
0x1b8d   :  { %v4281_v17 = vadd.f32 %v4280_v16, %v4207_v13  ;;  %v4282_v18 = vpop.f32.mrb[46].mxu1  ;;  %v4360_v27 = vpop.f32.mrb[52].mxu0 }
0x1b8e   :  { %v4408_v19 = vmax.f32 %v4279_v15, 0.0  ;;  %v4283_v20 = vpop.f32.mrb[47].mxu1  ;;  %v4362_v29 = vpop.f32.mrb[53].mxu0  ;;  %v4361_v13 = vadd.f32 %v4360_v27, %v4219_v9  ;;  %v8811_v15 = vld [vmem:[#allocation94_spill] sm:$0xff]  ;;  %v8813_v18 = vld [vmem:[#allocation103_spill] sm:$0xff] }
0x1b8f   :  { %v4409_v25 = vmax.f32 %v4281_v17, 0.0  ;;  %v4363_v40 = vadd.f32 %v4362_v29, %v4223_v24  ;;  %v4364_v37 = vpop.f32.mrb[54].mxu0  ;;  %v8812_v17 = vld [vmem:[#allocation90_spill] sm:$0xff]  ;;  %v8814_v20 = vld [vmem:[#allocation83_spill] sm:$0xff]  ;;  %v8819_v29 = vld [vmem:[#allocation96_spill] sm:$0xff] }
0x1b90   :  { %v4480_v26 = vpack.c.bf16 %v4408_v19, %v4408_v19  ;;  %v4365_v55 = vpop.f32.mrb[55].mxu0  ;;  %v4412_v19 = vmax.f32 %v4361_v13, 0.0  ;;  %v8815_v24 = vld [vmem:[#allocation95_spill] sm:$0xff] }
0x1b91   :  { %v4481_v28 = vpack.c.bf16 %v4409_v25, %v4409_v25  ;;  %v4413_v33 = vmax.f32 %v4363_v40, 0.0  ;;  %v8816_v25 = vld [vmem:[#allocation91_spill] sm:$0xff]  ;;  %v8820_v40 = vld [vmem:[#allocation112_spill] sm:$0xff]  ;;  %v8821_v55 = vld [vmem:[#allocation105_spill] sm:$0xff] }
0x1b92   :  { %v4484_v27 = vpack.c.bf16 %v4412_v19, %v4412_v19  ;;  %v4227_v37 = vrot.slane %v8541_v11, %v8820_v40  ;;  %v4674_v11 = vld [vmem:[#allocation5 + $0x8] sm:$0xff] }
0x1b93   :  { %4527 = vmatprep.mubr.bf16.mxu0 %v4481_v28  ;;  %v4485_v61 = vpack.c.bf16 %v4413_v33, %v4413_v33  ;;  %v8818_v28 = vld [vmem:[#allocation84_spill] sm:$0xff] }
0x1b94   :  { %4528 = vmatmul.mubr.bf16.vlgmr.msra.gmra.mrb[56].mxu0 %v4480_v26  ;;  %v8817_v26 = vld [vmem:[#allocation104_spill] sm:$0xff] }
0x1b95   :  { %6332 = vmatpush3.bf16.msra.mxu0 %v8796_v32  ;;  %4607 = vmatprep.mubr.bf16.mxu0 %v4485_v61  ;;  %v8823_v32 = vld [vmem:[#allocation106_spill] sm:$0xff]  ;;  %v8825_v61 = vld [vmem:[#allocation107_spill] sm:$0xff] }
0x1b96   :  { %6333 = vmatprep.subr.bf16.mxu0 %v8797_v59 }
0x1b97   :  { %v4319_v42 = vpop.f32.mrb[48].mxu1 }
0x1b98   :  { %v4320_v44 = vadd.f32 %v4319_v42, %v4211_v60  ;;  %v4321_v35 = vpop.f32.mrb[49].mxu1  ;;  %v8822_v60 = vld [vmem:[#allocation97_spill] sm:$0xff]  ;;  %v8826_v42 = vld [vmem:[#allocation99_spill] sm:$0xff] }
0x1b99   :  { %v4322_v58 = vadd.f32 %v4321_v35, %v4215_v31  ;;  %6334 = vmatpush3.bf16.msra.mxu0 %v8798_v34  ;;  %v4323_v50 = vpop.f32.mrb[50].mxu1  ;;  %v8824_v31 = vld [vmem:[#allocation98_spill] sm:$0xff]  ;;  %v4676_v35 = vld [vmem:[#allocation5 + $0x18] sm:$0xff] }
0x1b9a   :  { %v4410_v53 = vmax.f32 %v4320_v44, 0.0  ;;  %v4324_v46 = vpop.f32.mrb[51].mxu1  ;;  %6335 = vmatprep.subr.bf16.mxu0 %v8799_v30  ;;  %v4675_v34 = vld [vmem:[#allocation5 + $0x10] sm:$0xff]  ;;  %v4682_v50 = vld [vmem:[#allocation5 + $0x48] sm:$0xff] }
0x1b9b   :  { %v4411_v49 = vmax.f32 %v4322_v58, 0.0  ;;  %v4673_v58 = vld [vmem:[#allocation5] sm:$0xff]  ;;  %v4683_v30 = vld [vmem:[#allocation5 + $0x50] sm:$0xff] }
0x1b9c   :  { %v4482_v41 = vpack.c.bf16 %v4410_v53, %v4410_v53  ;;  %v4684_v53 = vld [vmem:[#allocation5 + $0x58] sm:$0xff]  ;;  %v4681_v46 = vld [vmem:[#allocation5 + $0x40] sm:$0xff] }
0x1b9d   :  { %v4483_v52 = vpack.c.bf16 %v4411_v49, %v4411_v49  ;;  %6336 = vmatpush3.bf16.msra.mxu0 %v8800_v48  ;;  %v4678_v49 = vld [vmem:[#allocation5 + $0x28] sm:$0xff] }
0x1b9e   :  { %6337 = vmatprep.subr.bf16.mxu0 %v8801_v54 }
0x1b9f   :  { %4567 = vmatprep.mubr.bf16.mxu1 %v4483_v52  ;;  %v4680_v52 = vld [vmem:[#allocation5 + $0x38] sm:$0xff] }
0x1ba0   :  { %4568 = vmatmul.mubr.bf16.vlgmr.msra.gmra.mrb[56].mxu1 %v4482_v41 }
0x1ba1   :  { %6338 = vmatpush3.bf16.msra.mxu0 %v8802_v45  ;;  %6354 = vmatpush3.bf16.msra.mxu1 %v8803_v39 }
0x1ba2   :  { %6339 = vmatprep.subr.bf16.mxu0 %v8804_v23  ;;  %6355 = vmatprep.subr.bf16.mxu1 %v8805_v8 }
0x1ba3   :  { %v4401_v0 = vpop.f32.mrb[52].mxu1 }
0x1ba4   :  { %v4403_v1 = vpop.f32.mrb[53].mxu1  ;;  %v4402_v33 = vadd.f32 %v4401_v0, %v4227_v37  ;;  %v4657_v37 = vld [vmem:[#allocation4 + $0x8] sm:$0xff] }
0x1ba5   :  { %6340 = vmatpush3.bf16.msra.mxu0 %v8806_v2  ;;  %6356 = vmatpush3.bf16.msra.mxu1 %v8807_v3  ;;  %v4404_v4 = vadd.f32 %v4403_v1, %v4231_v47  ;;  %v4405_v5 = vpop.f32.mrb[54].mxu1  ;;  %v6003_v47 = vld [vmem:[%s8827_s7] ss:$0 sm:$0xff] }
0x1ba6   :  { %6341 = vmatprep.subr.bf16.mxu0 %v8808_v6  ;;  %6357 = vmatprep.subr.bf16.mxu1 %v8809_v7  ;;  %v4406_v10 = vpop.f32.mrb[55].mxu1  ;;  %v4414_v59 = vmax.f32 %v4402_v33, 0.0  ;;  %v4658_v33 = vld [vmem:[#allocation4 + $0x10] sm:$0xff] }
0x1ba7   :  { %v4415_v12 = vmax.f32 %v4404_v4, 0.0 }
0x1ba8   :  { %v4486_v44 = vpack.c.bf16 %v4414_v59, %v4414_v59  ;;  %v4664_v59 = vld [vmem:[#allocation4 + $0x40] sm:$0xff] }
0x1ba9   :  { %6342 = vmatpush3.bf16.msra.mxu0 %v8810_v14  ;;  %6358 = vmatpush3.bf16.msra.mxu1 %v8811_v15  ;;  %v4487_v16 = vpack.c.bf16 %v4415_v12, %v4415_v12 }
0x1baa   :  { %6343 = vmatprep.subr.bf16.mxu0 %v8812_v17  ;;  %6359 = vmatprep.subr.bf16.mxu1 %v8813_v18 }
0x1bab   :  { %4647 = vmatprep.mubr.bf16.mxu1 %v4487_v16 }
0x1bad   :  { %6344 = vmatpush3.bf16.msra.mxu0 %v8814_v20  ;;  %6360 = vmatpush3.bf16.msra.mxu1 %v8815_v24  ;;  %v4677_v24 = vld [vmem:[#allocation5 + $0x20] sm:$0xff] }
0x1bae   :  { %6345 = vmatprep.subr.bf16.mxu0 %v8816_v25  ;;  %6361 = vmatprep.subr.bf16.mxu1 %v8817_v26  ;;  %v4679_v25 = vld [vmem:[#allocation5 + $0x30] sm:$0xff]  ;;  %v4686_v26 = vld [vmem:[#allocation5 + $0x68] sm:$0xff] }
0x1bb1   :  { %6346 = vmatpush3.bf16.msra.mxu0 %v8818_v28  ;;  %6362 = vmatpush3.bf16.msra.mxu1 %v8819_v29  ;;  %v4685_v28 = vld [vmem:[#allocation5 + $0x60] sm:$0xff]  ;;  %v4687_v29 = vld [vmem:[#allocation5 + $0x70] sm:$0xff] }
0x1bb2   :  { %6363 = vmatprep.subr.bf16.mxu1 %v8821_v55  ;;  %4693 = vmatprep.subr.bf16.mxu0 %v4674_v11  ;;  %v4659_v55 = vld [vmem:[#allocation4 + $0x18] sm:$0xff]  ;;  %v4860_v11 = vpop.permute.xlu0 %4859 }
0x1bb4   :  { %4608 = vmatmul.mubr.bf16.vlgmr.msra.gmra.mrb[60].mxu0 %v4484_v27  ;;  %v4688_v27 = vld [vmem:[#allocation5 + $0x78] sm:$0xff] }
0x1bb5   :  { %6364 = vmatpush3.bf16.msra.mxu1 %v8822_v60  ;;  %4725 = vmatprep.mubr.bf16.mxu0 %v7508_v22  ;;  %v4656_v60 = vld [vmem:[#allocation4] sm:$0xff] }
0x1bb6   :  { %6365 = vmatprep.subr.bf16.mxu1 %v8823_v32  ;;  %4694 = vmatpush1.bf16.msra.mxu0 %v4673_v58  ;;  %v4665_v32 = vld [vmem:[#allocation4 + $0x48] sm:$0xff]  ;;  %v4662_v58 = vld [vmem:[#allocation4 + $0x30] sm:$0xff] }
0x1bb7   :  { %4695 = vmatprep.subr.bf16.mxu0 %v4682_v50  ;;  %v4671_v50 = vld [vmem:[#allocation4 + $0x78] sm:$0xff] }
0x1bb9   :  { %6366 = vmatpush3.bf16.msra.mxu1 %v8824_v31  ;;  %v4667_v31 = vld [vmem:[#allocation4 + $0x58] sm:$0xff] }
0x1bba   :  { %6367 = vmatprep.subr.bf16.mxu1 %v8825_v61  ;;  %4696 = vmatpush1.bf16.msra.mxu0 %v4681_v46  ;;  %v4666_v61 = vld [vmem:[#allocation4 + $0x50] sm:$0xff] }
0x1bbb   :  { %4775 = vmatprep.subr.bf16.mxu0 %v4678_v49  ;;  %v4670_v49 = vld [vmem:[#allocation4 + $0x70] sm:$0xff] }
0x1bbd   :  { %6368 = vmatpush3.bf16.msra.mxu1 %v8826_v42  ;;  %v4661_v42 = vld [vmem:[#allocation4 + $0x28] sm:$0xff] }
0x1bbe   :  { %4734 = vmatprep.subr.bf16.mxu1 %v4676_v35  ;;  %v4660_v35 = vld [vmem:[#allocation4 + $0x20] sm:$0xff] }
0x1bc0   :  { %4648 = vmatmul.mubr.bf16.vlgmr.msra.gmra.mrb[60].mxu1 %v4486_v44  ;;  %v4663_v44 = vld [vmem:[#allocation4 + $0x38] sm:$0xff] }
0x1bc1   :  { %4766 = vmatprep.mubr.bf16.mxu1 %v7508_v22  ;;  %4735 = vmatpush1.bf16.msra.mxu1 %v4675_v34  ;;  %v4669_v34 = vld [vmem:[#allocation4 + $0x68] sm:$0xff] }
0x1bc2   :  { %4736 = vmatprep.subr.bf16.mxu1 %v4684_v53  ;;  %v8828_v53 = vld [vmem:[#allocation108_spill] sm:$0xff] }
0x1bc3   :  { %v6013_v46 = vcombine.high %v8828_v53, %v8828_v53 }
0x1bc5   :  { %4737 = vmatpush1.bf16.msra.mxu1 %v4683_v30  ;;  %v4668_v30 = vld [vmem:[#allocation4 + $0x60] sm:$0xff] }
0x1bc6   :  { %4816 = vmatprep.subr.bf16.mxu1 %v4680_v52  ;;  %v6012_v52 = vcombine.low %v8828_v53, %v8828_v53 }
0x1c67   :  { %v6303_v48 = vpop.f32.mrb[56].mxu0 }
0x1c68   :  { %v6304_v41 = vpop.f32.mrb[57].mxu0 }
0x1c69   :  { %v6305_v54 = vadd.f32 %v6304_v41, %v6303_v48  ;;  %v6306_v45 = vpop.f32.mrb[58].mxu0  ;;  %v8829_v48 = vld [vmem:[#allocation109_spill] sm:$0xff] }
0x1c6a   :  { %v6307_v39 = vpop.f32.mrb[59].mxu0  ;;  %v6015_v41 = vcombine.high %v8829_v48, %v8829_v48  ;;  %v5060_v45 = vsel %vm5058_vm5, %v6012_v52, 0 }
0x1c6b   :  { %v4530_v0 = vadd.f32 %v6305_v54, %v6003_v47  ;;  %v6014_v54 = vcombine.low %v8829_v48, %v8829_v48  ;;  %v8831_v47 = vld [vmem:[#allocation110_spill] sm:$0xff] }
0x1c6d   :  { %v5066_v39 = vsel %vm5058_vm5, %v6014_v54, 0 }
0x1c73   :  { %v6325_v23 = vpop.f32.mrb[56].mxu1 }
0x1c74   :  { %v6326_v8 = vpop.f32.mrb[57].mxu1 }
0x1c75   :  { %v6327_v9 = vadd.f32 %v6326_v8, %v6325_v23  ;;  %v6328_v1 = vpop.f32.mrb[58].mxu1  ;;  %v6017_v23 = vcombine.high %v8831_v47, %v8831_v47  ;;  %v8832_v8 = vld [vmem:[#allocation111_spill] sm:$0xff] }
0x1c76   :  { %v6329_v2 = vpop.f32.mrb[59].mxu1  ;;  %v6016_v1 = vcombine.low %v8831_v47, %v8831_v47 }
0x1c77   :  { %v4570_v3 = vadd.f32 %v6327_v9, %v4530_v0  ;;  %v6019_v0 = vcombine.high %v8832_v8, %v8832_v8  ;;  %v5028_v9 = vld [vmem:[%s8830_s6] sm:$0x3]  ;;  %v6018_v2 = vcombine.low %v8832_v8, %v8832_v8 }
0x1c87   :  { %v6347_v4 = vpop.f32.mrb[60].mxu0 }
0x1c88   :  { %v6348_v5 = vpop.f32.mrb[61].mxu0 }
0x1c89   :  { %v6349_v6 = vadd.f32 %v6348_v5, %v6347_v4  ;;  %v6350_v7 = vpop.f32.mrb[62].mxu0  ;;  %v5072_v4 = vsel %vm5058_vm5, %v6016_v1, 0  ;;  %v5078_v5 = vsel %vm5058_vm5, %v6018_v2, 0 }
0x1c8a   :  { %v6351_v10 = vpop.f32.mrb[63].mxu0  ;;  %v5337_v7 = vld [vmem:[#allocation7 + $0xc0] sm:$0xff] }
0x1c8b   :  { %v4610_v12 = vadd.f32 %v6349_v6, %v4570_v3  ;;  %v5033_v3 = vpack.c.bf16 %v5028_v9, %v5028_v9  ;;  %v5321_v6 = vld [vmem:[#allocation7 + $0x40] sm:$0xff] }
0x1c8c   :  { %v5313_v10 = vld [vmem:[#allocation7] sm:$0xff] }
0x1c93   :  { %v6369_v13 = vpop.f32.mrb[60].mxu1 }
0x1c94   :  { %v6370_v14 = vpop.f32.mrb[61].mxu1 }
0x1c95   :  { %v6371_v15 = vadd.f32 %v6370_v14, %v6369_v13  ;;  %v6372_v16 = vpop.f32.mrb[62].mxu1  ;;  %v5322_v13 = vld [vmem:[#allocation7 + $0x48] sm:$0xff] }
0x1c96   :  { %v6373_v17 = vpop.f32.mrb[63].mxu1  ;;  %v5338_v14 = vld [vmem:[#allocation7 + $0xc8] sm:$0xff] }
0x1c97   :  { %v4650_v18 = vadd.f32 %v6371_v15, %v4610_v12  ;;  %v5329_v12 = vld [vmem:[#allocation7 + $0x80] sm:$0xff]  ;;  %v5314_v15 = vld [vmem:[#allocation7 + $0x8] sm:$0xff]  ;;  %v5323_v17 = vld [vmem:[#allocation7 + $0x50] sm:$0xff] }
0x1c98   :  { %v5330_v16 = vld [vmem:[#allocation7 + $0x88] sm:$0xff] }
0x1c99   :  { %v4655_v19 = vmax.f32 %v4650_v18, 0.0  ;;  %v5315_v18 = vld [vmem:[#allocation7 + $0x10] sm:$0xff] }
0x1c9b   :  { %v4689_v20 = vpack.c.bf16 %v4655_v19, %v4655_v19  ;;  %v5331_v19 = vld [vmem:[#allocation7 + $0x90] sm:$0xff] }
0x1c9d   :  { %6004 = vmatmul.mubr.msk.bf16.vlgmr.msra.gmra.mrb[64].mxu0 %vm893_vm1, %v4689_v20  ;;  %6005 = vmatmul.mubr.msk.bf16.vlgmr.msra.gmra.mrb[64].mxu1 %vm893_vm1, %v4689_v20 }
0x1c9e   :  { %4776 = vmatpush1.bf16.msra.mxu0 %v4677_v24  ;;  %4817 = vmatpush1.bf16.msra.mxu1 %v4679_v25  ;;  %v5340_v24 = vld [vmem:[#allocation7 + $0xd8] sm:$0xff] }
0x1c9f   :  { %4777 = vmatprep.subr.bf16.mxu0 %v4686_v26  ;;  %4818 = vmatprep.subr.bf16.mxu1 %v4688_v27  ;;  %v5316_v25 = vld [vmem:[#allocation7 + $0x18] sm:$0xff]  ;;  %v5325_v27 = vld [vmem:[#allocation7 + $0x60] sm:$0xff] }
0x1ca0   :  { %4807 = vmatprep.mubr.bf16.mxu0 %v7508_v22  ;;  %4848 = vmatprep.mubr.bf16.mxu1 %v7508_v22  ;;  %v5332_v26 = vld [vmem:[#allocation7 + $0x98] sm:$0xff] }
0x1ca2   :  { %4778 = vmatpush1.bf16.msra.mxu0 %v4685_v28  ;;  %4819 = vmatpush1.bf16.msra.mxu1 %v4687_v29  ;;  %v5341_v28 = vld [vmem:[#allocation7 + $0xe0] sm:$0xff] }
0x1ca3   :  { %4864 = vmatprep.subr.bf16.mxu0 %v4657_v37  ;;  %4905 = vmatprep.subr.bf16.mxu1 %v4659_v55  ;;  %v5317_v29 = vld [vmem:[#allocation7 + $0x20] sm:$0xff]  ;;  %v5326_v55 = vld [vmem:[#allocation7 + $0x68] sm:$0xff] }
0x1ca4   :  { %v5333_v37 = vld [vmem:[#allocation7 + $0xa0] sm:$0xff] }
0x1ca5   :  { %6006 = vmatmul.mubr.msk.bf16.vlgmr.msra.gmra.mrb[68].mxu0 %vm893_vm1, %v4689_v20  ;;  %6007 = vmatmul.mubr.msk.bf16.vlgmr.msra.gmra.mrb[68].mxu1 %vm893_vm1, %v4689_v20  ;;  %v5324_v20 = vld [vmem:[#allocation7 + $0x58] sm:$0xff] }
0x1ca6   :  { %4865 = vmatpush1.bf16.msra.mxu0 %v4656_v60  ;;  %4906 = vmatpush1.bf16.msra.mxu1 %v4658_v33  ;;  %v5342_v60 = vld [vmem:[#allocation7 + $0xe8] sm:$0xff] }
0x1ca7   :  { %4866 = vmatprep.subr.bf16.mxu0 %v4665_v32  ;;  %4907 = vmatprep.subr.bf16.mxu1 %v4667_v31  ;;  %v5318_v33 = vld [vmem:[#allocation7 + $0x28] sm:$0xff]  ;;  %v5327_v31 = vld [vmem:[#allocation7 + $0x70] sm:$0xff] }
0x1ca8   :  { %4896 = vmatprep.mubr.bf16.mxu0 %v7508_v22  ;;  %4937 = vmatprep.mubr.bf16.mxu1 %v7508_v22  ;;  %v5334_v32 = vld [vmem:[#allocation7 + $0xa8] sm:$0xff] }
0x1caa   :  { %4867 = vmatpush1.bf16.msra.mxu0 %v4664_v59  ;;  %4908 = vmatpush1.bf16.msra.mxu1 %v4666_v61  ;;  %v5343_v59 = vld [vmem:[#allocation7 + $0xf0] sm:$0xff] }
0x1cab   :  { %4946 = vmatprep.subr.bf16.mxu0 %v4661_v42  ;;  %4987 = vmatprep.subr.bf16.mxu1 %v4663_v44  ;;  %v5319_v61 = vld [vmem:[#allocation7 + $0x30] sm:$0xff]  ;;  %v5328_v44 = vld [vmem:[#allocation7 + $0x78] sm:$0xff] }
0x1cac   :  { %v5335_v42 = vld [vmem:[#allocation7 + $0xb0] sm:$0xff] }
0x1cad   :  { %6008 = vmatmul.mubr.msk.bf16.vlgmr.msra.gmra.mrb[72].mxu0 %vm893_vm1, %v4860_v11  ;;  %6009 = vmatmul.mubr.msk.bf16.vlgmr.msra.gmra.mrb[72].mxu1 %vm893_vm1, %v4860_v11 }
0x1cae   :  { %4947 = vmatpush1.bf16.msra.mxu0 %v4660_v35  ;;  %4988 = vmatpush1.bf16.msra.mxu1 %v4662_v58  ;;  %v5320_v35 = vld [vmem:[#allocation7 + $0x38] sm:$0xff] }
0x1caf   :  { %4948 = vmatprep.subr.bf16.mxu0 %v4669_v34  ;;  %4989 = vmatprep.subr.bf16.mxu1 %v4671_v50  ;;  %v5336_v58 = vld [vmem:[#allocation7 + $0xb8] sm:$0xff]  ;;  %v5353_v34 = vld [vmem:[#allocation7 + $0x140] sm:$0xff] }
0x1cb0   :  { %4978 = vmatprep.mubr.bf16.mxu0 %v7508_v22  ;;  %5019 = vmatprep.mubr.bf16.mxu1 %v7508_v22  ;;  %v5369_v50 = vld [vmem:[#allocation7 + $0x1c0] sm:$0xff] }
0x1cb2   :  { %4949 = vmatpush1.bf16.msra.mxu0 %v4668_v30  ;;  %4990 = vmatpush1.bf16.msra.mxu1 %v4670_v49 }
0x1cb3   :  { %6020 = vmatprep.subr.msk.bf16.mxu0 %vm5058_vm5, %v6013_v46  ;;  %6022 = vmatprep.subr.msk.bf16.mxu1 %vm5058_vm5, %v6015_v41 }
0x1cb5   :  { %6010 = vmatmul.mubr.msk.bf16.vlgmr.msra.gmra.mrb[76].mxu0 %vm893_vm1, %v4860_v11  ;;  %6011 = vmatmul.mubr.msk.bf16.vlgmr.msra.gmra.mrb[76].mxu1 %vm893_vm1, %v4860_v11  ;;  %v5344_v11 = vld [vmem:[#allocation7 + $0xf8] sm:$0xff] }
0x1cb6   :  { %5084 = vmatpush1.bf16.msra.mxu0 %v5060_v45  ;;  %5125 = vmatpush1.bf16.msra.mxu1 %v5066_v39 }
0x1cb7   :  { %5115 = vmatprep.mubr.bf16.mxu0 %v7508_v22  ;;  %5156 = vmatprep.mubr.bf16.mxu1 %v7508_v22 }
0x1cb8   :  { %6024 = vmatprep.subr.msk.bf16.mxu0 %vm5058_vm5, %v6017_v23  ;;  %6026 = vmatprep.subr.msk.bf16.mxu1 %vm5058_vm5, %v6019_v0 }
0x1cbd   :  { %6021 = vmatmul.mubr.msk.bf16.vlgmr.msra.gmra.mrb[80].mxu0 %vm5054_vm6, %v5033_v3  ;;  %6023 = vmatmul.mubr.msk.bf16.vlgmr.msra.gmra.mrb[80].mxu1 %vm5054_vm6, %v5033_v3 }
0x1cbe   :  { %5166 = vmatpush1.bf16.msra.mxu0 %v5072_v4  ;;  %5207 = vmatpush1.bf16.msra.mxu1 %v5078_v5 }
0x1cbf   :  { %5197 = vmatprep.mubr.bf16.mxu0 %v7508_v22  ;;  %5238 = vmatprep.mubr.bf16.mxu1 %v7508_v22  ;;  %v5339_v22 = vld [vmem:[#allocation7 + $0xd0] sm:$0xff] }
0x1cc0   :  { %6375 = vmatprep.subr.bf16.mxu0 %v5321_v6  ;;  %6397 = vmatprep.subr.bf16.mxu1 %v5337_v7 }
0x1cc5   :  { %6025 = vmatmul.mubr.msk.bf16.vlgmr.msra.gmra.mrb[84].mxu0 %vm5054_vm6, %v5033_v3  ;;  %6027 = vmatmul.mubr.msk.bf16.vlgmr.msra.gmra.mrb[84].mxu1 %vm5054_vm6, %v5033_v3 }
0x1cc6   :  { %6376 = vmatpush3.bf16.msra.mxu0 %v5313_v10  ;;  %6398 = vmatpush3.bf16.msra.mxu1 %v5329_v12 }
0x1cc7   :  { %6377 = vmatprep.subr.bf16.mxu0 %v5322_v13  ;;  %6399 = vmatprep.subr.bf16.mxu1 %v5338_v14 }
0x1cca   :  { %6378 = vmatpush3.bf16.msra.mxu0 %v5314_v15  ;;  %6400 = vmatpush3.bf16.msra.mxu1 %v5330_v16 }
0x1ccb   :  { %6379 = vmatprep.subr.bf16.mxu0 %v5323_v17  ;;  %6401 = vmatprep.subr.bf16.mxu1 %v5339_v22 }
0x1cce   :  { %6380 = vmatpush3.bf16.msra.mxu0 %v5315_v18  ;;  %6402 = vmatpush3.bf16.msra.mxu1 %v5331_v19 }
0x1ccf   :  { %6381 = vmatprep.subr.bf16.mxu0 %v5324_v20  ;;  %6403 = vmatprep.subr.bf16.mxu1 %v5340_v24 }
0x1cd2   :  { %6382 = vmatpush3.bf16.msra.mxu0 %v5316_v25  ;;  %6404 = vmatpush3.bf16.msra.mxu1 %v5332_v26 }
0x1cd3   :  { %6383 = vmatprep.subr.bf16.mxu0 %v5325_v27  ;;  %6405 = vmatprep.subr.bf16.mxu1 %v5341_v28 }
0x1cd6   :  { %6384 = vmatpush3.bf16.msra.mxu0 %v5317_v29  ;;  %6406 = vmatpush3.bf16.msra.mxu1 %v5333_v37 }
0x1cd7   :  { %6385 = vmatprep.subr.bf16.mxu0 %v5326_v55  ;;  %6407 = vmatprep.subr.bf16.mxu1 %v5342_v60  ;;  %v8636_v55 = vld [vmem:[%s8833_s29] sm:$0xff] }
0x1cd8   :  { %v5260_v60 = vrot.slane %v8636_v55, %v8102_v62 }
0x1cda   :  { %6386 = vmatpush3.bf16.msra.mxu0 %v5318_v33  ;;  %6408 = vmatpush3.bf16.msra.mxu1 %v5334_v32  ;;  %v5268_v33 = vrot.slane %v8636_v55, %v8119_v63 }
0x1cdb   :  { %6387 = vmatprep.subr.bf16.mxu0 %v5327_v31  ;;  %6409 = vmatprep.subr.bf16.mxu1 %v5343_v59  ;;  %v5264_v59 = vrot.slane %v8636_v55, %v8107_v36 }
0x1cde   :  { %6388 = vmatpush3.bf16.msra.mxu0 %v5319_v61  ;;  %6410 = vmatpush3.bf16.msra.mxu1 %v5335_v42  ;;  %v5272_v61 = vrot.slane %v8636_v55, %v8123_v57 }
0x1cdf   :  { %6389 = vmatprep.subr.bf16.mxu0 %v5328_v44  ;;  %6411 = vmatprep.subr.bf16.mxu1 %v5344_v11 }
0x1ce2   :  { %6390 = vmatpush3.bf16.msra.mxu0 %v5320_v35  ;;  %6412 = vmatpush3.bf16.msra.mxu1 %v5336_v58 }
0x1ce3   :  { %6419 = vmatprep.subr.bf16.mxu0 %v5353_v34  ;;  %6441 = vmatprep.subr.bf16.mxu1 %v5369_v50 }
0x1d70   :  { %v4727_v53 = vpop.f32.mrb[64].mxu0  ;;  %v4768_v46 = vpop.f32.mrb[64].mxu1 }
0x1d71   :  { %v4729_v30 = vpop.f32.mrb[65].mxu0  ;;  %v4770_v49 = vpop.f32.mrb[65].mxu1 }
0x1d72   :  { %v4731_v52 = vpop.f32.mrb[66].mxu0  ;;  %v4772_v48 = vpop.f32.mrb[66].mxu1 }
0x1d73   :  { %v4732_v41 = vpop.f32.mrb[67].mxu0  ;;  %v4773_v54 = vpop.f32.mrb[67].mxu1 }
0x1d78   :  { %v4809_v45 = vpop.f32.mrb[68].mxu0  ;;  %v4850_v39 = vpop.f32.mrb[68].mxu1 }
0x1d79   :  { %v4811_v47 = vpop.f32.mrb[69].mxu0  ;;  %v4852_v23 = vpop.f32.mrb[69].mxu1 }
0x1d7a   :  { %v4813_v8 = vpop.f32.mrb[70].mxu0  ;;  %v4854_v0 = vpop.f32.mrb[70].mxu1 }
0x1d7b   :  { %v4814_v9 = vpop.f32.mrb[71].mxu0  ;;  %v4855_v1 = vpop.f32.mrb[71].mxu1  ;;  %v5288_v8 = vrot.slane %v8636_v55, %v8142_v43 }
0x1d80   :  { %v4898_v2 = vpop.f32.mrb[72].mxu0  ;;  %v4939_v3 = vpop.f32.mrb[72].mxu1 }
0x1d81   :  { %v4899_v4 = vadd.f32 %v4898_v2, %v4727_v53  ;;  %v4940_v5 = vadd.f32 %v4939_v3, %v4768_v46  ;;  %v4900_v6 = vpop.f32.mrb[73].mxu0  ;;  %v4941_v7 = vpop.f32.mrb[73].mxu1 }
0x1d82   :  { %v4901_v10 = vadd.f32 %v4900_v6, %v4729_v30  ;;  %v4942_v12 = vadd.f32 %v4941_v7, %v4770_v49  ;;  %v4902_v13 = vpop.f32.mrb[74].mxu0  ;;  %v4943_v14 = vpop.f32.mrb[74].mxu1  ;;  %v5361_v6 = vld [vmem:[#allocation7 + $0x180] sm:$0xff] }
0x1d83   :  { %v4903_v15 = vpop.f32.mrb[75].mxu0  ;;  %v4944_v16 = vpop.f32.mrb[75].mxu1  ;;  %v5370_v13 = vld [vmem:[#allocation7 + $0x1c8] sm:$0xff] }
0x1d88   :  { %v4980_v17 = vpop.f32.mrb[76].mxu0  ;;  %v5021_v22 = vpop.f32.mrb[76].mxu1 }
0x1d89   :  { %v4981_v18 = vadd.f32 %v4980_v17, %v4809_v45  ;;  %v5022_v19 = vadd.f32 %v5021_v22, %v4850_v39  ;;  %v4982_v20 = vpop.f32.mrb[77].mxu0  ;;  %v5023_v24 = vpop.f32.mrb[77].mxu1  ;;  %v5346_v22 = vld [vmem:[#allocation7 + $0x108] sm:$0xff] }
0x1d8a   :  { %v4983_v25 = vadd.f32 %v4982_v20, %v4811_v47  ;;  %v5024_v26 = vadd.f32 %v5023_v24, %v4852_v23  ;;  %v4984_v27 = vpop.f32.mrb[78].mxu0  ;;  %v5025_v28 = vpop.f32.mrb[78].mxu1  ;;  %v5280_v23 = vrot.slane %v8636_v55, %v8235_v38  ;;  %v5355_v24 = vld [vmem:[#allocation7 + $0x150] sm:$0xff] }
0x1d8b   :  { %v4985_v29 = vpop.f32.mrb[79].mxu0  ;;  %v5026_v37 = vpop.f32.mrb[79].mxu1  ;;  %v5347_v28 = vld [vmem:[#allocation7 + $0x110] sm:$0xff] }
0x1d8c   :  { %v5363_v29 = vld [vmem:[#allocation7 + $0x190] sm:$0xff]  ;;  %v5356_v37 = vld [vmem:[#allocation7 + $0x158] sm:$0xff] }
0x1d90   :  { %v5117_v32 = vpop.f32.mrb[80].mxu0  ;;  %v5158_v31 = vpop.f32.mrb[80].mxu1 }
0x1d91   :  { %v5247_v42 = vadd.f32 %v5117_v32, %v4899_v4  ;;  %v5249_v44 = vadd.f32 %v5158_v31, %v4940_v5  ;;  %v5119_v11 = vpop.f32.mrb[81].mxu0  ;;  %v5160_v35 = vpop.f32.mrb[81].mxu1  ;;  %v5345_v5 = vld [vmem:[#allocation7 + $0x100] sm:$0xff]  ;;  %v5364_v32 = vld [vmem:[#allocation7 + $0x198] sm:$0xff] }
0x1d92   :  { %v5248_v58 = vadd.f32 %v5119_v11, %v4901_v10  ;;  %v5250_v34 = vadd.f32 %v5160_v35, %v4942_v12  ;;  %v5121_v50 = vpop.f32.mrb[82].mxu0  ;;  %v5162_v53 = vpop.f32.mrb[82].mxu1  ;;  %v5354_v12 = vld [vmem:[#allocation7 + $0x148] sm:$0xff]  ;;  %v5357_v31 = vld [vmem:[#allocation7 + $0x160] sm:$0xff]  ;;  %v5276_v35 = vrot.slane %v8636_v55, %v8232_v56  ;;  %v5360_v56 = vld [vmem:[#allocation7 + $0x178] sm:$0xff] }
0x1d93   :  { %v5297_v62 = vadd.f32 %v5260_v60, %v5247_v42  ;;  %v5299_v46 = vadd.f32 %v5268_v33, %v5249_v44  ;;  %v5122_v30 = vpop.f32.mrb[83].mxu0  ;;  %v5163_v63 = vpop.f32.mrb[83].mxu1  ;;  %v5372_v60 = vld [vmem:[#allocation7 + $0x1d8] sm:$0xff]  ;;  %v5365_v42 = vld [vmem:[#allocation7 + $0x1a0] sm:$0xff]  ;;  %v5358_v44 = vld [vmem:[#allocation7 + $0x168] sm:$0xff] }
0x1d94   :  { %v5298_v49 = vadd.f32 %v5264_v59, %v5248_v58  ;;  %v5300_v52 = vadd.f32 %v5272_v61, %v5250_v34  ;;  %v5348_v33 = vld [vmem:[#allocation7 + $0x118] sm:$0xff]  ;;  %v5373_v59 = vld [vmem:[#allocation7 + $0x1e0] sm:$0xff]  ;;  %v5374_v11 = vld [vmem:[#allocation7 + $0x1e8] sm:$0xff]  ;;  %v5284_v58 = vrot.slane %v8636_v55, %v8820_v40 }
0x1d95   :  { %v5305_v48 = vmax.f32 %v5297_v62, 0.0  ;;  %v5307_v41 = vmax.f32 %v5299_v46, 0.0  ;;  %v5349_v61 = vld [vmem:[#allocation7 + $0x120] sm:$0xff]  ;;  %v5350_v34 = vld [vmem:[#allocation7 + $0x128] sm:$0xff]  ;;  %v5359_v53 = vld [vmem:[#allocation7 + $0x170] sm:$0xff] }
0x1d96   :  { %v5306_v36 = vmax.f32 %v5298_v49, 0.0  ;;  %v5308_v54 = vmax.f32 %v5300_v52, 0.0  ;;  %v5366_v50 = vld [vmem:[#allocation7 + $0x1a8] sm:$0xff]  ;;  %v5375_v62 = vld [vmem:[#allocation7 + $0x1f0] sm:$0xff]  ;;  %v5376_v52 = vld [vmem:[#allocation7 + $0x1f8] sm:$0xff] }
0x1d97   :  { %v5377_v0 = vpack.c.bf16 %v5305_v48, %v5305_v48  ;;  %v5379_v9 = vpack.c.bf16 %v5307_v41, %v5307_v41  ;;  %v5351_v63 = vld [vmem:[#allocation7 + $0x130] sm:$0xff]  ;;  %v5352_v48 = vld [vmem:[#allocation7 + $0x138] sm:$0xff] }
0x1d98   :  { %v5378_v45 = vpack.c.bf16 %v5306_v36, %v5306_v36  ;;  %v5380_v57 = vpack.c.bf16 %v5308_v54, %v5308_v54  ;;  %v5199_v39 = vpop.f32.mrb[84].mxu0  ;;  %v5240_v47 = vpop.f32.mrb[84].mxu1  ;;  %v5367_v49 = vld [vmem:[#allocation7 + $0x1b0] sm:$0xff]  ;;  %v5368_v41 = vld [vmem:[#allocation7 + $0x1b8] sm:$0xff] }
0x1d99   :  { %v8650_v1 = vadd.f32 %v5199_v39, %v4981_v18  ;;  %v8652_v2 = vadd.f32 %v5240_v47, %v5022_v19  ;;  %v5201_v3 = vpop.f32.mrb[85].mxu0  ;;  %v5242_v4 = vpop.f32.mrb[85].mxu1  ;;  %v5362_v18 = vld [vmem:[#allocation7 + $0x188] sm:$0xff]  ;;  %v5555_v39 = vld [vmem:[%s7689_s4 + $0x10] sm:$0xff] }
0x1d9a   :  { %v5252_v7 = vadd.f32 %v5201_v3, %v4983_v25  ;;  %v5254_v10 = vadd.f32 %v5242_v4, %v5024_v26  ;;  %5424 = vmatprep.mubr.bf16.mxu0 %v5378_v45  ;;  %5464 = vmatprep.mubr.bf16.mxu1 %v5380_v57  ;;  %v5203_v38 = vpop.f32.mrb[86].mxu0  ;;  %v5244_v14 = vpop.f32.mrb[86].mxu1  ;;  %v5371_v25 = vld [vmem:[#allocation7 + $0x1d0] sm:$0xff]  ;;  %v5553_v45 = vld [vmem:[%s7689_s4] sm:$0xff]  ;;  %v5554_v57 = vld [vmem:[%s7689_s4 + $0x8] sm:$0xff] }
0x1d9b   :  { %5425 = vmatmul.mubr.bf16.vlgmr.msra.gmra.mrb[88].mxu0 %v5377_v0  ;;  %5465 = vmatmul.mubr.bf16.vlgmr.msra.gmra.mrb[88].mxu1 %v5379_v9  ;;  %v5204_v43 = vpop.f32.mrb[87].mxu0  ;;  %v5245_v15 = vpop.f32.mrb[87].mxu1  ;;  %v5301_v46 = vadd.f32 %v5276_v35, %v8650_v1  ;;  %v5303_v30 = vadd.f32 %v5284_v58, %v8652_v2  ;;  %v6810_v47 = vpack.c.bf16 %v5554_v57, %v5553_v45  ;;  %v5557_v0 = vld [vmem:[%s7689_s4 + $0x20] sm:$0xff]  ;;  %v5558_v9 = vld [vmem:[%s7689_s4 + $0x28] sm:$0xff]  ;;  %v5560_v2 = vld [vmem:[%s7689_s4 + $0x38] sm:$0xff] }
0x1d9c   :  { %v5302_v16 = vadd.f32 %v5280_v23, %v5252_v7  ;;  %v5304_v17 = vadd.f32 %v5288_v8, %v5254_v10  ;;  %6420 = vmatpush3.bf16.msra.mxu0 %v5345_v5  ;;  %6442 = vmatpush3.bf16.msra.mxu1 %v5361_v6  ;;  %v5556_v23 = vld [vmem:[%s7689_s4 + $0x18] sm:$0xff]  ;;  %v6816_v1 = vpack.c.bf16 %v5558_v9, %v5557_v0  ;;  %v5561_v4 = vld [vmem:[%s7689_s4 + $0x40] sm:$0xff]  ;;  %v5562_v5 = vld [vmem:[%s7689_s4 + $0x48] sm:$0xff] }
0x1d9d   :  { %6421 = vmatprep.subr.bf16.mxu0 %v5354_v12  ;;  %6443 = vmatprep.subr.bf16.mxu1 %v5370_v13  ;;  %v5309_v40 = vmax.f32 %v5301_v46, 0.0  ;;  %v5311_v55 = vmax.f32 %v5303_v30, 0.0  ;;  %v6813_v8 = vpack.c.bf16 %v5556_v23, %v5555_v39  ;;  %v6822_v6 = vpack.c.bf16 %v5562_v5, %v5561_v4  ;;  %v5563_v7 = vld [vmem:[%s7689_s4 + $0x50] sm:$0xff]  ;;  %v5564_v10 = vld [vmem:[%s7689_s4 + $0x58] sm:$0xff]  ;;  %v5565_v13 = vld [vmem:[%s7689_s4 + $0x60] sm:$0xff] }
0x1d9e   :  { %v5310_v19 = vmax.f32 %v5302_v16, 0.0  ;;  %v5312_v20 = vmax.f32 %v5304_v17, 0.0  ;;  %v6825_v12 = vpack.c.bf16 %v5564_v10, %v5563_v7  ;;  %v5566_v38 = vld [vmem:[%s7689_s4 + $0x68] sm:$0xff]  ;;  %v5567_v43 = vld [vmem:[%s7689_s4 + $0x70] sm:$0xff]  ;;  %v5568_v15 = vld [vmem:[%s7689_s4 + $0x78] sm:$0xff] }
0x1d9f   :  { %v5381_v36 = vpack.c.bf16 %v5309_v40, %v5309_v40  ;;  %v5383_v54 = vpack.c.bf16 %v5311_v55, %v5311_v55  ;;  %v6828_v14 = vpack.c.bf16 %v5566_v38, %v5565_v13  ;;  %v6831_v16 = vpack.c.bf16 %v5568_v15, %v5567_v43 }
0x1da0   :  { %v5382_v26 = vpack.c.bf16 %v5310_v19, %v5310_v19  ;;  %v5384_v27 = vpack.c.bf16 %v5312_v20, %v5312_v20  ;;  %6422 = vmatpush3.bf16.msra.mxu0 %v5346_v22  ;;  %6444 = vmatpush3.bf16.msra.mxu1 %v5362_v18  ;;  %v6028_v18 = vld [vmem:[%s7684_s24] ss:$0 sm:$0xff]  ;;  %s7510_s24 = smov 116  }
0x1da1   :  { %6423 = vmatprep.subr.bf16.mxu0 %v5355_v24  ;;  %6445 = vmatprep.subr.bf16.mxu1 %v5371_v25 }
0x1da2   :  { %5504 = vmatprep.mubr.bf16.mxu0 %v5382_v26  ;;  %5544 = vmatprep.mubr.bf16.mxu1 %v5384_v27 }
0x1da4   :  { %6424 = vmatpush3.bf16.msra.mxu0 %v5347_v28  ;;  %6446 = vmatpush3.bf16.msra.mxu1 %v5363_v29 }
0x1da5   :  { %6425 = vmatprep.subr.bf16.mxu0 %v5356_v37  ;;  %6447 = vmatprep.subr.bf16.mxu1 %v5372_v60 }
0x1da8   :  { %6426 = vmatpush3.bf16.msra.mxu0 %v5348_v33  ;;  %6448 = vmatpush3.bf16.msra.mxu1 %v5364_v32 }
0x1da9   :  { %6427 = vmatprep.subr.bf16.mxu0 %v5357_v31  ;;  %6449 = vmatprep.subr.bf16.mxu1 %v5373_v59 }
0x1dac   :  { %6428 = vmatpush3.bf16.msra.mxu0 %v5349_v61  ;;  %6450 = vmatpush3.bf16.msra.mxu1 %v5365_v42 }
0x1dad   :  { %6429 = vmatprep.subr.bf16.mxu0 %v5358_v44  ;;  %6451 = vmatprep.subr.bf16.mxu1 %v5374_v11 }
0x1db0   :  { %6430 = vmatpush3.bf16.msra.mxu0 %v5350_v34  ;;  %6452 = vmatpush3.bf16.msra.mxu1 %v5366_v50 }
0x1db1   :  { %6431 = vmatprep.subr.bf16.mxu0 %v5359_v53  ;;  %6453 = vmatprep.subr.bf16.mxu1 %v5375_v62  ;;  %v6029_v53 = vld [vmem:[%s7694_s14] ss:$0 sm:$0xff]  ;;  %s7509_s14 = smov 124  }
0x1db4   :  { %6432 = vmatpush3.bf16.msra.mxu0 %v5351_v63  ;;  %6454 = vmatpush3.bf16.msra.mxu1 %v5367_v49 }
0x1db5   :  { %6433 = vmatprep.subr.bf16.mxu0 %v5360_v56  ;;  %6455 = vmatprep.subr.bf16.mxu1 %v5376_v52 }
0x1db8   :  { %6434 = vmatpush3.bf16.msra.mxu0 %v5352_v48  ;;  %6456 = vmatpush3.bf16.msra.mxu1 %v5368_v41 }
0x1db9   :  { %6809 = vmatprep.subr.bf16.mxu0 %v8786_v21 }
0x1dbb   :  { %5505 = vmatmul.mubr.bf16.vlgmr.msra.gmra.mrb[92].mxu0 %v5381_v36  ;;  %5545 = vmatmul.mubr.bf16.vlgmr.msra.gmra.mrb[92].mxu1 %v5383_v54 }
0x1dbc   :  { %6674 = vmatprep.mubr.msk.f32.mxu0 %vm7504_vm3, %v8778_v51  ;;  %6811 = vmatpush3.bf16.msra.mxu0 %v6810_v47  ;;  %v5559_v51 = vld [vmem:[%s7689_s4 + $0x30] sm:$0xff] }
0x1dbd   :  { %6812 = vmatprep.subr.bf16.mxu0 %v8786_v21  ;;  %v6819_v3 = vpack.c.bf16 %v5560_v2, %v5559_v51 }
0x1dc0   :  { %6814 = vmatpush3.bf16.msra.mxu0 %v6813_v8 }
0x1dc1   :  { %6815 = vmatprep.subr.bf16.mxu0 %v8786_v21 }
0x1dc4   :  { %6817 = vmatpush3.bf16.msra.mxu0 %v6816_v1 }
0x1dc5   :  { %6818 = vmatprep.subr.bf16.mxu0 %v8786_v21 }
0x1dc8   :  { %6820 = vmatpush3.bf16.msra.mxu0 %v6819_v3 }
0x1dc9   :  { %6821 = vmatprep.subr.bf16.mxu0 %v8786_v21 }
0x1dcc   :  { %6823 = vmatpush3.bf16.msra.mxu0 %v6822_v6 }
0x1dcd   :  { %6824 = vmatprep.subr.bf16.mxu0 %v8786_v21 }
0x1dd0   :  { %6826 = vmatpush3.bf16.msra.mxu0 %v6825_v12 }
0x1dd1   :  { %6827 = vmatprep.subr.bf16.mxu0 %v8786_v21 }
0x1dd4   :  { %6829 = vmatpush3.bf16.msra.mxu0 %v6828_v14 }
0x1dd5   :  { %6830 = vmatprep.subr.bf16.mxu0 %v8786_v21 }
0x1dd8   :  { %6832 = vmatpush3.bf16.msra.mxu0 %v6831_v16 }
0x1e6e   :  { %v6391_v17 = vpop.f32.mrb[88].mxu0  ;;  %v6413_v22 = vpop.f32.mrb[88].mxu1 }
0x1e6f   :  { %v6392_v19 = vpop.f32.mrb[89].mxu0  ;;  %v6414_v20 = vpop.f32.mrb[89].mxu1 }
0x1e70   :  { %v6393_v24 = vadd.f32 %v6392_v19, %v6391_v17  ;;  %v6415_v25 = vadd.f32 %v6414_v20, %v6413_v22  ;;  %v6394_v26 = vpop.f32.mrb[90].mxu0  ;;  %v6416_v27 = vpop.f32.mrb[90].mxu1 }
0x1e71   :  { %v6395_v28 = vpop.f32.mrb[91].mxu0  ;;  %v6417_v29 = vpop.f32.mrb[91].mxu1 }
0x1e72   :  { %v5427_v37 = vadd.f32 %v6393_v24, %v6028_v18 }
0x1e74   :  { %v5467_v60 = vadd.f32 %v6415_v25, %v5427_v37 }
0x1e8e   :  { %v6435_v33 = vpop.f32.mrb[92].mxu0  ;;  %v6457_v21 = vpop.f32.mrb[92].mxu1 }
0x1e8f   :  { %v6436_v32 = vpop.f32.mrb[93].mxu0  ;;  %v6458_v31 = vpop.f32.mrb[93].mxu1 }
0x1e90   :  { %v6437_v59 = vadd.f32 %v6436_v32, %v6435_v33  ;;  %v6459_v61 = vadd.f32 %v6458_v31, %v6457_v21  ;;  %v6438_v42 = vpop.f32.mrb[94].mxu0  ;;  %v6460_v44 = vpop.f32.mrb[94].mxu1 }
0x1e91   :  { %v6439_v11 = vpop.f32.mrb[95].mxu0  ;;  %v6461_v35 = vpop.f32.mrb[95].mxu1 }
0x1e92   :  { %v5507_v58 = vadd.f32 %v6437_v59, %v5467_v60 }
0x1e94   :  { %v5547_v34 = vadd.f32 %v6459_v61, %v5507_v58 }
0x1e96   :  { %v5552_v50 = vmax.f32 %v5547_v34, 0.0 }
0x1e98   :  { %6675 = vmatmul.mubr.f32.vlgmr.msra.gmra.mrb[96].mxu0 %v5552_v50 }
0x1f6b   :  { %v5642_v62 = vpop.f32.mrb[96].mxu0 }
0x1f6c   :  { %v5643_v46 = vadd.f32 %v6029_v53, %v5642_v62  ;;  %v6676_v30 = vpop.f32.mrb[97].mxu0 }
0x1f6e   :  { %v5678_v63 = vsel %vm5677_vm7, %v5643_v46, -inf  ;;  %v5660_v49 = vsel %vm5659_vm8, %v5643_v46, -inf  ;;  %v5647_v56 = vsel %vm5646_vm9, %v5643_v46, -inf }
0x1f6f   :  { %5679 = vmax.xlane.f32.xlu1 %v5678_v63  ;;  %5661 = vmax.xlane.f32.xlu0 %v5660_v49 }
0x1f73   :  { %5648 = vmax.xlane.f32.xlu1 %v5647_v56 }
0x1ffc   :  { %v5680_v52 = vpop.xlane.xlu1 %5679  ;;  %v5662_v40 = vpop.xlane.xlu0 %5661 }
0x1ffd   :  { %v5663_v55 = vsub.f32 %v5643_v46, %v5662_v40  ;;  %v5681_v48 = vsub.f32 %v5643_v46, %v5680_v52 }
0x1fff   :  { %v5664_v41 = vmul.f32 1.442695, %v5663_v55  ;;  %v5682_v36 = vmul.f32 1.442695, %v5681_v48 }
0x2000   :  { %v5649_v57 = vpop.xlane.xlu1 %5648 }
0x2001   :  { %7115 = vpow2.f32 %v5664_v41  ;;  %v5650_v39 = vsub.f32 %v5643_v46, %v5649_v57 }
0x2002   :  { %7117 = vpow2.f32 %v5682_v36 }
0x2003   :  { %v5651_v47 = vmul.f32 1.442695, %v5650_v39 }
0x2005   :  { %7119 = vpow2.f32 %v5651_v47 }
0x200b   :  { %v7116_v54 = vpop.eup %7115 }
0x200c   :  { %5667 = vrot.lane.b32.xlu1 %v7116_v54, %s7509_s14  ;;  %v7118_v45 = vpop.eup %7117 }
0x200f   :  { %v7120_v23 = vpop.eup %7119 }
0x2010   :  { %5685 = vrot.lane.b32.xlu1 %v7118_v45, %s7510_s24  ;;  %v5653_v8 = vsel %vm5646_vm9, %v7120_v23, 0.0 }
0x2034   :  { %5654 = vadd.xlane.f32.xlu1 %v5653_v8 }
0x207e   :  { %v5668_v0 = vpop.permute.xlu1 %5667 }
0x207f   :  { %v5671_v9 = vsel %vm5670_vm10, %v5668_v0, 0.0 }
0x2080   :  { %5672 = vadd.xlane.f32.xlu0 %v5671_v9 }
0x2082   :  { %v5686_v1 = vpop.permute.xlu1 %5685 }
0x2083   :  { %v5689_v51 = vsel %vm5688_vm11, %v5686_v1, 0.0 }
0x2084   :  { %5690 = vadd.xlane.f32.xlu0 %v5689_v51 }
0x20c1   :  { %v5655_v2 = vpop.xlane.xlu1 %5654 }
0x20c2   :  { %7121 = vlog2.f32 %v5655_v2 }
0x20cc   :  { %v7122_v5 = vpop.eup %7121 }
0x20cd   :  { %v5657_v10 = vmul.f32 0.6931472, %v7122_v5 }
0x20cf   :  { %v5658_v14 = vsub.f32 %v5650_v39, %v5657_v10 }
0x210d   :  { %v5673_v3 = vpop.xlane.xlu0 %5672 }
0x210e   :  { %7123 = vlog2.f32 %v5673_v3 }
0x2111   :  { %v5691_v4 = vpop.xlane.xlu0 %5690 }
0x2112   :  { %7125 = vlog2.f32 %v5691_v4 }
0x2118   :  { %v7124_v6 = vpop.eup %7123 }
0x2119   :  { %v5675_v7 = vmul.f32 0.6931472, %v7124_v6 }
0x211b   :  { %v5676_v13 = vsub.f32 %v5663_v55, %v5675_v7 }
0x211c   :  { %v7126_v12 = vpop.eup %7125 }
0x211d   :  { %v5693_v38 = vmul.f32 0.6931472, %v7126_v12  ;;  %v5696_v15 = vsel %vm5695_vm12, %v5658_v14, %v5676_v13 }
0x211f   :  { %v5694_v43 = vsub.f32 %v5681_v48, %v5693_v38 }
0x2121   :  { %v5698_v16 = vsel %vm5697_vm13, %v5696_v15, %v5694_v43 }
0x2122   :  { %5700 = vst.msk [vmem:[%s7699_s9] sm:$0x3] %vm5699_vm14, %v5698_v16 }
0x2123   :  { %5705 = vsyncpa [#allocation10], 1 }
0x2124   :  { %5706 = vsyncpa [#allocation12], 1 }
0x2125   :  { %5707 = vsyncpa [#allocation15], 1 }
0x2126   :  { %5708 = vsyncpa [#allocation18], 1 }
0x2127   :  { %5709 = vsyncpa [#allocation21], 1 }
0x2128   :  { %5710 = vsyncpa [#allocation24], 1 }
0x2129   :  { %5711 = vsyncpa [#allocation27], 1 }
0x212a   :  { %5712 = vsyncmov [#allocation8] }
0x212d   :  { %s5713_s4 = vpop.sfrf %5712 }
0x212e   :  { %p6030_p6 = scmp.ne.s32.totalorder %s5713_s4, 0 }
0x2130   :  { %5717 = shalt.err (%p6030_p6)  }
0x2131   :  { %5719 = vsyncmov [#allocation8 + $0x1] }
0x2134   :  { %s5720_s26 = vpop.sfrf %5719 }
0x2135   :  { %p6031_p7 = scmp.ne.s32.totalorder %s5720_s26, 0 }
0x2137   :  { %5724 = shalt.err (%p6031_p7)  }
0x2138   :  { %5726 = vsyncmov [#allocation8 + $0x2] }
0x213b   :  { %s5727_s28 = vpop.sfrf %5726 }
0x213c   :  { %p6032_p8 = scmp.ne.s32.totalorder %s5727_s28, 0 }
0x213e   :  { %5731 = shalt.err (%p6032_p8)  }
0x213f   :  { %5733 = vsyncmov [#allocation8 + $0x3] }
0x2142   :  { %s5734_s9 = vpop.sfrf %5733 }
0x2143   :  { %p6033_p9 = scmp.ne.s32.totalorder %s5734_s9, 0 }
0x2145   :  { %5738 = shalt.err (%p6033_p9)  }
0x2146   :  { %5740 = vsyncmov [#allocation8 + $0x4] }
0x2149   :  { %s5741_s1 = vpop.sfrf %5740 }
0x214a   :  { %p6034_p10 = scmp.ne.s32.totalorder %s5741_s1, 0 }
0x214c   :  { %5745 = shalt.err (%p6034_p10)  }
0x214d   :  { %5747 = vsyncmov [#allocation8 + $0x5] }
0x2150   :  { %s5748_s12 = vpop.sfrf %5747 }
0x2151   :  { %p6035_p11 = scmp.ne.s32.totalorder %s5748_s12, 0 }
0x2153   :  { %5752 = shalt.err (%p6035_p11)  }

</bundles_post_ra>
